<compile_context>
chip_gen: v6e
topology: v6e:2x2x1
jax: 0.10.0
libtpu: 0.0.40
codegen_flags: <defaults>
</compile_context>

<pallas_src>
import functools

import jax
import jax.numpy as jnp
from jax.experimental import pallas as pl
from jax.experimental.pallas import tpu as pltpu

# --------------------------- config ---------------------------------------
PAD_ID = 0
VOCAB = 64          # model.vocab_size -> also becomes wrapper.max_seq_len
VOCAB_PAD = 128     # lane-dense padding for the vocab projection / CE path
D_MODEL = 32
N_HEADS = 4
D_HEAD = D_MODEL // N_HEADS
D_FF = 64
MAX_LEN = 32


# --------------------------- in-kernel helpers (values, not refs) ----------
def _layer_norm(x, g, b):
    mu = jnp.mean(x, axis=-1, keepdims=True)
    var = jnp.mean(jnp.square(x - mu), axis=-1, keepdims=True)
    return (x - mu) * jax.lax.rsqrt(var + 1e-5) * g + b


def _embed(ids_col, tok_emb, pos_emb, n_rows, seq_len, batch):
    """One-hot matmul embedding lookup + positional embedding."""
    cols = jax.lax.broadcasted_iota(jnp.int32, (n_rows, VOCAB), 1)
    onehot = (cols == ids_col).astype(jnp.float32)
    tok = jnp.dot(onehot, tok_emb, preferred_element_type=jnp.float32)
    pos = jnp.concatenate([pos_emb[:seq_len, :]] * batch, axis=0)
    return tok + pos


def _mha(x_q, x_kv, mask_b3, prm, batch, len_q, len_k):
    """Multi-head attention on 2-D activation slabs with batched 3-D einsums.

    x_q: (B*len_q, D), x_kv: (B*len_k, D), mask_b3: (B, len_q, len_k) float.
    Per-head weights are pre-laid-out as (H, D, dh) / (H, dh, D), so only
    leading-axis indexing and MXU dots happen inside the kernel.
    """
    scale = 1.0 / (D_HEAD ** 0.5)
    out = None
    for h in range(N_HEADS):
        q_h = (jnp.dot(x_q, prm["wq"][h], preferred_element_type=jnp.float32)
               + prm["bq"][h]).reshape(batch, len_q, D_HEAD)
        k_h = (jnp.dot(x_kv, prm["wk"][h], preferred_element_type=jnp.float32)
               + prm["bk"][h]).reshape(batch, len_k, D_HEAD)
        v_h = (jnp.dot(x_kv, prm["wv"][h], preferred_element_type=jnp.float32)
               + prm["bv"][h]).reshape(batch, len_k, D_HEAD)
        s = jnp.einsum("bqd,bkd->bqk", q_h, k_h,
                       preferred_element_type=jnp.float32) * scale
        s = jnp.where(mask_b3 > 0.5, s, -1e9)
        s = s - jnp.max(s, axis=-1, keepdims=True)
        e = jnp.exp(s)
        p = e / jnp.sum(e, axis=-1, keepdims=True)
        ctx = jnp.einsum("bqk,bkd->bqd", p, v_h,
                         preferred_element_type=jnp.float32)
        contrib = jnp.dot(ctx.reshape(batch * len_q, D_HEAD), prm["wo"][h],
                          preferred_element_type=jnp.float32)
        out = contrib if out is None else out + contrib
    return out + prm["bo"]


def _ffn(x, prm):
    h = jnp.dot(x, prm["w1"], preferred_element_type=jnp.float32) + prm["b1"]
    h = jnp.maximum(h, 0.0)
    return jnp.dot(h, prm["w2"], preferred_element_type=jnp.float32) + prm["b2"]


# --------------------------- the single fused kernel ------------------------
def _fused_forward_kernel(q_ids_ref, a_in_ids_ref, a_tgt_ref,
                          enc_mask_ref, dec_mask_ref, cross_mask_ref, tgt_mask_ref,
                          *rest, treedef, n_params, B, Lq, La):
    param_refs = rest[:n_params]
    logits_ref = rest[n_params]
    loss_ref = rest[n_params + 1]

    # Load all (tiny) params once; everything stays VMEM/vreg resident.
    p = jax.tree_util.tree_unflatten(treedef, [r[...] for r in param_refs])

    q_ids = q_ids_ref[...]            # (B*Lq, 1) int32
    a_in_ids = a_in_ids_ref[...]      # (B*La, 1) int32
    tgt = a_tgt_ref[...]              # (B*La, 1) int32
    enc_mask = enc_mask_ref[...]      # (B, Lq, Lq) f32
    dec_mask = dec_mask_ref[...]      # (B, La, La) f32
    cross_mask = cross_mask_ref[...]  # (B, La, Lq) f32
    tgt_mask = tgt_mask_ref[...]      # (B*La, 1) f32

    # ---------------- encoder (1 layer) ----------------
    x = _embed(q_ids, p["tok_emb"], p["pos_emb"], B * Lq, Lq, B)
    x = _layer_norm(x + _mha(x, x, enc_mask, p["enc_attn"], B, Lq, Lq), *p["enc_ln1"])
    x = _layer_norm(x + _ffn(x, p["enc_ffn"]), *p["enc_ln2"])
    enc = x

    # ---------------- decoder (1 layer) ----------------
    y = _embed(a_in_ids, p["tok_emb"], p["pos_emb"], B * La, La, B)
    y = _layer_norm(y + _mha(y, y, dec_mask, p["dec_self_attn"], B, La, La), *p["dec_ln1"])
    y = _layer_norm(y + _mha(y, enc, cross_mask, p["dec_cross_attn"], B, La, Lq), *p["dec_ln2"])
    y = _layer_norm(y + _ffn(y, p["dec_ffn"]), *p["dec_ln3"])

    # ---------------- vocab projection (lane-padded to 128) ----------------
    w_out, b_out = p["out_proj"]
    logits = jnp.dot(y, w_out, preferred_element_type=jnp.float32) + b_out  # (B*La, 128)
    logits_ref[...] = logits

    # ---------------- masked token-level cross-entropy ----------------
    col = jax.lax.broadcasted_iota(jnp.int32, logits.shape, 1)
    z = jnp.where(col < VOCAB, logits, -1e9)                 # ignore lane padding
    m = jnp.max(z, axis=-1, keepdims=True)
    lse = m + jnp.log(jnp.sum(jnp.exp(z - m), axis=-1, keepdims=True))
    picked = jnp.sum(jnp.where(col == tgt, logits, 0.0), axis=-1, keepdims=True)
    nll = (lse - picked) * tgt_mask
    loss = jnp.sum(nll) / jnp.maximum(jnp.sum(tgt_mask), 1.0)
    loss_ref[...] = loss.reshape(1, 1)


# --------------------------- wrapper (plain JAX glue) -----------------------
def _full_spec(arr):
    nd = arr.ndim
    return pl.BlockSpec(arr.shape, lambda i, _nd=nd: (0,) * _nd)


def create_masks(question, answer_input, answer_target):
    B, Lq = question.shape
    La = answer_input.shape[1]
    q_pad = question != PAD_ID                                        # (B, Lq)
    enc_self = jnp.broadcast_to(q_pad[:, None, :], (B, Lq, Lq)).astype(jnp.float32)
    a_pad = (answer_input != PAD_ID)[:, None, :]                      # (B, 1, La)
    causal = jnp.tril(jnp.ones((La, La), dtype=bool))[None]           # (1, La, La)
    dec_self = (a_pad & causal).astype(jnp.float32)                   # (B, La, La)
    cross = jnp.broadcast_to(q_pad[:, None, :], (B, La, Lq)).astype(jnp.float32)
    tgt_mask = (answer_target != PAD_ID).astype(jnp.float32)          # (B, La)
    return enc_self, dec_self, cross, tgt_mask


def autoregressive_wrapper_forward(params, question, answer):
    """Mirrors AutoregressiveWrapper.forward(question, answer, criterion)."""
    answer_input = answer[:, :-1]
    answer_target = answer[:, 1:]
    B, Lq = question.shape
    La = answer_input.shape[1]

    enc_m, dec_m, cross_m, tgt_m = create_masks(question, answer_input, answer_target)

    leaves, treedef = jax.tree_util.tree_flatten(params)
    n_params = len(leaves)

    data_inputs = [
        question.reshape(B * Lq, 1).astype(jnp.int32),
        answer_input.reshape(B * La, 1).astype(jnp.int32),
        answer_target.reshape(B * La, 1).astype(jnp.int32),
        enc_m, dec_m, cross_m,
        tgt_m.reshape(B * La, 1),
    ]
    all_inputs = data_inputs + list(leaves)

    kernel = functools.partial(
        _fused_forward_kernel,
        treedef=treedef, n_params=n_params, B=B, Lq=Lq, La=La)

    logits_pad, loss = pl.pallas_call(
        kernel,
        grid=(1,),
        in_specs=[_full_spec(a) for a in all_inputs],
        out_specs=(pl.BlockSpec((B * La, VOCAB_PAD), lambda i: (0, 0)),
                   pl.BlockSpec((1, 1), lambda i: (0, 0))),
        out_shape=(jax.ShapeDtypeStruct((B * La, VOCAB_PAD), jnp.float32),
                   jax.ShapeDtypeStruct((1, 1), jnp.float32)),
        compiler_params=pltpu.CompilerParams(dimension_semantics=("arbitrary",)),
    )(*all_inputs)

    output = logits_pad[:, :VOCAB].reshape(B, La, VOCAB)
    return output, loss[0, 0]


# --------------------------- deterministic params --------------------------
def _dense_init(key, fan_in, fan_out):
    w = jax.random.normal(key, (fan_in, fan_out), jnp.float32) / jnp.sqrt(float(fan_in))
    b = jnp.zeros((1, fan_out), jnp.float32)
    return w, b


def _attn_params(key):
    ks = jax.random.split(key, 4)

    def per_head_in(k):
        w, _ = _dense_init(k, D_MODEL, D_MODEL)
        # (D, D) -> (H, D, dh): head h gets columns [h*dh, (h+1)*dh)
        return jnp.transpose(w.reshape(D_MODEL, N_HEADS, D_HEAD), (1, 0, 2))

    wq = per_head_in(ks[0])
    wk = per_head_in(ks[1])
    wv = per_head_in(ks[2])
    wo_full, _ = _dense_init(ks[3], D_MODEL, D_MODEL)
    wo = wo_full.reshape(N_HEADS, D_HEAD, D_MODEL)   # head h -> rows [h*dh, (h+1)*dh)
    zeros_h = jnp.zeros((N_HEADS, 1, D_HEAD), jnp.float32)
    return {
        "wq": wq, "wk": wk, "wv": wv,
        "bq": zeros_h, "bk": zeros_h, "bv": zeros_h,
        "wo": wo,
        "bo": jnp.zeros((1, D_MODEL), jnp.float32),
    }


def _ffn_params(key):
    k1, k2 = jax.random.split(key)
    w1, b1 = _dense_init(k1, D_MODEL, D_FF)
    w2, b2 = _dense_init(k2, D_FF, D_MODEL)
    return {"w1": w1, "b1": b1, "w2": w2, "b2": b2}


def _ln_params():
    return (jnp.ones((1, D_MODEL), jnp.float32), jnp.zeros((1, D_MODEL), jnp.float32))


def _out_proj_params(key):
    w, _ = _dense_init(key, D_MODEL, VOCAB)
    w_pad = jnp.pad(w, ((0, 0), (0, VOCAB_PAD - VOCAB)))       # zero-padded lanes
    b_pad = jnp.zeros((1, VOCAB_PAD), jnp.float32)
    return (w_pad, b_pad)


def init_params(key):
    ks = jax.random.split(key, 8)
    return {
        "tok_emb": jax.random.normal(ks[0], (VOCAB, D_MODEL), jnp.float32) * 0.02,
        "pos_emb": jax.random.normal(ks[1], (MAX_LEN, D_MODEL), jnp.float32) * 0.02,
        "enc_attn": _attn_params(ks[2]),
        "enc_ln1": _ln_params(),
        "enc_ffn": _ffn_params(ks[3]),
        "enc_ln2": _ln_params(),
        "dec_self_attn": _attn_params(ks[4]),
        "dec_ln1": _ln_params(),
        "dec_cross_attn": _attn_params(ks[5]),
        "dec_ln2": _ln_params(),
        "dec_ffn": _ffn_params(ks[6]),
        "dec_ln3": _ln_params(),
        "out_proj": _out_proj_params(ks[7]),
    }


# --------------------------- main ------------------------------------------
if __name__ == "__main__":
    key = jax.random.PRNGKey(0)
    kq, ka, kp = jax.random.split(key, 3)

    B, Lq, La_full = 2, 8, 9  # answer has 9 tokens -> input/target length 8
    question = jax.random.randint(kq, (B, Lq), 1, VOCAB, dtype=jnp.int32)
    answer = jax.random.randint(ka, (B, La_full), 1, VOCAB, dtype=jnp.int32)
    # introduce some padding to exercise the masks
    question = question.at[1, 6:].set(PAD_ID)
    answer = answer.at[1, 7:].set(PAD_ID)

    params = init_params(kp)

    fwd = jax.jit(autoregressive_wrapper_forward)
    output, loss = fwd(params, question, answer)
    jax.block_until_ready((output, loss))

    assert output.shape == (B, La_full - 1, VOCAB)
    assert bool(jnp.isfinite(loss))
    print("KERNEL_OK")
</pallas_src>

<mosaic_0001>
module attributes {stable_mosaic.version = 11 : i64} {
  func.func @_fused_forward_kernel(%arg0: i32, %arg1: memref<16x1xi32, #tpu.memory_space<vmem>>, %arg2: memref<16x1xi32, #tpu.memory_space<vmem>>, %arg3: memref<16x1xi32, #tpu.memory_space<vmem>>, %arg4: memref<2x8x8xf32, #tpu.memory_space<vmem>>, %arg5: memref<2x8x8xf32, #tpu.memory_space<vmem>>, %arg6: memref<2x8x8xf32, #tpu.memory_space<vmem>>, %arg7: memref<16x1xf32, #tpu.memory_space<vmem>>, %arg8: memref<4x1x8xf32, #tpu.memory_space<vmem>>, %arg9: memref<1x32xf32, #tpu.memory_space<vmem>>, %arg10: memref<4x1x8xf32, #tpu.memory_space<vmem>>, %arg11: memref<4x1x8xf32, #tpu.memory_space<vmem>>, %arg12: memref<4x32x8xf32, #tpu.memory_space<vmem>>, %arg13: memref<4x8x32xf32, #tpu.memory_space<vmem>>, %arg14: memref<4x32x8xf32, #tpu.memory_space<vmem>>, %arg15: memref<4x32x8xf32, #tpu.memory_space<vmem>>, %arg16: memref<1x64xf32, #tpu.memory_space<vmem>>, %arg17: memref<1x32xf32, #tpu.memory_space<vmem>>, %arg18: memref<32x64xf32, #tpu.memory_space<vmem>>, %arg19: memref<64x32xf32, #tpu.memory_space<vmem>>, %arg20: memref<1x32xf32, #tpu.memory_space<vmem>>, %arg21: memref<1x32xf32, #tpu.memory_space<vmem>>, %arg22: memref<1x32xf32, #tpu.memory_space<vmem>>, %arg23: memref<1x32xf32, #tpu.memory_space<vmem>>, %arg24: memref<1x32xf32, #tpu.memory_space<vmem>>, %arg25: memref<1x32xf32, #tpu.memory_space<vmem>>, %arg26: memref<4x1x8xf32, #tpu.memory_space<vmem>>, %arg27: memref<1x32xf32, #tpu.memory_space<vmem>>, %arg28: memref<4x1x8xf32, #tpu.memory_space<vmem>>, %arg29: memref<4x1x8xf32, #tpu.memory_space<vmem>>, %arg30: memref<4x32x8xf32, #tpu.memory_space<vmem>>, %arg31: memref<4x8x32xf32, #tpu.memory_space<vmem>>, %arg32: memref<4x32x8xf32, #tpu.memory_space<vmem>>, %arg33: memref<4x32x8xf32, #tpu.memory_space<vmem>>, %arg34: memref<4x1x8xf32, #tpu.memory_space<vmem>>, %arg35: memref<1x32xf32, #tpu.memory_space<vmem>>, %arg36: memref<4x1x8xf32, #tpu.memory_space<vmem>>, %arg37: memref<4x1x8xf32, #tpu.memory_space<vmem>>, %arg38: memref<4x32x8xf32, #tpu.memory_space<vmem>>, %arg39: memref<4x8x32xf32, #tpu.memory_space<vmem>>, %arg40: memref<4x32x8xf32, #tpu.memory_space<vmem>>, %arg41: memref<4x32x8xf32, #tpu.memory_space<vmem>>, %arg42: memref<1x64xf32, #tpu.memory_space<vmem>>, %arg43: memref<1x32xf32, #tpu.memory_space<vmem>>, %arg44: memref<32x64xf32, #tpu.memory_space<vmem>>, %arg45: memref<64x32xf32, #tpu.memory_space<vmem>>, %arg46: memref<1x32xf32, #tpu.memory_space<vmem>>, %arg47: memref<1x32xf32, #tpu.memory_space<vmem>>, %arg48: memref<1x32xf32, #tpu.memory_space<vmem>>, %arg49: memref<1x32xf32, #tpu.memory_space<vmem>>, %arg50: memref<32x128xf32, #tpu.memory_space<vmem>>, %arg51: memref<1x128xf32, #tpu.memory_space<vmem>>, %arg52: memref<32x32xf32, #tpu.memory_space<vmem>>, %arg53: memref<64x32xf32, #tpu.memory_space<vmem>>, %arg54: memref<16x128xf32, #tpu.memory_space<vmem>>, %arg55: memref<1x1xf32, #tpu.memory_space<vmem>>) attributes {dimension_semantics = [#tpu.dimension_semantics<arbitrary>], iteration_bounds = array<i64: 1>, scalar_prefetch = 0 : i64, scratch_operands = 0 : i64, tpu.core_type = #tpu.core_type<tc>, window_params = [{pipeline_mode = #tpu.pipeline_mode<synchronous>, transform_indices = @transform_0, window_bounds = array<i64: 16, 1>}, {pipeline_mode = #tpu.pipeline_mode<synchronous>, transform_indices = @transform_1, window_bounds = array<i64: 16, 1>}, {pipeline_mode = #tpu.pipeline_mode<synchronous>, transform_indices = @transform_2, window_bounds = array<i64: 16, 1>}, {pipeline_mode = #tpu.pipeline_mode<synchronous>, transform_indices = @transform_3, window_bounds = array<i64: 2, 8, 8>}, {pipeline_mode = #tpu.pipeline_mode<synchronous>, transform_indices = @transform_4, window_bounds = array<i64: 2, 8, 8>}, {pipeline_mode = #tpu.pipeline_mode<synchronous>, transform_indices = @transform_5, window_bounds = array<i64: 2, 8, 8>}, {pipeline_mode = #tpu.pipeline_mode<synchronous>, transform_indices = @transform_6, window_bounds = array<i64: 16, 1>}, {pipeline_mode = #tpu.pipeline_mode<synchronous>, transform_indices = @transform_7, window_bounds = array<i64: 4, 1, 8>}, {pipeline_mode = #tpu.pipeline_mode<synchronous>, transform_indices = @transform_8, window_bounds = array<i64: 1, 32>}, {pipeline_mode = #tpu.pipeline_mode<synchronous>, transform_indices = @transform_9, window_bounds = array<i64: 4, 1, 8>}, {pipeline_mode = #tpu.pipeline_mode<synchronous>, transform_indices = @transform_10, window_bounds = array<i64: 4, 1, 8>}, {pipeline_mode = #tpu.pipeline_mode<synchronous>, transform_indices = @transform_11, window_bounds = array<i64: 4, 32, 8>}, {pipeline_mode = #tpu.pipeline_mode<synchronous>, transform_indices = @transform_12, window_bounds = array<i64: 4, 8, 32>}, {pipeline_mode = #tpu.pipeline_mode<synchronous>, transform_indices = @transform_13, window_bounds = array<i64: 4, 32, 8>}, {pipeline_mode = #tpu.pipeline_mode<synchronous>, transform_indices = @transform_14, window_bounds = array<i64: 4, 32, 8>}, {pipeline_mode = #tpu.pipeline_mode<synchronous>, transform_indices = @transform_15, window_bounds = array<i64: 1, 64>}, {pipeline_mode = #tpu.pipeline_mode<synchronous>, transform_indices = @transform_16, window_bounds = array<i64: 1, 32>}, {pipeline_mode = #tpu.pipeline_mode<synchronous>, transform_indices = @transform_17, window_bounds = array<i64: 32, 64>}, {pipeline_mode = #tpu.pipeline_mode<synchronous>, transform_indices = @transform_18, window_bounds = array<i64: 64, 32>}, {pipeline_mode = #tpu.pipeline_mode<synchronous>, transform_indices = @transform_19, window_bounds = array<i64: 1, 32>}, {pipeline_mode = #tpu.pipeline_mode<synchronous>, transform_indices = @transform_20, window_bounds = array<i64: 1, 32>}, {pipeline_mode = #tpu.pipeline_mode<synchronous>, transform_indices = @transform_21, window_bounds = array<i64: 1, 32>}, {pipeline_mode = #tpu.pipeline_mode<synchronous>, transform_indices = @transform_22, window_bounds = array<i64: 1, 32>}, {pipeline_mode = #tpu.pipeline_mode<synchronous>, transform_indices = @transform_23, window_bounds = array<i64: 1, 32>}, {pipeline_mode = #tpu.pipeline_mode<synchronous>, transform_indices = @transform_24, window_bounds = array<i64: 1, 32>}, {pipeline_mode = #tpu.pipeline_mode<synchronous>, transform_indices = @transform_25, window_bounds = array<i64: 4, 1, 8>}, {pipeline_mode = #tpu.pipeline_mode<synchronous>, transform_indices = @transform_26, window_bounds = array<i64: 1, 32>}, {pipeline_mode = #tpu.pipeline_mode<synchronous>, transform_indices = @transform_27, window_bounds = array<i64: 4, 1, 8>}, {pipeline_mode = #tpu.pipeline_mode<synchronous>, transform_indices = @transform_28, window_bounds = array<i64: 4, 1, 8>}, {pipeline_mode = #tpu.pipeline_mode<synchronous>, transform_indices = @transform_29, window_bounds = array<i64: 4, 32, 8>}, {pipeline_mode = #tpu.pipeline_mode<synchronous>, transform_indices = @transform_30, window_bounds = array<i64: 4, 8, 32>}, {pipeline_mode = #tpu.pipeline_mode<synchronous>, transform_indices = @transform_31, window_bounds = array<i64: 4, 32, 8>}, {pipeline_mode = #tpu.pipeline_mode<synchronous>, transform_indices = @transform_32, window_bounds = array<i64: 4, 32, 8>}, {pipeline_mode = #tpu.pipeline_mode<synchronous>, transform_indices = @transform_33, window_bounds = array<i64: 4, 1, 8>}, {pipeline_mode = #tpu.pipeline_mode<synchronous>, transform_indices = @transform_34, window_bounds = array<i64: 1, 32>}, {pipeline_mode = #tpu.pipeline_mode<synchronous>, transform_indices = @transform_35, window_bounds = array<i64: 4, 1, 8>}, {pipeline_mode = #tpu.pipeline_mode<synchronous>, transform_indices = @transform_36, window_bounds = array<i64: 4, 1, 8>}, {pipeline_mode = #tpu.pipeline_mode<synchronous>, transform_indices = @transform_37, window_bounds = array<i64: 4, 32, 8>}, {pipeline_mode = #tpu.pipeline_mode<synchronous>, transform_indices = @transform_38, window_bounds = array<i64: 4, 8, 32>}, {pipeline_mode = #tpu.pipeline_mode<synchronous>, transform_indices = @transform_39, window_bounds = array<i64: 4, 32, 8>}, {pipeline_mode = #tpu.pipeline_mode<synchronous>, transform_indices = @transform_40, window_bounds = array<i64: 4, 32, 8>}, {pipeline_mode = #tpu.pipeline_mode<synchronous>, transform_indices = @transform_41, window_bounds = array<i64: 1, 64>}, {pipeline_mode = #tpu.pipeline_mode<synchronous>, transform_indices = @transform_42, window_bounds = array<i64: 1, 32>}, {pipeline_mode = #tpu.pipeline_mode<synchronous>, transform_indices = @transform_43, window_bounds = array<i64: 32, 64>}, {pipeline_mode = #tpu.pipeline_mode<synchronous>, transform_indices = @transform_44, window_bounds = array<i64: 64, 32>}, {pipeline_mode = #tpu.pipeline_mode<synchronous>, transform_indices = @transform_45, window_bounds = array<i64: 1, 32>}, {pipeline_mode = #tpu.pipeline_mode<synchronous>, transform_indices = @transform_46, window_bounds = array<i64: 1, 32>}, {pipeline_mode = #tpu.pipeline_mode<synchronous>, transform_indices = @transform_47, window_bounds = array<i64: 1, 32>}, {pipeline_mode = #tpu.pipeline_mode<synchronous>, transform_indices = @transform_48, window_bounds = array<i64: 1, 32>}, {pipeline_mode = #tpu.pipeline_mode<synchronous>, transform_indices = @transform_49, window_bounds = array<i64: 32, 128>}, {pipeline_mode = #tpu.pipeline_mode<synchronous>, transform_indices = @transform_50, window_bounds = array<i64: 1, 128>}, {pipeline_mode = #tpu.pipeline_mode<synchronous>, transform_indices = @transform_51, window_bounds = array<i64: 32, 32>}, {pipeline_mode = #tpu.pipeline_mode<synchronous>, transform_indices = @transform_52, window_bounds = array<i64: 64, 32>}, {pipeline_mode = #tpu.pipeline_mode<synchronous>, transform_indices = @transform_53, window_bounds = array<i64: 16, 128>}, {pipeline_mode = #tpu.pipeline_mode<synchronous>, transform_indices = @transform_54, window_bounds = array<i64: 1, 1>}]} {
    %c0 = arith.constant 0 : index
    %c0_0 = arith.constant 0 : index
    %c0_1 = arith.constant 0 : index
    %0 = vector.load %arg8[%c0, %c0_0, %c0_1] : memref<4x1x8xf32, #tpu.memory_space<vmem>>, vector<4x1x8xf32>
    %c0_2 = arith.constant 0 : index
    %c0_3 = arith.constant 0 : index
    %1 = vector.load %arg9[%c0_2, %c0_3] : memref<1x32xf32, #tpu.memory_space<vmem>>, vector<1x32xf32>
    %c0_4 = arith.constant 0 : index
    %c0_5 = arith.constant 0 : index
    %c0_6 = arith.constant 0 : index
    %2 = vector.load %arg10[%c0_4, %c0_5, %c0_6] : memref<4x1x8xf32, #tpu.memory_space<vmem>>, vector<4x1x8xf32>
    %c0_7 = arith.constant 0 : index
    %c0_8 = arith.constant 0 : index
    %c0_9 = arith.constant 0 : index
    %3 = vector.load %arg11[%c0_7, %c0_8, %c0_9] : memref<4x1x8xf32, #tpu.memory_space<vmem>>, vector<4x1x8xf32>
    %c0_10 = arith.constant 0 : index
    %c0_11 = arith.constant 0 : index
    %c0_12 = arith.constant 0 : index
    %4 = vector.load %arg12[%c0_10, %c0_11, %c0_12] : memref<4x32x8xf32, #tpu.memory_space<vmem>>, vector<4x32x8xf32>
    %c0_13 = arith.constant 0 : index
    %c0_14 = arith.constant 0 : index
    %c0_15 = arith.constant 0 : index
    %5 = vector.load %arg13[%c0_13, %c0_14, %c0_15] : memref<4x8x32xf32, #tpu.memory_space<vmem>>, vector<4x8x32xf32>
    %c0_16 = arith.constant 0 : index
    %c0_17 = arith.constant 0 : index
    %c0_18 = arith.constant 0 : index
    %6 = vector.load %arg14[%c0_16, %c0_17, %c0_18] : memref<4x32x8xf32, #tpu.memory_space<vmem>>, vector<4x32x8xf32>
    %c0_19 = arith.constant 0 : index
    %c0_20 = arith.constant 0 : index
    %c0_21 = arith.constant 0 : index
    %7 = vector.load %arg15[%c0_19, %c0_20, %c0_21] : memref<4x32x8xf32, #tpu.memory_space<vmem>>, vector<4x32x8xf32>
    %c0_22 = arith.constant 0 : index
    %c0_23 = arith.constant 0 : index
    %8 = vector.load %arg16[%c0_22, %c0_23] : memref<1x64xf32, #tpu.memory_space<vmem>>, vector<1x64xf32>
    %c0_24 = arith.constant 0 : index
    %c0_25 = arith.constant 0 : index
    %9 = vector.load %arg17[%c0_24, %c0_25] : memref<1x32xf32, #tpu.memory_space<vmem>>, vector<1x32xf32>
    %c0_26 = arith.constant 0 : index
    %c0_27 = arith.constant 0 : index
    %10 = vector.load %arg18[%c0_26, %c0_27] : memref<32x64xf32, #tpu.memory_space<vmem>>, vector<32x64xf32>
    %c0_28 = arith.constant 0 : index
    %c0_29 = arith.constant 0 : index
    %11 = vector.load %arg19[%c0_28, %c0_29] : memref<64x32xf32, #tpu.memory_space<vmem>>, vector<64x32xf32>
    %c0_30 = arith.constant 0 : index
    %c0_31 = arith.constant 0 : index
    %12 = vector.load %arg20[%c0_30, %c0_31] : memref<1x32xf32, #tpu.memory_space<vmem>>, vector<1x32xf32>
    %c0_32 = arith.constant 0 : index
    %c0_33 = arith.constant 0 : index
    %13 = vector.load %arg21[%c0_32, %c0_33] : memref<1x32xf32, #tpu.memory_space<vmem>>, vector<1x32xf32>
    %c0_34 = arith.constant 0 : index
    %c0_35 = arith.constant 0 : index
    %14 = vector.load %arg22[%c0_34, %c0_35] : memref<1x32xf32, #tpu.memory_space<vmem>>, vector<1x32xf32>
    %c0_36 = arith.constant 0 : index
    %c0_37 = arith.constant 0 : index
    %15 = vector.load %arg23[%c0_36, %c0_37] : memref<1x32xf32, #tpu.memory_space<vmem>>, vector<1x32xf32>
    %c0_38 = arith.constant 0 : index
    %c0_39 = arith.constant 0 : index
    %16 = vector.load %arg24[%c0_38, %c0_39] : memref<1x32xf32, #tpu.memory_space<vmem>>, vector<1x32xf32>
    %c0_40 = arith.constant 0 : index
    %c0_41 = arith.constant 0 : index
    %17 = vector.load %arg25[%c0_40, %c0_41] : memref<1x32xf32, #tpu.memory_space<vmem>>, vector<1x32xf32>
    %c0_42 = arith.constant 0 : index
    %c0_43 = arith.constant 0 : index
    %c0_44 = arith.constant 0 : index
    %18 = vector.load %arg26[%c0_42, %c0_43, %c0_44] : memref<4x1x8xf32, #tpu.memory_space<vmem>>, vector<4x1x8xf32>
    %c0_45 = arith.constant 0 : index
    %c0_46 = arith.constant 0 : index
    %19 = vector.load %arg27[%c0_45, %c0_46] : memref<1x32xf32, #tpu.memory_space<vmem>>, vector<1x32xf32>
    %c0_47 = arith.constant 0 : index
    %c0_48 = arith.constant 0 : index
    %c0_49 = arith.constant 0 : index
    %20 = vector.load %arg28[%c0_47, %c0_48, %c0_49] : memref<4x1x8xf32, #tpu.memory_space<vmem>>, vector<4x1x8xf32>
    %c0_50 = arith.constant 0 : index
    %c0_51 = arith.constant 0 : index
    %c0_52 = arith.constant 0 : index
    %21 = vector.load %arg29[%c0_50, %c0_51, %c0_52] : memref<4x1x8xf32, #tpu.memory_space<vmem>>, vector<4x1x8xf32>
    %c0_53 = arith.constant 0 : index
    %c0_54 = arith.constant 0 : index
    %c0_55 = arith.constant 0 : index
    %22 = vector.load %arg30[%c0_53, %c0_54, %c0_55] : memref<4x32x8xf32, #tpu.memory_space<vmem>>, vector<4x32x8xf32>
    %c0_56 = arith.constant 0 : index
    %c0_57 = arith.constant 0 : index
    %c0_58 = arith.constant 0 : index
    %23 = vector.load %arg31[%c0_56, %c0_57, %c0_58] : memref<4x8x32xf32, #tpu.memory_space<vmem>>, vector<4x8x32xf32>
    %c0_59 = arith.constant 0 : index
    %c0_60 = arith.constant 0 : index
    %c0_61 = arith.constant 0 : index
    %24 = vector.load %arg32[%c0_59, %c0_60, %c0_61] : memref<4x32x8xf32, #tpu.memory_space<vmem>>, vector<4x32x8xf32>
    %c0_62 = arith.constant 0 : index
    %c0_63 = arith.constant 0 : index
    %c0_64 = arith.constant 0 : index
    %25 = vector.load %arg33[%c0_62, %c0_63, %c0_64] : memref<4x32x8xf32, #tpu.memory_space<vmem>>, vector<4x32x8xf32>
    %c0_65 = arith.constant 0 : index
    %c0_66 = arith.constant 0 : index
    %c0_67 = arith.constant 0 : index
    %26 = vector.load %arg34[%c0_65, %c0_66, %c0_67] : memref<4x1x8xf32, #tpu.memory_space<vmem>>, vector<4x1x8xf32>
    %c0_68 = arith.constant 0 : index
    %c0_69 = arith.constant 0 : index
    %27 = vector.load %arg35[%c0_68, %c0_69] : memref<1x32xf32, #tpu.memory_space<vmem>>, vector<1x32xf32>
    %c0_70 = arith.constant 0 : index
    %c0_71 = arith.constant 0 : index
    %c0_72 = arith.constant 0 : index
    %28 = vector.load %arg36[%c0_70, %c0_71, %c0_72] : memref<4x1x8xf32, #tpu.memory_space<vmem>>, vector<4x1x8xf32>
    %c0_73 = arith.constant 0 : index
    %c0_74 = arith.constant 0 : index
    %c0_75 = arith.constant 0 : index
    %29 = vector.load %arg37[%c0_73, %c0_74, %c0_75] : memref<4x1x8xf32, #tpu.memory_space<vmem>>, vector<4x1x8xf32>
    %c0_76 = arith.constant 0 : index
    %c0_77 = arith.constant 0 : index
    %c0_78 = arith.constant 0 : index
    %30 = vector.load %arg38[%c0_76, %c0_77, %c0_78] : memref<4x32x8xf32, #tpu.memory_space<vmem>>, vector<4x32x8xf32>
    %c0_79 = arith.constant 0 : index
    %c0_80 = arith.constant 0 : index
    %c0_81 = arith.constant 0 : index
    %31 = vector.load %arg39[%c0_79, %c0_80, %c0_81] : memref<4x8x32xf32, #tpu.memory_space<vmem>>, vector<4x8x32xf32>
    %c0_82 = arith.constant 0 : index
    %c0_83 = arith.constant 0 : index
    %c0_84 = arith.constant 0 : index
    %32 = vector.load %arg40[%c0_82, %c0_83, %c0_84] : memref<4x32x8xf32, #tpu.memory_space<vmem>>, vector<4x32x8xf32>
    %c0_85 = arith.constant 0 : index
    %c0_86 = arith.constant 0 : index
    %c0_87 = arith.constant 0 : index
    %33 = vector.load %arg41[%c0_85, %c0_86, %c0_87] : memref<4x32x8xf32, #tpu.memory_space<vmem>>, vector<4x32x8xf32>
    %c0_88 = arith.constant 0 : index
    %c0_89 = arith.constant 0 : index
    %34 = vector.load %arg42[%c0_88, %c0_89] : memref<1x64xf32, #tpu.memory_space<vmem>>, vector<1x64xf32>
    %c0_90 = arith.constant 0 : index
    %c0_91 = arith.constant 0 : index
    %35 = vector.load %arg43[%c0_90, %c0_91] : memref<1x32xf32, #tpu.memory_space<vmem>>, vector<1x32xf32>
    %c0_92 = arith.constant 0 : index
    %c0_93 = arith.constant 0 : index
    %36 = vector.load %arg44[%c0_92, %c0_93] : memref<32x64xf32, #tpu.memory_space<vmem>>, vector<32x64xf32>
    %c0_94 = arith.constant 0 : index
    %c0_95 = arith.constant 0 : index
    %37 = vector.load %arg45[%c0_94, %c0_95] : memref<64x32xf32, #tpu.memory_space<vmem>>, vector<64x32xf32>
    %c0_96 = arith.constant 0 : index
    %c0_97 = arith.constant 0 : index
    %38 = vector.load %arg46[%c0_96, %c0_97] : memref<1x32xf32, #tpu.memory_space<vmem>>, vector<1x32xf32>
    %c0_98 = arith.constant 0 : index
    %c0_99 = arith.constant 0 : index
    %39 = vector.load %arg47[%c0_98, %c0_99] : memref<1x32xf32, #tpu.memory_space<vmem>>, vector<1x32xf32>
    %c0_100 = arith.constant 0 : index
    %c0_101 = arith.constant 0 : index
    %40 = vector.load %arg48[%c0_100, %c0_101] : memref<1x32xf32, #tpu.memory_space<vmem>>, vector<1x32xf32>
    %c0_102 = arith.constant 0 : index
    %c0_103 = arith.constant 0 : index
    %41 = vector.load %arg49[%c0_102, %c0_103] : memref<1x32xf32, #tpu.memory_space<vmem>>, vector<1x32xf32>
    %c0_104 = arith.constant 0 : index
    %c0_105 = arith.constant 0 : index
    %42 = vector.load %arg50[%c0_104, %c0_105] : memref<32x128xf32, #tpu.memory_space<vmem>>, vector<32x128xf32>
    %c0_106 = arith.constant 0 : index
    %c0_107 = arith.constant 0 : index
    %43 = vector.load %arg51[%c0_106, %c0_107] : memref<1x128xf32, #tpu.memory_space<vmem>>, vector<1x128xf32>
    %c0_108 = arith.constant 0 : index
    %c0_109 = arith.constant 0 : index
    %44 = vector.load %arg52[%c0_108, %c0_109] : memref<32x32xf32, #tpu.memory_space<vmem>>, vector<32x32xf32>
    %c0_110 = arith.constant 0 : index
    %c0_111 = arith.constant 0 : index
    %45 = vector.load %arg53[%c0_110, %c0_111] : memref<64x32xf32, #tpu.memory_space<vmem>>, vector<64x32xf32>
    %c0_112 = arith.constant 0 : index
    %c0_113 = arith.constant 0 : index
    %46 = vector.load %arg1[%c0_112, %c0_113] : memref<16x1xi32, #tpu.memory_space<vmem>>, vector<16x1xi32>
    %c0_114 = arith.constant 0 : index
    %c0_115 = arith.constant 0 : index
    %47 = vector.load %arg2[%c0_114, %c0_115] : memref<16x1xi32, #tpu.memory_space<vmem>>, vector<16x1xi32>
    %c0_116 = arith.constant 0 : index
    %c0_117 = arith.constant 0 : index
    %48 = vector.load %arg3[%c0_116, %c0_117] : memref<16x1xi32, #tpu.memory_space<vmem>>, vector<16x1xi32>
    %c0_118 = arith.constant 0 : index
    %c0_119 = arith.constant 0 : index
    %c0_120 = arith.constant 0 : index
    %49 = vector.load %arg4[%c0_118, %c0_119, %c0_120] : memref<2x8x8xf32, #tpu.memory_space<vmem>>, vector<2x8x8xf32>
    %c0_121 = arith.constant 0 : index
    %c0_122 = arith.constant 0 : index
    %c0_123 = arith.constant 0 : index
    %50 = vector.load %arg5[%c0_121, %c0_122, %c0_123] : memref<2x8x8xf32, #tpu.memory_space<vmem>>, vector<2x8x8xf32>
    %c0_124 = arith.constant 0 : index
    %c0_125 = arith.constant 0 : index
    %c0_126 = arith.constant 0 : index
    %51 = vector.load %arg6[%c0_124, %c0_125, %c0_126] : memref<2x8x8xf32, #tpu.memory_space<vmem>>, vector<2x8x8xf32>
    %c0_127 = arith.constant 0 : index
    %c0_128 = arith.constant 0 : index
    %52 = vector.load %arg7[%c0_127, %c0_128] : memref<16x1xf32, #tpu.memory_space<vmem>>, vector<16x1xf32>
    %53 = tpu.iota {dimensions = array<i32: 1>} : vector<16x64xi32>
    %54 = vector.broadcast %46 : vector<16x1xi32> to vector<16x64xi32>
    %55 = arith.cmpi eq, %53, %54 : vector<16x64xi32>
    %56 = arith.extui %55 : vector<16x64xi1> to vector<16x64xi32>
    %57 = arith.sitofp %56 : vector<16x64xi32> to vector<16x64xf32>
    %cst = arith.constant dense<0.000000e+00> : vector<16x32xf32>
    %58 = tpu.matmul %57, %45, %cst {dimension_numbers = #tpu.dot_dimension_numbers<[1], [0], [0], [1], [0, 0, 1, 1], [], []>} : vector<16x64xf32>, vector<64x32xf32>, vector<16x32xf32> -> vector<16x32xf32>
    %59 = vector.extract_strided_slice %44 {offsets = [0, 0], sizes = [8, 32], strides = [1, 1]} : vector<32x32xf32> to vector<8x32xf32>
    %60 = tpu.concatenate %59, %59 in 0 : vector<8x32xf32>, vector<8x32xf32> -> vector<16x32xf32>
    %61 = arith.addf %58, %60 : vector<16x32xf32>
    %62 = vector.extract_strided_slice %32 {offsets = [0, 0, 0], sizes = [1, 32, 8], strides = [1, 1, 1]} : vector<4x32x8xf32> to vector<1x32x8xf32>
    %63 = vector.shape_cast %62 : vector<1x32x8xf32> to vector<32x8xf32>
    %cst_129 = arith.constant dense<0.000000e+00> : vector<16x8xf32>
    %64 = tpu.matmul %61, %63, %cst_129 {dimension_numbers = #tpu.dot_dimension_numbers<[1], [0], [0], [1], [0, 0, 1, 1], [], []>} : vector<16x32xf32>, vector<32x8xf32>, vector<16x8xf32> -> vector<16x8xf32>
    %65 = vector.extract_strided_slice %28 {offsets = [0, 0, 0], sizes = [1, 1, 8], strides = [1, 1, 1]} : vector<4x1x8xf32> to vector<1x1x8xf32>
    %66 = vector.shape_cast %65 : vector<1x1x8xf32> to vector<1x8xf32>
    %67 = vector.broadcast %66 : vector<1x8xf32> to vector<16x8xf32>
    %68 = arith.addf %64, %67 : vector<16x8xf32>
    %69 = vector.shape_cast %68 : vector<16x8xf32> to vector<2x8x8xf32>
    %70 = vector.extract_strided_slice %30 {offsets = [0, 0, 0], sizes = [1, 32, 8], strides = [1, 1, 1]} : vector<4x32x8xf32> to vector<1x32x8xf32>
    %71 = vector.shape_cast %70 : vector<1x32x8xf32> to vector<32x8xf32>
    %cst_130 = arith.constant dense<0.000000e+00> : vector<16x8xf32>
    %72 = tpu.matmul %61, %71, %cst_130 {dimension_numbers = #tpu.dot_dimension_numbers<[1], [0], [0], [1], [0, 0, 1, 1], [], []>} : vector<16x32xf32>, vector<32x8xf32>, vector<16x8xf32> -> vector<16x8xf32>
    %73 = vector.extract_strided_slice %26 {offsets = [0, 0, 0], sizes = [1, 1, 8], strides = [1, 1, 1]} : vector<4x1x8xf32> to vector<1x1x8xf32>
    %74 = vector.shape_cast %73 : vector<1x1x8xf32> to vector<1x8xf32>
    %75 = vector.broadcast %74 : vector<1x8xf32> to vector<16x8xf32>
    %76 = arith.addf %72, %75 : vector<16x8xf32>
    %77 = vector.shape_cast %76 : vector<16x8xf32> to vector<2x8x8xf32>
    %78 = vector.extract_strided_slice %33 {offsets = [0, 0, 0], sizes = [1, 32, 8], strides = [1, 1, 1]} : vector<4x32x8xf32> to vector<1x32x8xf32>
    %79 = vector.shape_cast %78 : vector<1x32x8xf32> to vector<32x8xf32>
    %cst_131 = arith.constant dense<0.000000e+00> : vector<16x8xf32>
    %80 = tpu.matmul %61, %79, %cst_131 {dimension_numbers = #tpu.dot_dimension_numbers<[1], [0], [0], [1], [0, 0, 1, 1], [], []>} : vector<16x32xf32>, vector<32x8xf32>, vector<16x8xf32> -> vector<16x8xf32>
    %81 = vector.extract_strided_slice %29 {offsets = [0, 0, 0], sizes = [1, 1, 8], strides = [1, 1, 1]} : vector<4x1x8xf32> to vector<1x1x8xf32>
    %82 = vector.shape_cast %81 : vector<1x1x8xf32> to vector<1x8xf32>
    %83 = vector.broadcast %82 : vector<1x8xf32> to vector<16x8xf32>
    %84 = arith.addf %80, %83 : vector<16x8xf32>
    %85 = vector.shape_cast %84 : vector<16x8xf32> to vector<2x8x8xf32>
    "tpu.trace_start"() <{level = 10 : i32, message = "bqd,bkd->bqk"}> : () -> ()
    %cst_132 = arith.constant dense<0.000000e+00> : vector<2x8x8xf32>
    %86 = tpu.matmul %69, %77, %cst_132 {dimension_numbers = #tpu.dot_dimension_numbers<[2], [2], [1], [1], [0, 0, 0, 1, 1, 1], [0], [0]>} : vector<2x8x8xf32>, vector<2x8x8xf32>, vector<2x8x8xf32> -> vector<2x8x8xf32>
    "tpu.trace_stop"() : () -> ()
    %cst_133 = arith.constant 0.353553385 : f32
    %87 = vector.broadcast %cst_133 : f32 to vector<2x8x8xf32>
    %88 = arith.mulf %86, %87 : vector<2x8x8xf32>
    %cst_134 = arith.constant 5.000000e-01 : f32
    %89 = vector.broadcast %cst_134 : f32 to vector<2x8x8xf32>
    %90 = arith.cmpf ogt, %49, %89 : vector<2x8x8xf32>
    %cst_135 = arith.constant -1.000000e+09 : f32
    %91 = vector.broadcast %cst_135 : f32 to vector<2x8x8xf32>
    %92 = arith.select %90, %88, %91 : vector<2x8x8xi1>, vector<2x8x8xf32>
    %cst_136 = arith.constant dense<0xFF800000> : vector<2x8xf32>
    %93 = vector.multi_reduction <maximumf>, %92, %cst_136 [2] : vector<2x8x8xf32> to vector<2x8xf32>
    %94 = vector.shape_cast %93 : vector<2x8xf32> to vector<2x8x1xf32>
    %95 = vector.broadcast %94 : vector<2x8x1xf32> to vector<2x8x8xf32>
    %96 = arith.subf %92, %95 : vector<2x8x8xf32>
    %97 = math.exp %96 : vector<2x8x8xf32>
    %cst_137 = arith.constant dense<0.000000e+00> : vector<2x8xf32>
    %98 = vector.multi_reduction <add>, %97, %cst_137 [2] : vector<2x8x8xf32> to vector<2x8xf32>
    %99 = vector.shape_cast %98 : vector<2x8xf32> to vector<2x8x1xf32>
    %100 = vector.broadcast %99 : vector<2x8x1xf32> to vector<2x8x8xf32>
    %101 = arith.divf %97, %100 : vector<2x8x8xf32>
    "tpu.trace_start"() <{level = 10 : i32, message = "bqk,bkd->bqd"}> : () -> ()
    %cst_138 = arith.constant dense<0.000000e+00> : vector<2x8x8xf32>
    %102 = tpu.matmul %101, %85, %cst_138 {dimension_numbers = #tpu.dot_dimension_numbers<[2], [1], [1], [2], [0, 0, 0, 1, 1, 2], [0], [0]>} : vector<2x8x8xf32>, vector<2x8x8xf32>, vector<2x8x8xf32> -> vector<2x8x8xf32>
    "tpu.trace_stop"() : () -> ()
    %103 = vector.shape_cast %102 : vector<2x8x8xf32> to vector<16x8xf32>
    %104 = vector.extract_strided_slice %31 {offsets = [0, 0, 0], sizes = [1, 8, 32], strides = [1, 1, 1]} : vector<4x8x32xf32> to vector<1x8x32xf32>
    %105 = vector.shape_cast %104 : vector<1x8x32xf32> to vector<8x32xf32>
    %cst_139 = arith.constant dense<0.000000e+00> : vector<16x32xf32>
    %106 = tpu.matmul %103, %105, %cst_139 {dimension_numbers = #tpu.dot_dimension_numbers<[1], [0], [0], [1], [0, 0, 1, 1], [], []>} : vector<16x8xf32>, vector<8x32xf32>, vector<16x32xf32> -> vector<16x32xf32>
    %107 = vector.extract_strided_slice %32 {offsets = [1, 0, 0], sizes = [1, 32, 8], strides = [1, 1, 1]} : vector<4x32x8xf32> to vector<1x32x8xf32>
    %108 = vector.shape_cast %107 : vector<1x32x8xf32> to vector<32x8xf32>
    %cst_140 = arith.constant dense<0.000000e+00> : vector<16x8xf32>
    %109 = tpu.matmul %61, %108, %cst_140 {dimension_numbers = #tpu.dot_dimension_numbers<[1], [0], [0], [1], [0, 0, 1, 1], [], []>} : vector<16x32xf32>, vector<32x8xf32>, vector<16x8xf32> -> vector<16x8xf32>
    %110 = vector.extract_strided_slice %28 {offsets = [1, 0, 0], sizes = [1, 1, 8], strides = [1, 1, 1]} : vector<4x1x8xf32> to vector<1x1x8xf32>
    %111 = vector.shape_cast %110 : vector<1x1x8xf32> to vector<1x8xf32>
    %112 = vector.broadcast %111 : vector<1x8xf32> to vector<16x8xf32>
    %113 = arith.addf %109, %112 : vector<16x8xf32>
    %114 = vector.shape_cast %113 : vector<16x8xf32> to vector<2x8x8xf32>
    %115 = vector.extract_strided_slice %30 {offsets = [1, 0, 0], sizes = [1, 32, 8], strides = [1, 1, 1]} : vector<4x32x8xf32> to vector<1x32x8xf32>
    %116 = vector.shape_cast %115 : vector<1x32x8xf32> to vector<32x8xf32>
    %cst_141 = arith.constant dense<0.000000e+00> : vector<16x8xf32>
    %117 = tpu.matmul %61, %116, %cst_141 {dimension_numbers = #tpu.dot_dimension_numbers<[1], [0], [0], [1], [0, 0, 1, 1], [], []>} : vector<16x32xf32>, vector<32x8xf32>, vector<16x8xf32> -> vector<16x8xf32>
    %118 = vector.extract_strided_slice %26 {offsets = [1, 0, 0], sizes = [1, 1, 8], strides = [1, 1, 1]} : vector<4x1x8xf32> to vector<1x1x8xf32>
    %119 = vector.shape_cast %118 : vector<1x1x8xf32> to vector<1x8xf32>
    %120 = vector.broadcast %119 : vector<1x8xf32> to vector<16x8xf32>
    %121 = arith.addf %117, %120 : vector<16x8xf32>
    %122 = vector.shape_cast %121 : vector<16x8xf32> to vector<2x8x8xf32>
    %123 = vector.extract_strided_slice %33 {offsets = [1, 0, 0], sizes = [1, 32, 8], strides = [1, 1, 1]} : vector<4x32x8xf32> to vector<1x32x8xf32>
    %124 = vector.shape_cast %123 : vector<1x32x8xf32> to vector<32x8xf32>
    %cst_142 = arith.constant dense<0.000000e+00> : vector<16x8xf32>
    %125 = tpu.matmul %61, %124, %cst_142 {dimension_numbers = #tpu.dot_dimension_numbers<[1], [0], [0], [1], [0, 0, 1, 1], [], []>} : vector<16x32xf32>, vector<32x8xf32>, vector<16x8xf32> -> vector<16x8xf32>
    %126 = vector.extract_strided_slice %29 {offsets = [1, 0, 0], sizes = [1, 1, 8], strides = [1, 1, 1]} : vector<4x1x8xf32> to vector<1x1x8xf32>
    %127 = vector.shape_cast %126 : vector<1x1x8xf32> to vector<1x8xf32>
    %128 = vector.broadcast %127 : vector<1x8xf32> to vector<16x8xf32>
    %129 = arith.addf %125, %128 : vector<16x8xf32>
    %130 = vector.shape_cast %129 : vector<16x8xf32> to vector<2x8x8xf32>
    "tpu.trace_start"() <{level = 10 : i32, message = "bqd,bkd->bqk"}> : () -> ()
    %cst_143 = arith.constant dense<0.000000e+00> : vector<2x8x8xf32>
    %131 = tpu.matmul %114, %122, %cst_143 {dimension_numbers = #tpu.dot_dimension_numbers<[2], [2], [1], [1], [0, 0, 0, 1, 1, 1], [0], [0]>} : vector<2x8x8xf32>, vector<2x8x8xf32>, vector<2x8x8xf32> -> vector<2x8x8xf32>
    "tpu.trace_stop"() : () -> ()
    %cst_144 = arith.constant 0.353553385 : f32
    %132 = vector.broadcast %cst_144 : f32 to vector<2x8x8xf32>
    %133 = arith.mulf %131, %132 : vector<2x8x8xf32>
    %cst_145 = arith.constant 5.000000e-01 : f32
    %134 = vector.broadcast %cst_145 : f32 to vector<2x8x8xf32>
    %135 = arith.cmpf ogt, %49, %134 : vector<2x8x8xf32>
    %cst_146 = arith.constant -1.000000e+09 : f32
    %136 = vector.broadcast %cst_146 : f32 to vector<2x8x8xf32>
    %137 = arith.select %135, %133, %136 : vector<2x8x8xi1>, vector<2x8x8xf32>
    %cst_147 = arith.constant dense<0xFF800000> : vector<2x8xf32>
    %138 = vector.multi_reduction <maximumf>, %137, %cst_147 [2] : vector<2x8x8xf32> to vector<2x8xf32>
    %139 = vector.shape_cast %138 : vector<2x8xf32> to vector<2x8x1xf32>
    %140 = vector.broadcast %139 : vector<2x8x1xf32> to vector<2x8x8xf32>
    %141 = arith.subf %137, %140 : vector<2x8x8xf32>
    %142 = math.exp %141 : vector<2x8x8xf32>
    %cst_148 = arith.constant dense<0.000000e+00> : vector<2x8xf32>
    %143 = vector.multi_reduction <add>, %142, %cst_148 [2] : vector<2x8x8xf32> to vector<2x8xf32>
    %144 = vector.shape_cast %143 : vector<2x8xf32> to vector<2x8x1xf32>
    %145 = vector.broadcast %144 : vector<2x8x1xf32> to vector<2x8x8xf32>
    %146 = arith.divf %142, %145 : vector<2x8x8xf32>
    "tpu.trace_start"() <{level = 10 : i32, message = "bqk,bkd->bqd"}> : () -> ()
    %cst_149 = arith.constant dense<0.000000e+00> : vector<2x8x8xf32>
    %147 = tpu.matmul %146, %130, %cst_149 {dimension_numbers = #tpu.dot_dimension_numbers<[2], [1], [1], [2], [0, 0, 0, 1, 1, 2], [0], [0]>} : vector<2x8x8xf32>, vector<2x8x8xf32>, vector<2x8x8xf32> -> vector<2x8x8xf32>
    "tpu.trace_stop"() : () -> ()
    %148 = vector.shape_cast %147 : vector<2x8x8xf32> to vector<16x8xf32>
    %149 = vector.extract_strided_slice %31 {offsets = [1, 0, 0], sizes = [1, 8, 32], strides = [1, 1, 1]} : vector<4x8x32xf32> to vector<1x8x32xf32>
    %150 = vector.shape_cast %149 : vector<1x8x32xf32> to vector<8x32xf32>
    %cst_150 = arith.constant dense<0.000000e+00> : vector<16x32xf32>
    %151 = tpu.matmul %148, %150, %cst_150 {dimension_numbers = #tpu.dot_dimension_numbers<[1], [0], [0], [1], [0, 0, 1, 1], [], []>} : vector<16x8xf32>, vector<8x32xf32>, vector<16x32xf32> -> vector<16x32xf32>
    %152 = arith.addf %106, %151 : vector<16x32xf32>
    %153 = vector.extract_strided_slice %32 {offsets = [2, 0, 0], sizes = [1, 32, 8], strides = [1, 1, 1]} : vector<4x32x8xf32> to vector<1x32x8xf32>
    %154 = vector.shape_cast %153 : vector<1x32x8xf32> to vector<32x8xf32>
    %cst_151 = arith.constant dense<0.000000e+00> : vector<16x8xf32>
    %155 = tpu.matmul %61, %154, %cst_151 {dimension_numbers = #tpu.dot_dimension_numbers<[1], [0], [0], [1], [0, 0, 1, 1], [], []>} : vector<16x32xf32>, vector<32x8xf32>, vector<16x8xf32> -> vector<16x8xf32>
    %156 = vector.extract_strided_slice %28 {offsets = [2, 0, 0], sizes = [1, 1, 8], strides = [1, 1, 1]} : vector<4x1x8xf32> to vector<1x1x8xf32>
    %157 = vector.shape_cast %156 : vector<1x1x8xf32> to vector<1x8xf32>
    %158 = vector.broadcast %157 : vector<1x8xf32> to vector<16x8xf32>
    %159 = arith.addf %155, %158 : vector<16x8xf32>
    %160 = vector.shape_cast %159 : vector<16x8xf32> to vector<2x8x8xf32>
    %161 = vector.extract_strided_slice %30 {offsets = [2, 0, 0], sizes = [1, 32, 8], strides = [1, 1, 1]} : vector<4x32x8xf32> to vector<1x32x8xf32>
    %162 = vector.shape_cast %161 : vector<1x32x8xf32> to vector<32x8xf32>
    %cst_152 = arith.constant dense<0.000000e+00> : vector<16x8xf32>
    %163 = tpu.matmul %61, %162, %cst_152 {dimension_numbers = #tpu.dot_dimension_numbers<[1], [0], [0], [1], [0, 0, 1, 1], [], []>} : vector<16x32xf32>, vector<32x8xf32>, vector<16x8xf32> -> vector<16x8xf32>
    %164 = vector.extract_strided_slice %26 {offsets = [2, 0, 0], sizes = [1, 1, 8], strides = [1, 1, 1]} : vector<4x1x8xf32> to vector<1x1x8xf32>
    %165 = vector.shape_cast %164 : vector<1x1x8xf32> to vector<1x8xf32>
    %166 = vector.broadcast %165 : vector<1x8xf32> to vector<16x8xf32>
    %167 = arith.addf %163, %166 : vector<16x8xf32>
    %168 = vector.shape_cast %167 : vector<16x8xf32> to vector<2x8x8xf32>
    %169 = vector.extract_strided_slice %33 {offsets = [2, 0, 0], sizes = [1, 32, 8], strides = [1, 1, 1]} : vector<4x32x8xf32> to vector<1x32x8xf32>
    %170 = vector.shape_cast %169 : vector<1x32x8xf32> to vector<32x8xf32>
    %cst_153 = arith.constant dense<0.000000e+00> : vector<16x8xf32>
    %171 = tpu.matmul %61, %170, %cst_153 {dimension_numbers = #tpu.dot_dimension_numbers<[1], [0], [0], [1], [0, 0, 1, 1], [], []>} : vector<16x32xf32>, vector<32x8xf32>, vector<16x8xf32> -> vector<16x8xf32>
    %172 = vector.extract_strided_slice %29 {offsets = [2, 0, 0], sizes = [1, 1, 8], strides = [1, 1, 1]} : vector<4x1x8xf32> to vector<1x1x8xf32>
    %173 = vector.shape_cast %172 : vector<1x1x8xf32> to vector<1x8xf32>
    %174 = vector.broadcast %173 : vector<1x8xf32> to vector<16x8xf32>
    %175 = arith.addf %171, %174 : vector<16x8xf32>
    %176 = vector.shape_cast %175 : vector<16x8xf32> to vector<2x8x8xf32>
    "tpu.trace_start"() <{level = 10 : i32, message = "bqd,bkd->bqk"}> : () -> ()
    %cst_154 = arith.constant dense<0.000000e+00> : vector<2x8x8xf32>
    %177 = tpu.matmul %160, %168, %cst_154 {dimension_numbers = #tpu.dot_dimension_numbers<[2], [2], [1], [1], [0, 0, 0, 1, 1, 1], [0], [0]>} : vector<2x8x8xf32>, vector<2x8x8xf32>, vector<2x8x8xf32> -> vector<2x8x8xf32>
    "tpu.trace_stop"() : () -> ()
    %cst_155 = arith.constant 0.353553385 : f32
    %178 = vector.broadcast %cst_155 : f32 to vector<2x8x8xf32>
    %179 = arith.mulf %177, %178 : vector<2x8x8xf32>
    %cst_156 = arith.constant 5.000000e-01 : f32
    %180 = vector.broadcast %cst_156 : f32 to vector<2x8x8xf32>
    %181 = arith.cmpf ogt, %49, %180 : vector<2x8x8xf32>
    %cst_157 = arith.constant -1.000000e+09 : f32
    %182 = vector.broadcast %cst_157 : f32 to vector<2x8x8xf32>
    %183 = arith.select %181, %179, %182 : vector<2x8x8xi1>, vector<2x8x8xf32>
    %cst_158 = arith.constant dense<0xFF800000> : vector<2x8xf32>
    %184 = vector.multi_reduction <maximumf>, %183, %cst_158 [2] : vector<2x8x8xf32> to vector<2x8xf32>
    %185 = vector.shape_cast %184 : vector<2x8xf32> to vector<2x8x1xf32>
    %186 = vector.broadcast %185 : vector<2x8x1xf32> to vector<2x8x8xf32>
    %187 = arith.subf %183, %186 : vector<2x8x8xf32>
    %188 = math.exp %187 : vector<2x8x8xf32>
    %cst_159 = arith.constant dense<0.000000e+00> : vector<2x8xf32>
    %189 = vector.multi_reduction <add>, %188, %cst_159 [2] : vector<2x8x8xf32> to vector<2x8xf32>
    %190 = vector.shape_cast %189 : vector<2x8xf32> to vector<2x8x1xf32>
    %191 = vector.broadcast %190 : vector<2x8x1xf32> to vector<2x8x8xf32>
    %192 = arith.divf %188, %191 : vector<2x8x8xf32>
    "tpu.trace_start"() <{level = 10 : i32, message = "bqk,bkd->bqd"}> : () -> ()
    %cst_160 = arith.constant dense<0.000000e+00> : vector<2x8x8xf32>
    %193 = tpu.matmul %192, %176, %cst_160 {dimension_numbers = #tpu.dot_dimension_numbers<[2], [1], [1], [2], [0, 0, 0, 1, 1, 2], [0], [0]>} : vector<2x8x8xf32>, vector<2x8x8xf32>, vector<2x8x8xf32> -> vector<2x8x8xf32>
    "tpu.trace_stop"() : () -> ()
    %194 = vector.shape_cast %193 : vector<2x8x8xf32> to vector<16x8xf32>
    %195 = vector.extract_strided_slice %31 {offsets = [2, 0, 0], sizes = [1, 8, 32], strides = [1, 1, 1]} : vector<4x8x32xf32> to vector<1x8x32xf32>
    %196 = vector.shape_cast %195 : vector<1x8x32xf32> to vector<8x32xf32>
    %cst_161 = arith.constant dense<0.000000e+00> : vector<16x32xf32>
    %197 = tpu.matmul %194, %196, %cst_161 {dimension_numbers = #tpu.dot_dimension_numbers<[1], [0], [0], [1], [0, 0, 1, 1], [], []>} : vector<16x8xf32>, vector<8x32xf32>, vector<16x32xf32> -> vector<16x32xf32>
    %198 = arith.addf %152, %197 : vector<16x32xf32>
    %199 = vector.extract_strided_slice %32 {offsets = [3, 0, 0], sizes = [1, 32, 8], strides = [1, 1, 1]} : vector<4x32x8xf32> to vector<1x32x8xf32>
    %200 = vector.shape_cast %199 : vector<1x32x8xf32> to vector<32x8xf32>
    %cst_162 = arith.constant dense<0.000000e+00> : vector<16x8xf32>
    %201 = tpu.matmul %61, %200, %cst_162 {dimension_numbers = #tpu.dot_dimension_numbers<[1], [0], [0], [1], [0, 0, 1, 1], [], []>} : vector<16x32xf32>, vector<32x8xf32>, vector<16x8xf32> -> vector<16x8xf32>
    %202 = vector.extract_strided_slice %28 {offsets = [3, 0, 0], sizes = [1, 1, 8], strides = [1, 1, 1]} : vector<4x1x8xf32> to vector<1x1x8xf32>
    %203 = vector.shape_cast %202 : vector<1x1x8xf32> to vector<1x8xf32>
    %204 = vector.broadcast %203 : vector<1x8xf32> to vector<16x8xf32>
    %205 = arith.addf %201, %204 : vector<16x8xf32>
    %206 = vector.shape_cast %205 : vector<16x8xf32> to vector<2x8x8xf32>
    %207 = vector.extract_strided_slice %30 {offsets = [3, 0, 0], sizes = [1, 32, 8], strides = [1, 1, 1]} : vector<4x32x8xf32> to vector<1x32x8xf32>
    %208 = vector.shape_cast %207 : vector<1x32x8xf32> to vector<32x8xf32>
    %cst_163 = arith.constant dense<0.000000e+00> : vector<16x8xf32>
    %209 = tpu.matmul %61, %208, %cst_163 {dimension_numbers = #tpu.dot_dimension_numbers<[1], [0], [0], [1], [0, 0, 1, 1], [], []>} : vector<16x32xf32>, vector<32x8xf32>, vector<16x8xf32> -> vector<16x8xf32>
    %210 = vector.extract_strided_slice %26 {offsets = [3, 0, 0], sizes = [1, 1, 8], strides = [1, 1, 1]} : vector<4x1x8xf32> to vector<1x1x8xf32>
    %211 = vector.shape_cast %210 : vector<1x1x8xf32> to vector<1x8xf32>
    %212 = vector.broadcast %211 : vector<1x8xf32> to vector<16x8xf32>
    %213 = arith.addf %209, %212 : vector<16x8xf32>
    %214 = vector.shape_cast %213 : vector<16x8xf32> to vector<2x8x8xf32>
    %215 = vector.extract_strided_slice %33 {offsets = [3, 0, 0], sizes = [1, 32, 8], strides = [1, 1, 1]} : vector<4x32x8xf32> to vector<1x32x8xf32>
    %216 = vector.shape_cast %215 : vector<1x32x8xf32> to vector<32x8xf32>
    %cst_164 = arith.constant dense<0.000000e+00> : vector<16x8xf32>
    %217 = tpu.matmul %61, %216, %cst_164 {dimension_numbers = #tpu.dot_dimension_numbers<[1], [0], [0], [1], [0, 0, 1, 1], [], []>} : vector<16x32xf32>, vector<32x8xf32>, vector<16x8xf32> -> vector<16x8xf32>
    %218 = vector.extract_strided_slice %29 {offsets = [3, 0, 0], sizes = [1, 1, 8], strides = [1, 1, 1]} : vector<4x1x8xf32> to vector<1x1x8xf32>
    %219 = vector.shape_cast %218 : vector<1x1x8xf32> to vector<1x8xf32>
    %220 = vector.broadcast %219 : vector<1x8xf32> to vector<16x8xf32>
    %221 = arith.addf %217, %220 : vector<16x8xf32>
    %222 = vector.shape_cast %221 : vector<16x8xf32> to vector<2x8x8xf32>
    "tpu.trace_start"() <{level = 10 : i32, message = "bqd,bkd->bqk"}> : () -> ()
    %cst_165 = arith.constant dense<0.000000e+00> : vector<2x8x8xf32>
    %223 = tpu.matmul %206, %214, %cst_165 {dimension_numbers = #tpu.dot_dimension_numbers<[2], [2], [1], [1], [0, 0, 0, 1, 1, 1], [0], [0]>} : vector<2x8x8xf32>, vector<2x8x8xf32>, vector<2x8x8xf32> -> vector<2x8x8xf32>
    "tpu.trace_stop"() : () -> ()
    %cst_166 = arith.constant 0.353553385 : f32
    %224 = vector.broadcast %cst_166 : f32 to vector<2x8x8xf32>
    %225 = arith.mulf %223, %224 : vector<2x8x8xf32>
    %cst_167 = arith.constant 5.000000e-01 : f32
    %226 = vector.broadcast %cst_167 : f32 to vector<2x8x8xf32>
    %227 = arith.cmpf ogt, %49, %226 : vector<2x8x8xf32>
    %cst_168 = arith.constant -1.000000e+09 : f32
    %228 = vector.broadcast %cst_168 : f32 to vector<2x8x8xf32>
    %229 = arith.select %227, %225, %228 : vector<2x8x8xi1>, vector<2x8x8xf32>
    %cst_169 = arith.constant dense<0xFF800000> : vector<2x8xf32>
    %230 = vector.multi_reduction <maximumf>, %229, %cst_169 [2] : vector<2x8x8xf32> to vector<2x8xf32>
    %231 = vector.shape_cast %230 : vector<2x8xf32> to vector<2x8x1xf32>
    %232 = vector.broadcast %231 : vector<2x8x1xf32> to vector<2x8x8xf32>
    %233 = arith.subf %229, %232 : vector<2x8x8xf32>
    %234 = math.exp %233 : vector<2x8x8xf32>
    %cst_170 = arith.constant dense<0.000000e+00> : vector<2x8xf32>
    %235 = vector.multi_reduction <add>, %234, %cst_170 [2] : vector<2x8x8xf32> to vector<2x8xf32>
    %236 = vector.shape_cast %235 : vector<2x8xf32> to vector<2x8x1xf32>
    %237 = vector.broadcast %236 : vector<2x8x1xf32> to vector<2x8x8xf32>
    %238 = arith.divf %234, %237 : vector<2x8x8xf32>
    "tpu.trace_start"() <{level = 10 : i32, message = "bqk,bkd->bqd"}> : () -> ()
    %cst_171 = arith.constant dense<0.000000e+00> : vector<2x8x8xf32>
    %239 = tpu.matmul %238, %222, %cst_171 {dimension_numbers = #tpu.dot_dimension_numbers<[2], [1], [1], [2], [0, 0, 0, 1, 1, 2], [0], [0]>} : vector<2x8x8xf32>, vector<2x8x8xf32>, vector<2x8x8xf32> -> vector<2x8x8xf32>
    "tpu.trace_stop"() : () -> ()
    %240 = vector.shape_cast %239 : vector<2x8x8xf32> to vector<16x8xf32>
    %241 = vector.extract_strided_slice %31 {offsets = [3, 0, 0], sizes = [1, 8, 32], strides = [1, 1, 1]} : vector<4x8x32xf32> to vector<1x8x32xf32>
    %242 = vector.shape_cast %241 : vector<1x8x32xf32> to vector<8x32xf32>
    %cst_172 = arith.constant dense<0.000000e+00> : vector<16x32xf32>
    %243 = tpu.matmul %240, %242, %cst_172 {dimension_numbers = #tpu.dot_dimension_numbers<[1], [0], [0], [1], [0, 0, 1, 1], [], []>} : vector<16x8xf32>, vector<8x32xf32>, vector<16x32xf32> -> vector<16x32xf32>
    %244 = arith.addf %198, %243 : vector<16x32xf32>
    %245 = vector.broadcast %27 : vector<1x32xf32> to vector<16x32xf32>
    %246 = arith.addf %244, %245 : vector<16x32xf32>
    %247 = arith.addf %61, %246 : vector<16x32xf32>
    %cst_173 = arith.constant dense<0.000000e+00> : vector<16xf32>
    %248 = vector.multi_reduction <add>, %247, %cst_173 [1] : vector<16x32xf32> to vector<16xf32>
    %249 = vector.shape_cast %248 : vector<16xf32> to vector<16x1xf32>
    %cst_174 = arith.constant 3.200000e+01 : f32
    %250 = vector.broadcast %cst_174 : f32 to vector<16x1xf32>
    %251 = arith.divf %249, %250 : vector<16x1xf32>
    %252 = vector.broadcast %251 : vector<16x1xf32> to vector<16x32xf32>
    %253 = arith.subf %247, %252 : vector<16x32xf32>
    %254 = arith.mulf %253, %253 : vector<16x32xf32>
    %cst_175 = arith.constant dense<0.000000e+00> : vector<16xf32>
    %255 = vector.multi_reduction <add>, %254, %cst_175 [1] : vector<16x32xf32> to vector<16xf32>
    %256 = vector.shape_cast %255 : vector<16xf32> to vector<16x1xf32>
    %cst_176 = arith.constant 3.200000e+01 : f32
    %257 = vector.broadcast %cst_176 : f32 to vector<16x1xf32>
    %258 = arith.divf %256, %257 : vector<16x1xf32>
    %259 = vector.broadcast %251 : vector<16x1xf32> to vector<16x32xf32>
    %260 = arith.subf %247, %259 : vector<16x32xf32>
    %cst_177 = arith.constant 9.99999974E-6 : f32
    %261 = vector.broadcast %cst_177 : f32 to vector<16x1xf32>
    %262 = arith.addf %258, %261 : vector<16x1xf32>
    %263 = math.rsqrt %262 : vector<16x1xf32>
    %264 = vector.broadcast %263 : vector<16x1xf32> to vector<16x32xf32>
    %265 = arith.mulf %260, %264 : vector<16x32xf32>
    %266 = vector.broadcast %38 : vector<1x32xf32> to vector<16x32xf32>
    %267 = arith.mulf %265, %266 : vector<16x32xf32>
    %268 = vector.broadcast %39 : vector<1x32xf32> to vector<16x32xf32>
    %269 = arith.addf %267, %268 : vector<16x32xf32>
    %cst_178 = arith.constant dense<0.000000e+00> : vector<16x64xf32>
    %270 = tpu.matmul %269, %36, %cst_178 {dimension_numbers = #tpu.dot_dimension_numbers<[1], [0], [0], [1], [0, 0, 1, 1], [], []>} : vector<16x32xf32>, vector<32x64xf32>, vector<16x64xf32> -> vector<16x64xf32>
    %271 = vector.broadcast %34 : vector<1x64xf32> to vector<16x64xf32>
    %272 = arith.addf %270, %271 : vector<16x64xf32>
    %cst_179 = arith.constant 0.000000e+00 : f32
    %273 = vector.broadcast %cst_179 : f32 to vector<16x64xf32>
    %274 = arith.maximumf %272, %273 : vector<16x64xf32>
    %cst_180 = arith.constant dense<0.000000e+00> : vector<16x32xf32>
    %275 = tpu.matmul %274, %37, %cst_180 {dimension_numbers = #tpu.dot_dimension_numbers<[1], [0], [0], [1], [0, 0, 1, 1], [], []>} : vector<16x64xf32>, vector<64x32xf32>, vector<16x32xf32> -> vector<16x32xf32>
    %276 = vector.broadcast %35 : vector<1x32xf32> to vector<16x32xf32>
    %277 = arith.addf %275, %276 : vector<16x32xf32>
    %278 = arith.addf %269, %277 : vector<16x32xf32>
    %cst_181 = arith.constant dense<0.000000e+00> : vector<16xf32>
    %279 = vector.multi_reduction <add>, %278, %cst_181 [1] : vector<16x32xf32> to vector<16xf32>
    %280 = vector.shape_cast %279 : vector<16xf32> to vector<16x1xf32>
    %cst_182 = arith.constant 3.200000e+01 : f32
    %281 = vector.broadcast %cst_182 : f32 to vector<16x1xf32>
    %282 = arith.divf %280, %281 : vector<16x1xf32>
    %283 = vector.broadcast %282 : vector<16x1xf32> to vector<16x32xf32>
    %284 = arith.subf %278, %283 : vector<16x32xf32>
    %285 = arith.mulf %284, %284 : vector<16x32xf32>
    %cst_183 = arith.constant dense<0.000000e+00> : vector<16xf32>
    %286 = vector.multi_reduction <add>, %285, %cst_183 [1] : vector<16x32xf32> to vector<16xf32>
    %287 = vector.shape_cast %286 : vector<16xf32> to vector<16x1xf32>
    %cst_184 = arith.constant 3.200000e+01 : f32
    %288 = vector.broadcast %cst_184 : f32 to vector<16x1xf32>
    %289 = arith.divf %287, %288 : vector<16x1xf32>
    %290 = vector.broadcast %282 : vector<16x1xf32> to vector<16x32xf32>
    %291 = arith.subf %278, %290 : vector<16x32xf32>
    %cst_185 = arith.constant 9.99999974E-6 : f32
    %292 = vector.broadcast %cst_185 : f32 to vector<16x1xf32>
    %293 = arith.addf %289, %292 : vector<16x1xf32>
    %294 = math.rsqrt %293 : vector<16x1xf32>
    %295 = vector.broadcast %294 : vector<16x1xf32> to vector<16x32xf32>
    %296 = arith.mulf %291, %295 : vector<16x32xf32>
    %297 = vector.broadcast %40 : vector<1x32xf32> to vector<16x32xf32>
    %298 = arith.mulf %296, %297 : vector<16x32xf32>
    %299 = vector.broadcast %41 : vector<1x32xf32> to vector<16x32xf32>
    %300 = arith.addf %298, %299 : vector<16x32xf32>
    %301 = tpu.iota {dimensions = array<i32: 1>} : vector<16x64xi32>
    %302 = vector.broadcast %47 : vector<16x1xi32> to vector<16x64xi32>
    %303 = arith.cmpi eq, %301, %302 : vector<16x64xi32>
    %304 = arith.extui %303 : vector<16x64xi1> to vector<16x64xi32>
    %305 = arith.sitofp %304 : vector<16x64xi32> to vector<16x64xf32>
    %cst_186 = arith.constant dense<0.000000e+00> : vector<16x32xf32>
    %306 = tpu.matmul %305, %45, %cst_186 {dimension_numbers = #tpu.dot_dimension_numbers<[1], [0], [0], [1], [0, 0, 1, 1], [], []>} : vector<16x64xf32>, vector<64x32xf32>, vector<16x32xf32> -> vector<16x32xf32>
    %307 = vector.extract_strided_slice %44 {offsets = [0, 0], sizes = [8, 32], strides = [1, 1]} : vector<32x32xf32> to vector<8x32xf32>
    %308 = tpu.concatenate %307, %307 in 0 : vector<8x32xf32>, vector<8x32xf32> -> vector<16x32xf32>
    %309 = arith.addf %306, %308 : vector<16x32xf32>
    %310 = vector.extract_strided_slice %24 {offsets = [0, 0, 0], sizes = [1, 32, 8], strides = [1, 1, 1]} : vector<4x32x8xf32> to vector<1x32x8xf32>
    %311 = vector.shape_cast %310 : vector<1x32x8xf32> to vector<32x8xf32>
    %cst_187 = arith.constant dense<0.000000e+00> : vector<16x8xf32>
    %312 = tpu.matmul %309, %311, %cst_187 {dimension_numbers = #tpu.dot_dimension_numbers<[1], [0], [0], [1], [0, 0, 1, 1], [], []>} : vector<16x32xf32>, vector<32x8xf32>, vector<16x8xf32> -> vector<16x8xf32>
    %313 = vector.extract_strided_slice %20 {offsets = [0, 0, 0], sizes = [1, 1, 8], strides = [1, 1, 1]} : vector<4x1x8xf32> to vector<1x1x8xf32>
    %314 = vector.shape_cast %313 : vector<1x1x8xf32> to vector<1x8xf32>
    %315 = vector.broadcast %314 : vector<1x8xf32> to vector<16x8xf32>
    %316 = arith.addf %312, %315 : vector<16x8xf32>
    %317 = vector.shape_cast %316 : vector<16x8xf32> to vector<2x8x8xf32>
    %318 = vector.extract_strided_slice %22 {offsets = [0, 0, 0], sizes = [1, 32, 8], strides = [1, 1, 1]} : vector<4x32x8xf32> to vector<1x32x8xf32>
    %319 = vector.shape_cast %318 : vector<1x32x8xf32> to vector<32x8xf32>
    %cst_188 = arith.constant dense<0.000000e+00> : vector<16x8xf32>
    %320 = tpu.matmul %309, %319, %cst_188 {dimension_numbers = #tpu.dot_dimension_numbers<[1], [0], [0], [1], [0, 0, 1, 1], [], []>} : vector<16x32xf32>, vector<32x8xf32>, vector<16x8xf32> -> vector<16x8xf32>
    %321 = vector.extract_strided_slice %18 {offsets = [0, 0, 0], sizes = [1, 1, 8], strides = [1, 1, 1]} : vector<4x1x8xf32> to vector<1x1x8xf32>
    %322 = vector.shape_cast %321 : vector<1x1x8xf32> to vector<1x8xf32>
    %323 = vector.broadcast %322 : vector<1x8xf32> to vector<16x8xf32>
    %324 = arith.addf %320, %323 : vector<16x8xf32>
    %325 = vector.shape_cast %324 : vector<16x8xf32> to vector<2x8x8xf32>
    %326 = vector.extract_strided_slice %25 {offsets = [0, 0, 0], sizes = [1, 32, 8], strides = [1, 1, 1]} : vector<4x32x8xf32> to vector<1x32x8xf32>
    %327 = vector.shape_cast %326 : vector<1x32x8xf32> to vector<32x8xf32>
    %cst_189 = arith.constant dense<0.000000e+00> : vector<16x8xf32>
    %328 = tpu.matmul %309, %327, %cst_189 {dimension_numbers = #tpu.dot_dimension_numbers<[1], [0], [0], [1], [0, 0, 1, 1], [], []>} : vector<16x32xf32>, vector<32x8xf32>, vector<16x8xf32> -> vector<16x8xf32>
    %329 = vector.extract_strided_slice %21 {offsets = [0, 0, 0], sizes = [1, 1, 8], strides = [1, 1, 1]} : vector<4x1x8xf32> to vector<1x1x8xf32>
    %330 = vector.shape_cast %329 : vector<1x1x8xf32> to vector<1x8xf32>
    %331 = vector.broadcast %330 : vector<1x8xf32> to vector<16x8xf32>
    %332 = arith.addf %328, %331 : vector<16x8xf32>
    %333 = vector.shape_cast %332 : vector<16x8xf32> to vector<2x8x8xf32>
    "tpu.trace_start"() <{level = 10 : i32, message = "bqd,bkd->bqk"}> : () -> ()
    %cst_190 = arith.constant dense<0.000000e+00> : vector<2x8x8xf32>
    %334 = tpu.matmul %317, %325, %cst_190 {dimension_numbers = #tpu.dot_dimension_numbers<[2], [2], [1], [1], [0, 0, 0, 1, 1, 1], [0], [0]>} : vector<2x8x8xf32>, vector<2x8x8xf32>, vector<2x8x8xf32> -> vector<2x8x8xf32>
    "tpu.trace_stop"() : () -> ()
    %cst_191 = arith.constant 0.353553385 : f32
    %335 = vector.broadcast %cst_191 : f32 to vector<2x8x8xf32>
    %336 = arith.mulf %334, %335 : vector<2x8x8xf32>
    %cst_192 = arith.constant 5.000000e-01 : f32
    %337 = vector.broadcast %cst_192 : f32 to vector<2x8x8xf32>
    %338 = arith.cmpf ogt, %50, %337 : vector<2x8x8xf32>
    %cst_193 = arith.constant -1.000000e+09 : f32
    %339 = vector.broadcast %cst_193 : f32 to vector<2x8x8xf32>
    %340 = arith.select %338, %336, %339 : vector<2x8x8xi1>, vector<2x8x8xf32>
    %cst_194 = arith.constant dense<0xFF800000> : vector<2x8xf32>
    %341 = vector.multi_reduction <maximumf>, %340, %cst_194 [2] : vector<2x8x8xf32> to vector<2x8xf32>
    %342 = vector.shape_cast %341 : vector<2x8xf32> to vector<2x8x1xf32>
    %343 = vector.broadcast %342 : vector<2x8x1xf32> to vector<2x8x8xf32>
    %344 = arith.subf %340, %343 : vector<2x8x8xf32>
    %345 = math.exp %344 : vector<2x8x8xf32>
    %cst_195 = arith.constant dense<0.000000e+00> : vector<2x8xf32>
    %346 = vector.multi_reduction <add>, %345, %cst_195 [2] : vector<2x8x8xf32> to vector<2x8xf32>
    %347 = vector.shape_cast %346 : vector<2x8xf32> to vector<2x8x1xf32>
    %348 = vector.broadcast %347 : vector<2x8x1xf32> to vector<2x8x8xf32>
    %349 = arith.divf %345, %348 : vector<2x8x8xf32>
    "tpu.trace_start"() <{level = 10 : i32, message = "bqk,bkd->bqd"}> : () -> ()
    %cst_196 = arith.constant dense<0.000000e+00> : vector<2x8x8xf32>
    %350 = tpu.matmul %349, %333, %cst_196 {dimension_numbers = #tpu.dot_dimension_numbers<[2], [1], [1], [2], [0, 0, 0, 1, 1, 2], [0], [0]>} : vector<2x8x8xf32>, vector<2x8x8xf32>, vector<2x8x8xf32> -> vector<2x8x8xf32>
    "tpu.trace_stop"() : () -> ()
    %351 = vector.shape_cast %350 : vector<2x8x8xf32> to vector<16x8xf32>
    %352 = vector.extract_strided_slice %23 {offsets = [0, 0, 0], sizes = [1, 8, 32], strides = [1, 1, 1]} : vector<4x8x32xf32> to vector<1x8x32xf32>
    %353 = vector.shape_cast %352 : vector<1x8x32xf32> to vector<8x32xf32>
    %cst_197 = arith.constant dense<0.000000e+00> : vector<16x32xf32>
    %354 = tpu.matmul %351, %353, %cst_197 {dimension_numbers = #tpu.dot_dimension_numbers<[1], [0], [0], [1], [0, 0, 1, 1], [], []>} : vector<16x8xf32>, vector<8x32xf32>, vector<16x32xf32> -> vector<16x32xf32>
    %355 = vector.extract_strided_slice %24 {offsets = [1, 0, 0], sizes = [1, 32, 8], strides = [1, 1, 1]} : vector<4x32x8xf32> to vector<1x32x8xf32>
    %356 = vector.shape_cast %355 : vector<1x32x8xf32> to vector<32x8xf32>
    %cst_198 = arith.constant dense<0.000000e+00> : vector<16x8xf32>
    %357 = tpu.matmul %309, %356, %cst_198 {dimension_numbers = #tpu.dot_dimension_numbers<[1], [0], [0], [1], [0, 0, 1, 1], [], []>} : vector<16x32xf32>, vector<32x8xf32>, vector<16x8xf32> -> vector<16x8xf32>
    %358 = vector.extract_strided_slice %20 {offsets = [1, 0, 0], sizes = [1, 1, 8], strides = [1, 1, 1]} : vector<4x1x8xf32> to vector<1x1x8xf32>
    %359 = vector.shape_cast %358 : vector<1x1x8xf32> to vector<1x8xf32>
    %360 = vector.broadcast %359 : vector<1x8xf32> to vector<16x8xf32>
    %361 = arith.addf %357, %360 : vector<16x8xf32>
    %362 = vector.shape_cast %361 : vector<16x8xf32> to vector<2x8x8xf32>
    %363 = vector.extract_strided_slice %22 {offsets = [1, 0, 0], sizes = [1, 32, 8], strides = [1, 1, 1]} : vector<4x32x8xf32> to vector<1x32x8xf32>
    %364 = vector.shape_cast %363 : vector<1x32x8xf32> to vector<32x8xf32>
    %cst_199 = arith.constant dense<0.000000e+00> : vector<16x8xf32>
    %365 = tpu.matmul %309, %364, %cst_199 {dimension_numbers = #tpu.dot_dimension_numbers<[1], [0], [0], [1], [0, 0, 1, 1], [], []>} : vector<16x32xf32>, vector<32x8xf32>, vector<16x8xf32> -> vector<16x8xf32>
    %366 = vector.extract_strided_slice %18 {offsets = [1, 0, 0], sizes = [1, 1, 8], strides = [1, 1, 1]} : vector<4x1x8xf32> to vector<1x1x8xf32>
    %367 = vector.shape_cast %366 : vector<1x1x8xf32> to vector<1x8xf32>
    %368 = vector.broadcast %367 : vector<1x8xf32> to vector<16x8xf32>
    %369 = arith.addf %365, %368 : vector<16x8xf32>
    %370 = vector.shape_cast %369 : vector<16x8xf32> to vector<2x8x8xf32>
    %371 = vector.extract_strided_slice %25 {offsets = [1, 0, 0], sizes = [1, 32, 8], strides = [1, 1, 1]} : vector<4x32x8xf32> to vector<1x32x8xf32>
    %372 = vector.shape_cast %371 : vector<1x32x8xf32> to vector<32x8xf32>
    %cst_200 = arith.constant dense<0.000000e+00> : vector<16x8xf32>
    %373 = tpu.matmul %309, %372, %cst_200 {dimension_numbers = #tpu.dot_dimension_numbers<[1], [0], [0], [1], [0, 0, 1, 1], [], []>} : vector<16x32xf32>, vector<32x8xf32>, vector<16x8xf32> -> vector<16x8xf32>
    %374 = vector.extract_strided_slice %21 {offsets = [1, 0, 0], sizes = [1, 1, 8], strides = [1, 1, 1]} : vector<4x1x8xf32> to vector<1x1x8xf32>
    %375 = vector.shape_cast %374 : vector<1x1x8xf32> to vector<1x8xf32>
    %376 = vector.broadcast %375 : vector<1x8xf32> to vector<16x8xf32>
    %377 = arith.addf %373, %376 : vector<16x8xf32>
    %378 = vector.shape_cast %377 : vector<16x8xf32> to vector<2x8x8xf32>
    "tpu.trace_start"() <{level = 10 : i32, message = "bqd,bkd->bqk"}> : () -> ()
    %cst_201 = arith.constant dense<0.000000e+00> : vector<2x8x8xf32>
    %379 = tpu.matmul %362, %370, %cst_201 {dimension_numbers = #tpu.dot_dimension_numbers<[2], [2], [1], [1], [0, 0, 0, 1, 1, 1], [0], [0]>} : vector<2x8x8xf32>, vector<2x8x8xf32>, vector<2x8x8xf32> -> vector<2x8x8xf32>
    "tpu.trace_stop"() : () -> ()
    %cst_202 = arith.constant 0.353553385 : f32
    %380 = vector.broadcast %cst_202 : f32 to vector<2x8x8xf32>
    %381 = arith.mulf %379, %380 : vector<2x8x8xf32>
    %cst_203 = arith.constant 5.000000e-01 : f32
    %382 = vector.broadcast %cst_203 : f32 to vector<2x8x8xf32>
    %383 = arith.cmpf ogt, %50, %382 : vector<2x8x8xf32>
    %cst_204 = arith.constant -1.000000e+09 : f32
    %384 = vector.broadcast %cst_204 : f32 to vector<2x8x8xf32>
    %385 = arith.select %383, %381, %384 : vector<2x8x8xi1>, vector<2x8x8xf32>
    %cst_205 = arith.constant dense<0xFF800000> : vector<2x8xf32>
    %386 = vector.multi_reduction <maximumf>, %385, %cst_205 [2] : vector<2x8x8xf32> to vector<2x8xf32>
    %387 = vector.shape_cast %386 : vector<2x8xf32> to vector<2x8x1xf32>
    %388 = vector.broadcast %387 : vector<2x8x1xf32> to vector<2x8x8xf32>
    %389 = arith.subf %385, %388 : vector<2x8x8xf32>
    %390 = math.exp %389 : vector<2x8x8xf32>
    %cst_206 = arith.constant dense<0.000000e+00> : vector<2x8xf32>
    %391 = vector.multi_reduction <add>, %390, %cst_206 [2] : vector<2x8x8xf32> to vector<2x8xf32>
    %392 = vector.shape_cast %391 : vector<2x8xf32> to vector<2x8x1xf32>
    %393 = vector.broadcast %392 : vector<2x8x1xf32> to vector<2x8x8xf32>
    %394 = arith.divf %390, %393 : vector<2x8x8xf32>
    "tpu.trace_start"() <{level = 10 : i32, message = "bqk,bkd->bqd"}> : () -> ()
    %cst_207 = arith.constant dense<0.000000e+00> : vector<2x8x8xf32>
    %395 = tpu.matmul %394, %378, %cst_207 {dimension_numbers = #tpu.dot_dimension_numbers<[2], [1], [1], [2], [0, 0, 0, 1, 1, 2], [0], [0]>} : vector<2x8x8xf32>, vector<2x8x8xf32>, vector<2x8x8xf32> -> vector<2x8x8xf32>
    "tpu.trace_stop"() : () -> ()
    %396 = vector.shape_cast %395 : vector<2x8x8xf32> to vector<16x8xf32>
    %397 = vector.extract_strided_slice %23 {offsets = [1, 0, 0], sizes = [1, 8, 32], strides = [1, 1, 1]} : vector<4x8x32xf32> to vector<1x8x32xf32>
    %398 = vector.shape_cast %397 : vector<1x8x32xf32> to vector<8x32xf32>
    %cst_208 = arith.constant dense<0.000000e+00> : vector<16x32xf32>
    %399 = tpu.matmul %396, %398, %cst_208 {dimension_numbers = #tpu.dot_dimension_numbers<[1], [0], [0], [1], [0, 0, 1, 1], [], []>} : vector<16x8xf32>, vector<8x32xf32>, vector<16x32xf32> -> vector<16x32xf32>
    %400 = arith.addf %354, %399 : vector<16x32xf32>
    %401 = vector.extract_strided_slice %24 {offsets = [2, 0, 0], sizes = [1, 32, 8], strides = [1, 1, 1]} : vector<4x32x8xf32> to vector<1x32x8xf32>
    %402 = vector.shape_cast %401 : vector<1x32x8xf32> to vector<32x8xf32>
    %cst_209 = arith.constant dense<0.000000e+00> : vector<16x8xf32>
    %403 = tpu.matmul %309, %402, %cst_209 {dimension_numbers = #tpu.dot_dimension_numbers<[1], [0], [0], [1], [0, 0, 1, 1], [], []>} : vector<16x32xf32>, vector<32x8xf32>, vector<16x8xf32> -> vector<16x8xf32>
    %404 = vector.extract_strided_slice %20 {offsets = [2, 0, 0], sizes = [1, 1, 8], strides = [1, 1, 1]} : vector<4x1x8xf32> to vector<1x1x8xf32>
    %405 = vector.shape_cast %404 : vector<1x1x8xf32> to vector<1x8xf32>
    %406 = vector.broadcast %405 : vector<1x8xf32> to vector<16x8xf32>
    %407 = arith.addf %403, %406 : vector<16x8xf32>
    %408 = vector.shape_cast %407 : vector<16x8xf32> to vector<2x8x8xf32>
    %409 = vector.extract_strided_slice %22 {offsets = [2, 0, 0], sizes = [1, 32, 8], strides = [1, 1, 1]} : vector<4x32x8xf32> to vector<1x32x8xf32>
    %410 = vector.shape_cast %409 : vector<1x32x8xf32> to vector<32x8xf32>
    %cst_210 = arith.constant dense<0.000000e+00> : vector<16x8xf32>
    %411 = tpu.matmul %309, %410, %cst_210 {dimension_numbers = #tpu.dot_dimension_numbers<[1], [0], [0], [1], [0, 0, 1, 1], [], []>} : vector<16x32xf32>, vector<32x8xf32>, vector<16x8xf32> -> vector<16x8xf32>
    %412 = vector.extract_strided_slice %18 {offsets = [2, 0, 0], sizes = [1, 1, 8], strides = [1, 1, 1]} : vector<4x1x8xf32> to vector<1x1x8xf32>
    %413 = vector.shape_cast %412 : vector<1x1x8xf32> to vector<1x8xf32>
    %414 = vector.broadcast %413 : vector<1x8xf32> to vector<16x8xf32>
    %415 = arith.addf %411, %414 : vector<16x8xf32>
    %416 = vector.shape_cast %415 : vector<16x8xf32> to vector<2x8x8xf32>
    %417 = vector.extract_strided_slice %25 {offsets = [2, 0, 0], sizes = [1, 32, 8], strides = [1, 1, 1]} : vector<4x32x8xf32> to vector<1x32x8xf32>
    %418 = vector.shape_cast %417 : vector<1x32x8xf32> to vector<32x8xf32>
    %cst_211 = arith.constant dense<0.000000e+00> : vector<16x8xf32>
    %419 = tpu.matmul %309, %418, %cst_211 {dimension_numbers = #tpu.dot_dimension_numbers<[1], [0], [0], [1], [0, 0, 1, 1], [], []>} : vector<16x32xf32>, vector<32x8xf32>, vector<16x8xf32> -> vector<16x8xf32>
    %420 = vector.extract_strided_slice %21 {offsets = [2, 0, 0], sizes = [1, 1, 8], strides = [1, 1, 1]} : vector<4x1x8xf32> to vector<1x1x8xf32>
    %421 = vector.shape_cast %420 : vector<1x1x8xf32> to vector<1x8xf32>
    %422 = vector.broadcast %421 : vector<1x8xf32> to vector<16x8xf32>
    %423 = arith.addf %419, %422 : vector<16x8xf32>
    %424 = vector.shape_cast %423 : vector<16x8xf32> to vector<2x8x8xf32>
    "tpu.trace_start"() <{level = 10 : i32, message = "bqd,bkd->bqk"}> : () -> ()
    %cst_212 = arith.constant dense<0.000000e+00> : vector<2x8x8xf32>
    %425 = tpu.matmul %408, %416, %cst_212 {dimension_numbers = #tpu.dot_dimension_numbers<[2], [2], [1], [1], [0, 0, 0, 1, 1, 1], [0], [0]>} : vector<2x8x8xf32>, vector<2x8x8xf32>, vector<2x8x8xf32> -> vector<2x8x8xf32>
    "tpu.trace_stop"() : () -> ()
    %cst_213 = arith.constant 0.353553385 : f32
    %426 = vector.broadcast %cst_213 : f32 to vector<2x8x8xf32>
    %427 = arith.mulf %425, %426 : vector<2x8x8xf32>
    %cst_214 = arith.constant 5.000000e-01 : f32
    %428 = vector.broadcast %cst_214 : f32 to vector<2x8x8xf32>
    %429 = arith.cmpf ogt, %50, %428 : vector<2x8x8xf32>
    %cst_215 = arith.constant -1.000000e+09 : f32
    %430 = vector.broadcast %cst_215 : f32 to vector<2x8x8xf32>
    %431 = arith.select %429, %427, %430 : vector<2x8x8xi1>, vector<2x8x8xf32>
    %cst_216 = arith.constant dense<0xFF800000> : vector<2x8xf32>
    %432 = vector.multi_reduction <maximumf>, %431, %cst_216 [2] : vector<2x8x8xf32> to vector<2x8xf32>
    %433 = vector.shape_cast %432 : vector<2x8xf32> to vector<2x8x1xf32>
    %434 = vector.broadcast %433 : vector<2x8x1xf32> to vector<2x8x8xf32>
    %435 = arith.subf %431, %434 : vector<2x8x8xf32>
    %436 = math.exp %435 : vector<2x8x8xf32>
    %cst_217 = arith.constant dense<0.000000e+00> : vector<2x8xf32>
    %437 = vector.multi_reduction <add>, %436, %cst_217 [2] : vector<2x8x8xf32> to vector<2x8xf32>
    %438 = vector.shape_cast %437 : vector<2x8xf32> to vector<2x8x1xf32>
    %439 = vector.broadcast %438 : vector<2x8x1xf32> to vector<2x8x8xf32>
    %440 = arith.divf %436, %439 : vector<2x8x8xf32>
    "tpu.trace_start"() <{level = 10 : i32, message = "bqk,bkd->bqd"}> : () -> ()
    %cst_218 = arith.constant dense<0.000000e+00> : vector<2x8x8xf32>
    %441 = tpu.matmul %440, %424, %cst_218 {dimension_numbers = #tpu.dot_dimension_numbers<[2], [1], [1], [2], [0, 0, 0, 1, 1, 2], [0], [0]>} : vector<2x8x8xf32>, vector<2x8x8xf32>, vector<2x8x8xf32> -> vector<2x8x8xf32>
    "tpu.trace_stop"() : () -> ()
    %442 = vector.shape_cast %441 : vector<2x8x8xf32> to vector<16x8xf32>
    %443 = vector.extract_strided_slice %23 {offsets = [2, 0, 0], sizes = [1, 8, 32], strides = [1, 1, 1]} : vector<4x8x32xf32> to vector<1x8x32xf32>
    %444 = vector.shape_cast %443 : vector<1x8x32xf32> to vector<8x32xf32>
    %cst_219 = arith.constant dense<0.000000e+00> : vector<16x32xf32>
    %445 = tpu.matmul %442, %444, %cst_219 {dimension_numbers = #tpu.dot_dimension_numbers<[1], [0], [0], [1], [0, 0, 1, 1], [], []>} : vector<16x8xf32>, vector<8x32xf32>, vector<16x32xf32> -> vector<16x32xf32>
    %446 = arith.addf %400, %445 : vector<16x32xf32>
    %447 = vector.extract_strided_slice %24 {offsets = [3, 0, 0], sizes = [1, 32, 8], strides = [1, 1, 1]} : vector<4x32x8xf32> to vector<1x32x8xf32>
    %448 = vector.shape_cast %447 : vector<1x32x8xf32> to vector<32x8xf32>
    %cst_220 = arith.constant dense<0.000000e+00> : vector<16x8xf32>
    %449 = tpu.matmul %309, %448, %cst_220 {dimension_numbers = #tpu.dot_dimension_numbers<[1], [0], [0], [1], [0, 0, 1, 1], [], []>} : vector<16x32xf32>, vector<32x8xf32>, vector<16x8xf32> -> vector<16x8xf32>
    %450 = vector.extract_strided_slice %20 {offsets = [3, 0, 0], sizes = [1, 1, 8], strides = [1, 1, 1]} : vector<4x1x8xf32> to vector<1x1x8xf32>
    %451 = vector.shape_cast %450 : vector<1x1x8xf32> to vector<1x8xf32>
    %452 = vector.broadcast %451 : vector<1x8xf32> to vector<16x8xf32>
    %453 = arith.addf %449, %452 : vector<16x8xf32>
    %454 = vector.shape_cast %453 : vector<16x8xf32> to vector<2x8x8xf32>
    %455 = vector.extract_strided_slice %22 {offsets = [3, 0, 0], sizes = [1, 32, 8], strides = [1, 1, 1]} : vector<4x32x8xf32> to vector<1x32x8xf32>
    %456 = vector.shape_cast %455 : vector<1x32x8xf32> to vector<32x8xf32>
    %cst_221 = arith.constant dense<0.000000e+00> : vector<16x8xf32>
    %457 = tpu.matmul %309, %456, %cst_221 {dimension_numbers = #tpu.dot_dimension_numbers<[1], [0], [0], [1], [0, 0, 1, 1], [], []>} : vector<16x32xf32>, vector<32x8xf32>, vector<16x8xf32> -> vector<16x8xf32>
    %458 = vector.extract_strided_slice %18 {offsets = [3, 0, 0], sizes = [1, 1, 8], strides = [1, 1, 1]} : vector<4x1x8xf32> to vector<1x1x8xf32>
    %459 = vector.shape_cast %458 : vector<1x1x8xf32> to vector<1x8xf32>
    %460 = vector.broadcast %459 : vector<1x8xf32> to vector<16x8xf32>
    %461 = arith.addf %457, %460 : vector<16x8xf32>
    %462 = vector.shape_cast %461 : vector<16x8xf32> to vector<2x8x8xf32>
    %463 = vector.extract_strided_slice %25 {offsets = [3, 0, 0], sizes = [1, 32, 8], strides = [1, 1, 1]} : vector<4x32x8xf32> to vector<1x32x8xf32>
    %464 = vector.shape_cast %463 : vector<1x32x8xf32> to vector<32x8xf32>
    %cst_222 = arith.constant dense<0.000000e+00> : vector<16x8xf32>
    %465 = tpu.matmul %309, %464, %cst_222 {dimension_numbers = #tpu.dot_dimension_numbers<[1], [0], [0], [1], [0, 0, 1, 1], [], []>} : vector<16x32xf32>, vector<32x8xf32>, vector<16x8xf32> -> vector<16x8xf32>
    %466 = vector.extract_strided_slice %21 {offsets = [3, 0, 0], sizes = [1, 1, 8], strides = [1, 1, 1]} : vector<4x1x8xf32> to vector<1x1x8xf32>
    %467 = vector.shape_cast %466 : vector<1x1x8xf32> to vector<1x8xf32>
    %468 = vector.broadcast %467 : vector<1x8xf32> to vector<16x8xf32>
    %469 = arith.addf %465, %468 : vector<16x8xf32>
    %470 = vector.shape_cast %469 : vector<16x8xf32> to vector<2x8x8xf32>
    "tpu.trace_start"() <{level = 10 : i32, message = "bqd,bkd->bqk"}> : () -> ()
    %cst_223 = arith.constant dense<0.000000e+00> : vector<2x8x8xf32>
    %471 = tpu.matmul %454, %462, %cst_223 {dimension_numbers = #tpu.dot_dimension_numbers<[2], [2], [1], [1], [0, 0, 0, 1, 1, 1], [0], [0]>} : vector<2x8x8xf32>, vector<2x8x8xf32>, vector<2x8x8xf32> -> vector<2x8x8xf32>
    "tpu.trace_stop"() : () -> ()
    %cst_224 = arith.constant 0.353553385 : f32
    %472 = vector.broadcast %cst_224 : f32 to vector<2x8x8xf32>
    %473 = arith.mulf %471, %472 : vector<2x8x8xf32>
    %cst_225 = arith.constant 5.000000e-01 : f32
    %474 = vector.broadcast %cst_225 : f32 to vector<2x8x8xf32>
    %475 = arith.cmpf ogt, %50, %474 : vector<2x8x8xf32>
    %cst_226 = arith.constant -1.000000e+09 : f32
    %476 = vector.broadcast %cst_226 : f32 to vector<2x8x8xf32>
    %477 = arith.select %475, %473, %476 : vector<2x8x8xi1>, vector<2x8x8xf32>
    %cst_227 = arith.constant dense<0xFF800000> : vector<2x8xf32>
    %478 = vector.multi_reduction <maximumf>, %477, %cst_227 [2] : vector<2x8x8xf32> to vector<2x8xf32>
    %479 = vector.shape_cast %478 : vector<2x8xf32> to vector<2x8x1xf32>
    %480 = vector.broadcast %479 : vector<2x8x1xf32> to vector<2x8x8xf32>
    %481 = arith.subf %477, %480 : vector<2x8x8xf32>
    %482 = math.exp %481 : vector<2x8x8xf32>
    %cst_228 = arith.constant dense<0.000000e+00> : vector<2x8xf32>
    %483 = vector.multi_reduction <add>, %482, %cst_228 [2] : vector<2x8x8xf32> to vector<2x8xf32>
    %484 = vector.shape_cast %483 : vector<2x8xf32> to vector<2x8x1xf32>
    %485 = vector.broadcast %484 : vector<2x8x1xf32> to vector<2x8x8xf32>
    %486 = arith.divf %482, %485 : vector<2x8x8xf32>
    "tpu.trace_start"() <{level = 10 : i32, message = "bqk,bkd->bqd"}> : () -> ()
    %cst_229 = arith.constant dense<0.000000e+00> : vector<2x8x8xf32>
    %487 = tpu.matmul %486, %470, %cst_229 {dimension_numbers = #tpu.dot_dimension_numbers<[2], [1], [1], [2], [0, 0, 0, 1, 1, 2], [0], [0]>} : vector<2x8x8xf32>, vector<2x8x8xf32>, vector<2x8x8xf32> -> vector<2x8x8xf32>
    "tpu.trace_stop"() : () -> ()
    %488 = vector.shape_cast %487 : vector<2x8x8xf32> to vector<16x8xf32>
    %489 = vector.extract_strided_slice %23 {offsets = [3, 0, 0], sizes = [1, 8, 32], strides = [1, 1, 1]} : vector<4x8x32xf32> to vector<1x8x32xf32>
    %490 = vector.shape_cast %489 : vector<1x8x32xf32> to vector<8x32xf32>
    %cst_230 = arith.constant dense<0.000000e+00> : vector<16x32xf32>
    %491 = tpu.matmul %488, %490, %cst_230 {dimension_numbers = #tpu.dot_dimension_numbers<[1], [0], [0], [1], [0, 0, 1, 1], [], []>} : vector<16x8xf32>, vector<8x32xf32>, vector<16x32xf32> -> vector<16x32xf32>
    %492 = arith.addf %446, %491 : vector<16x32xf32>
    %493 = vector.broadcast %19 : vector<1x32xf32> to vector<16x32xf32>
    %494 = arith.addf %492, %493 : vector<16x32xf32>
    %495 = arith.addf %309, %494 : vector<16x32xf32>
    %cst_231 = arith.constant dense<0.000000e+00> : vector<16xf32>
    %496 = vector.multi_reduction <add>, %495, %cst_231 [1] : vector<16x32xf32> to vector<16xf32>
    %497 = vector.shape_cast %496 : vector<16xf32> to vector<16x1xf32>
    %cst_232 = arith.constant 3.200000e+01 : f32
    %498 = vector.broadcast %cst_232 : f32 to vector<16x1xf32>
    %499 = arith.divf %497, %498 : vector<16x1xf32>
    %500 = vector.broadcast %499 : vector<16x1xf32> to vector<16x32xf32>
    %501 = arith.subf %495, %500 : vector<16x32xf32>
    %502 = arith.mulf %501, %501 : vector<16x32xf32>
    %cst_233 = arith.constant dense<0.000000e+00> : vector<16xf32>
    %503 = vector.multi_reduction <add>, %502, %cst_233 [1] : vector<16x32xf32> to vector<16xf32>
    %504 = vector.shape_cast %503 : vector<16xf32> to vector<16x1xf32>
    %cst_234 = arith.constant 3.200000e+01 : f32
    %505 = vector.broadcast %cst_234 : f32 to vector<16x1xf32>
    %506 = arith.divf %504, %505 : vector<16x1xf32>
    %507 = vector.broadcast %499 : vector<16x1xf32> to vector<16x32xf32>
    %508 = arith.subf %495, %507 : vector<16x32xf32>
    %cst_235 = arith.constant 9.99999974E-6 : f32
    %509 = vector.broadcast %cst_235 : f32 to vector<16x1xf32>
    %510 = arith.addf %506, %509 : vector<16x1xf32>
    %511 = math.rsqrt %510 : vector<16x1xf32>
    %512 = vector.broadcast %511 : vector<16x1xf32> to vector<16x32xf32>
    %513 = arith.mulf %508, %512 : vector<16x32xf32>
    %514 = vector.broadcast %12 : vector<1x32xf32> to vector<16x32xf32>
    %515 = arith.mulf %513, %514 : vector<16x32xf32>
    %516 = vector.broadcast %13 : vector<1x32xf32> to vector<16x32xf32>
    %517 = arith.addf %515, %516 : vector<16x32xf32>
    %518 = vector.extract_strided_slice %6 {offsets = [0, 0, 0], sizes = [1, 32, 8], strides = [1, 1, 1]} : vector<4x32x8xf32> to vector<1x32x8xf32>
    %519 = vector.shape_cast %518 : vector<1x32x8xf32> to vector<32x8xf32>
    %cst_236 = arith.constant dense<0.000000e+00> : vector<16x8xf32>
    %520 = tpu.matmul %517, %519, %cst_236 {dimension_numbers = #tpu.dot_dimension_numbers<[1], [0], [0], [1], [0, 0, 1, 1], [], []>} : vector<16x32xf32>, vector<32x8xf32>, vector<16x8xf32> -> vector<16x8xf32>
    %521 = vector.extract_strided_slice %2 {offsets = [0, 0, 0], sizes = [1, 1, 8], strides = [1, 1, 1]} : vector<4x1x8xf32> to vector<1x1x8xf32>
    %522 = vector.shape_cast %521 : vector<1x1x8xf32> to vector<1x8xf32>
    %523 = vector.broadcast %522 : vector<1x8xf32> to vector<16x8xf32>
    %524 = arith.addf %520, %523 : vector<16x8xf32>
    %525 = vector.shape_cast %524 : vector<16x8xf32> to vector<2x8x8xf32>
    %526 = vector.extract_strided_slice %4 {offsets = [0, 0, 0], sizes = [1, 32, 8], strides = [1, 1, 1]} : vector<4x32x8xf32> to vector<1x32x8xf32>
    %527 = vector.shape_cast %526 : vector<1x32x8xf32> to vector<32x8xf32>
    %cst_237 = arith.constant dense<0.000000e+00> : vector<16x8xf32>
    %528 = tpu.matmul %300, %527, %cst_237 {dimension_numbers = #tpu.dot_dimension_numbers<[1], [0], [0], [1], [0, 0, 1, 1], [], []>} : vector<16x32xf32>, vector<32x8xf32>, vector<16x8xf32> -> vector<16x8xf32>
    %529 = vector.extract_strided_slice %0 {offsets = [0, 0, 0], sizes = [1, 1, 8], strides = [1, 1, 1]} : vector<4x1x8xf32> to vector<1x1x8xf32>
    %530 = vector.shape_cast %529 : vector<1x1x8xf32> to vector<1x8xf32>
    %531 = vector.broadcast %530 : vector<1x8xf32> to vector<16x8xf32>
    %532 = arith.addf %528, %531 : vector<16x8xf32>
    %533 = vector.shape_cast %532 : vector<16x8xf32> to vector<2x8x8xf32>
    %534 = vector.extract_strided_slice %7 {offsets = [0, 0, 0], sizes = [1, 32, 8], strides = [1, 1, 1]} : vector<4x32x8xf32> to vector<1x32x8xf32>
    %535 = vector.shape_cast %534 : vector<1x32x8xf32> to vector<32x8xf32>
    %cst_238 = arith.constant dense<0.000000e+00> : vector<16x8xf32>
    %536 = tpu.matmul %300, %535, %cst_238 {dimension_numbers = #tpu.dot_dimension_numbers<[1], [0], [0], [1], [0, 0, 1, 1], [], []>} : vector<16x32xf32>, vector<32x8xf32>, vector<16x8xf32> -> vector<16x8xf32>
    %537 = vector.extract_strided_slice %3 {offsets = [0, 0, 0], sizes = [1, 1, 8], strides = [1, 1, 1]} : vector<4x1x8xf32> to vector<1x1x8xf32>
    %538 = vector.shape_cast %537 : vector<1x1x8xf32> to vector<1x8xf32>
    %539 = vector.broadcast %538 : vector<1x8xf32> to vector<16x8xf32>
    %540 = arith.addf %536, %539 : vector<16x8xf32>
    %541 = vector.shape_cast %540 : vector<16x8xf32> to vector<2x8x8xf32>
    "tpu.trace_start"() <{level = 10 : i32, message = "bqd,bkd->bqk"}> : () -> ()
    %cst_239 = arith.constant dense<0.000000e+00> : vector<2x8x8xf32>
    %542 = tpu.matmul %525, %533, %cst_239 {dimension_numbers = #tpu.dot_dimension_numbers<[2], [2], [1], [1], [0, 0, 0, 1, 1, 1], [0], [0]>} : vector<2x8x8xf32>, vector<2x8x8xf32>, vector<2x8x8xf32> -> vector<2x8x8xf32>
    "tpu.trace_stop"() : () -> ()
    %cst_240 = arith.constant 0.353553385 : f32
    %543 = vector.broadcast %cst_240 : f32 to vector<2x8x8xf32>
    %544 = arith.mulf %542, %543 : vector<2x8x8xf32>
    %cst_241 = arith.constant 5.000000e-01 : f32
    %545 = vector.broadcast %cst_241 : f32 to vector<2x8x8xf32>
    %546 = arith.cmpf ogt, %51, %545 : vector<2x8x8xf32>
    %cst_242 = arith.constant -1.000000e+09 : f32
    %547 = vector.broadcast %cst_242 : f32 to vector<2x8x8xf32>
    %548 = arith.select %546, %544, %547 : vector<2x8x8xi1>, vector<2x8x8xf32>
    %cst_243 = arith.constant dense<0xFF800000> : vector<2x8xf32>
    %549 = vector.multi_reduction <maximumf>, %548, %cst_243 [2] : vector<2x8x8xf32> to vector<2x8xf32>
    %550 = vector.shape_cast %549 : vector<2x8xf32> to vector<2x8x1xf32>
    %551 = vector.broadcast %550 : vector<2x8x1xf32> to vector<2x8x8xf32>
    %552 = arith.subf %548, %551 : vector<2x8x8xf32>
    %553 = math.exp %552 : vector<2x8x8xf32>
    %cst_244 = arith.constant dense<0.000000e+00> : vector<2x8xf32>
    %554 = vector.multi_reduction <add>, %553, %cst_244 [2] : vector<2x8x8xf32> to vector<2x8xf32>
    %555 = vector.shape_cast %554 : vector<2x8xf32> to vector<2x8x1xf32>
    %556 = vector.broadcast %555 : vector<2x8x1xf32> to vector<2x8x8xf32>
    %557 = arith.divf %553, %556 : vector<2x8x8xf32>
    "tpu.trace_start"() <{level = 10 : i32, message = "bqk,bkd->bqd"}> : () -> ()
    %cst_245 = arith.constant dense<0.000000e+00> : vector<2x8x8xf32>
    %558 = tpu.matmul %557, %541, %cst_245 {dimension_numbers = #tpu.dot_dimension_numbers<[2], [1], [1], [2], [0, 0, 0, 1, 1, 2], [0], [0]>} : vector<2x8x8xf32>, vector<2x8x8xf32>, vector<2x8x8xf32> -> vector<2x8x8xf32>
    "tpu.trace_stop"() : () -> ()
    %559 = vector.shape_cast %558 : vector<2x8x8xf32> to vector<16x8xf32>
    %560 = vector.extract_strided_slice %5 {offsets = [0, 0, 0], sizes = [1, 8, 32], strides = [1, 1, 1]} : vector<4x8x32xf32> to vector<1x8x32xf32>
    %561 = vector.shape_cast %560 : vector<1x8x32xf32> to vector<8x32xf32>
    %cst_246 = arith.constant dense<0.000000e+00> : vector<16x32xf32>
    %562 = tpu.matmul %559, %561, %cst_246 {dimension_numbers = #tpu.dot_dimension_numbers<[1], [0], [0], [1], [0, 0, 1, 1], [], []>} : vector<16x8xf32>, vector<8x32xf32>, vector<16x32xf32> -> vector<16x32xf32>
    %563 = vector.extract_strided_slice %6 {offsets = [1, 0, 0], sizes = [1, 32, 8], strides = [1, 1, 1]} : vector<4x32x8xf32> to vector<1x32x8xf32>
    %564 = vector.shape_cast %563 : vector<1x32x8xf32> to vector<32x8xf32>
    %cst_247 = arith.constant dense<0.000000e+00> : vector<16x8xf32>
    %565 = tpu.matmul %517, %564, %cst_247 {dimension_numbers = #tpu.dot_dimension_numbers<[1], [0], [0], [1], [0, 0, 1, 1], [], []>} : vector<16x32xf32>, vector<32x8xf32>, vector<16x8xf32> -> vector<16x8xf32>
    %566 = vector.extract_strided_slice %2 {offsets = [1, 0, 0], sizes = [1, 1, 8], strides = [1, 1, 1]} : vector<4x1x8xf32> to vector<1x1x8xf32>
    %567 = vector.shape_cast %566 : vector<1x1x8xf32> to vector<1x8xf32>
    %568 = vector.broadcast %567 : vector<1x8xf32> to vector<16x8xf32>
    %569 = arith.addf %565, %568 : vector<16x8xf32>
    %570 = vector.shape_cast %569 : vector<16x8xf32> to vector<2x8x8xf32>
    %571 = vector.extract_strided_slice %4 {offsets = [1, 0, 0], sizes = [1, 32, 8], strides = [1, 1, 1]} : vector<4x32x8xf32> to vector<1x32x8xf32>
    %572 = vector.shape_cast %571 : vector<1x32x8xf32> to vector<32x8xf32>
    %cst_248 = arith.constant dense<0.000000e+00> : vector<16x8xf32>
    %573 = tpu.matmul %300, %572, %cst_248 {dimension_numbers = #tpu.dot_dimension_numbers<[1], [0], [0], [1], [0, 0, 1, 1], [], []>} : vector<16x32xf32>, vector<32x8xf32>, vector<16x8xf32> -> vector<16x8xf32>
    %574 = vector.extract_strided_slice %0 {offsets = [1, 0, 0], sizes = [1, 1, 8], strides = [1, 1, 1]} : vector<4x1x8xf32> to vector<1x1x8xf32>
    %575 = vector.shape_cast %574 : vector<1x1x8xf32> to vector<1x8xf32>
    %576 = vector.broadcast %575 : vector<1x8xf32> to vector<16x8xf32>
    %577 = arith.addf %573, %576 : vector<16x8xf32>
    %578 = vector.shape_cast %577 : vector<16x8xf32> to vector<2x8x8xf32>
    %579 = vector.extract_strided_slice %7 {offsets = [1, 0, 0], sizes = [1, 32, 8], strides = [1, 1, 1]} : vector<4x32x8xf32> to vector<1x32x8xf32>
    %580 = vector.shape_cast %579 : vector<1x32x8xf32> to vector<32x8xf32>
    %cst_249 = arith.constant dense<0.000000e+00> : vector<16x8xf32>
    %581 = tpu.matmul %300, %580, %cst_249 {dimension_numbers = #tpu.dot_dimension_numbers<[1], [0], [0], [1], [0, 0, 1, 1], [], []>} : vector<16x32xf32>, vector<32x8xf32>, vector<16x8xf32> -> vector<16x8xf32>
    %582 = vector.extract_strided_slice %3 {offsets = [1, 0, 0], sizes = [1, 1, 8], strides = [1, 1, 1]} : vector<4x1x8xf32> to vector<1x1x8xf32>
    %583 = vector.shape_cast %582 : vector<1x1x8xf32> to vector<1x8xf32>
    %584 = vector.broadcast %583 : vector<1x8xf32> to vector<16x8xf32>
    %585 = arith.addf %581, %584 : vector<16x8xf32>
    %586 = vector.shape_cast %585 : vector<16x8xf32> to vector<2x8x8xf32>
    "tpu.trace_start"() <{level = 10 : i32, message = "bqd,bkd->bqk"}> : () -> ()
    %cst_250 = arith.constant dense<0.000000e+00> : vector<2x8x8xf32>
    %587 = tpu.matmul %570, %578, %cst_250 {dimension_numbers = #tpu.dot_dimension_numbers<[2], [2], [1], [1], [0, 0, 0, 1, 1, 1], [0], [0]>} : vector<2x8x8xf32>, vector<2x8x8xf32>, vector<2x8x8xf32> -> vector<2x8x8xf32>
    "tpu.trace_stop"() : () -> ()
    %cst_251 = arith.constant 0.353553385 : f32
    %588 = vector.broadcast %cst_251 : f32 to vector<2x8x8xf32>
    %589 = arith.mulf %587, %588 : vector<2x8x8xf32>
    %cst_252 = arith.constant 5.000000e-01 : f32
    %590 = vector.broadcast %cst_252 : f32 to vector<2x8x8xf32>
    %591 = arith.cmpf ogt, %51, %590 : vector<2x8x8xf32>
    %cst_253 = arith.constant -1.000000e+09 : f32
    %592 = vector.broadcast %cst_253 : f32 to vector<2x8x8xf32>
    %593 = arith.select %591, %589, %592 : vector<2x8x8xi1>, vector<2x8x8xf32>
    %cst_254 = arith.constant dense<0xFF800000> : vector<2x8xf32>
    %594 = vector.multi_reduction <maximumf>, %593, %cst_254 [2] : vector<2x8x8xf32> to vector<2x8xf32>
    %595 = vector.shape_cast %594 : vector<2x8xf32> to vector<2x8x1xf32>
    %596 = vector.broadcast %595 : vector<2x8x1xf32> to vector<2x8x8xf32>
    %597 = arith.subf %593, %596 : vector<2x8x8xf32>
    %598 = math.exp %597 : vector<2x8x8xf32>
    %cst_255 = arith.constant dense<0.000000e+00> : vector<2x8xf32>
    %599 = vector.multi_reduction <add>, %598, %cst_255 [2] : vector<2x8x8xf32> to vector<2x8xf32>
    %600 = vector.shape_cast %599 : vector<2x8xf32> to vector<2x8x1xf32>
    %601 = vector.broadcast %600 : vector<2x8x1xf32> to vector<2x8x8xf32>
    %602 = arith.divf %598, %601 : vector<2x8x8xf32>
    "tpu.trace_start"() <{level = 10 : i32, message = "bqk,bkd->bqd"}> : () -> ()
    %cst_256 = arith.constant dense<0.000000e+00> : vector<2x8x8xf32>
    %603 = tpu.matmul %602, %586, %cst_256 {dimension_numbers = #tpu.dot_dimension_numbers<[2], [1], [1], [2], [0, 0, 0, 1, 1, 2], [0], [0]>} : vector<2x8x8xf32>, vector<2x8x8xf32>, vector<2x8x8xf32> -> vector<2x8x8xf32>
    "tpu.trace_stop"() : () -> ()
    %604 = vector.shape_cast %603 : vector<2x8x8xf32> to vector<16x8xf32>
    %605 = vector.extract_strided_slice %5 {offsets = [1, 0, 0], sizes = [1, 8, 32], strides = [1, 1, 1]} : vector<4x8x32xf32> to vector<1x8x32xf32>
    %606 = vector.shape_cast %605 : vector<1x8x32xf32> to vector<8x32xf32>
    %cst_257 = arith.constant dense<0.000000e+00> : vector<16x32xf32>
    %607 = tpu.matmul %604, %606, %cst_257 {dimension_numbers = #tpu.dot_dimension_numbers<[1], [0], [0], [1], [0, 0, 1, 1], [], []>} : vector<16x8xf32>, vector<8x32xf32>, vector<16x32xf32> -> vector<16x32xf32>
    %608 = arith.addf %562, %607 : vector<16x32xf32>
    %609 = vector.extract_strided_slice %6 {offsets = [2, 0, 0], sizes = [1, 32, 8], strides = [1, 1, 1]} : vector<4x32x8xf32> to vector<1x32x8xf32>
    %610 = vector.shape_cast %609 : vector<1x32x8xf32> to vector<32x8xf32>
    %cst_258 = arith.constant dense<0.000000e+00> : vector<16x8xf32>
    %611 = tpu.matmul %517, %610, %cst_258 {dimension_numbers = #tpu.dot_dimension_numbers<[1], [0], [0], [1], [0, 0, 1, 1], [], []>} : vector<16x32xf32>, vector<32x8xf32>, vector<16x8xf32> -> vector<16x8xf32>
    %612 = vector.extract_strided_slice %2 {offsets = [2, 0, 0], sizes = [1, 1, 8], strides = [1, 1, 1]} : vector<4x1x8xf32> to vector<1x1x8xf32>
    %613 = vector.shape_cast %612 : vector<1x1x8xf32> to vector<1x8xf32>
    %614 = vector.broadcast %613 : vector<1x8xf32> to vector<16x8xf32>
    %615 = arith.addf %611, %614 : vector<16x8xf32>
    %616 = vector.shape_cast %615 : vector<16x8xf32> to vector<2x8x8xf32>
    %617 = vector.extract_strided_slice %4 {offsets = [2, 0, 0], sizes = [1, 32, 8], strides = [1, 1, 1]} : vector<4x32x8xf32> to vector<1x32x8xf32>
    %618 = vector.shape_cast %617 : vector<1x32x8xf32> to vector<32x8xf32>
    %cst_259 = arith.constant dense<0.000000e+00> : vector<16x8xf32>
    %619 = tpu.matmul %300, %618, %cst_259 {dimension_numbers = #tpu.dot_dimension_numbers<[1], [0], [0], [1], [0, 0, 1, 1], [], []>} : vector<16x32xf32>, vector<32x8xf32>, vector<16x8xf32> -> vector<16x8xf32>
    %620 = vector.extract_strided_slice %0 {offsets = [2, 0, 0], sizes = [1, 1, 8], strides = [1, 1, 1]} : vector<4x1x8xf32> to vector<1x1x8xf32>
    %621 = vector.shape_cast %620 : vector<1x1x8xf32> to vector<1x8xf32>
    %622 = vector.broadcast %621 : vector<1x8xf32> to vector<16x8xf32>
    %623 = arith.addf %619, %622 : vector<16x8xf32>
    %624 = vector.shape_cast %623 : vector<16x8xf32> to vector<2x8x8xf32>
    %625 = vector.extract_strided_slice %7 {offsets = [2, 0, 0], sizes = [1, 32, 8], strides = [1, 1, 1]} : vector<4x32x8xf32> to vector<1x32x8xf32>
    %626 = vector.shape_cast %625 : vector<1x32x8xf32> to vector<32x8xf32>
    %cst_260 = arith.constant dense<0.000000e+00> : vector<16x8xf32>
    %627 = tpu.matmul %300, %626, %cst_260 {dimension_numbers = #tpu.dot_dimension_numbers<[1], [0], [0], [1], [0, 0, 1, 1], [], []>} : vector<16x32xf32>, vector<32x8xf32>, vector<16x8xf32> -> vector<16x8xf32>
    %628 = vector.extract_strided_slice %3 {offsets = [2, 0, 0], sizes = [1, 1, 8], strides = [1, 1, 1]} : vector<4x1x8xf32> to vector<1x1x8xf32>
    %629 = vector.shape_cast %628 : vector<1x1x8xf32> to vector<1x8xf32>
    %630 = vector.broadcast %629 : vector<1x8xf32> to vector<16x8xf32>
    %631 = arith.addf %627, %630 : vector<16x8xf32>
    %632 = vector.shape_cast %631 : vector<16x8xf32> to vector<2x8x8xf32>
    "tpu.trace_start"() <{level = 10 : i32, message = "bqd,bkd->bqk"}> : () -> ()
    %cst_261 = arith.constant dense<0.000000e+00> : vector<2x8x8xf32>
    %633 = tpu.matmul %616, %624, %cst_261 {dimension_numbers = #tpu.dot_dimension_numbers<[2], [2], [1], [1], [0, 0, 0, 1, 1, 1], [0], [0]>} : vector<2x8x8xf32>, vector<2x8x8xf32>, vector<2x8x8xf32> -> vector<2x8x8xf32>
    "tpu.trace_stop"() : () -> ()
    %cst_262 = arith.constant 0.353553385 : f32
    %634 = vector.broadcast %cst_262 : f32 to vector<2x8x8xf32>
    %635 = arith.mulf %633, %634 : vector<2x8x8xf32>
    %cst_263 = arith.constant 5.000000e-01 : f32
    %636 = vector.broadcast %cst_263 : f32 to vector<2x8x8xf32>
    %637 = arith.cmpf ogt, %51, %636 : vector<2x8x8xf32>
    %cst_264 = arith.constant -1.000000e+09 : f32
    %638 = vector.broadcast %cst_264 : f32 to vector<2x8x8xf32>
    %639 = arith.select %637, %635, %638 : vector<2x8x8xi1>, vector<2x8x8xf32>
    %cst_265 = arith.constant dense<0xFF800000> : vector<2x8xf32>
    %640 = vector.multi_reduction <maximumf>, %639, %cst_265 [2] : vector<2x8x8xf32> to vector<2x8xf32>
    %641 = vector.shape_cast %640 : vector<2x8xf32> to vector<2x8x1xf32>
    %642 = vector.broadcast %641 : vector<2x8x1xf32> to vector<2x8x8xf32>
    %643 = arith.subf %639, %642 : vector<2x8x8xf32>
    %644 = math.exp %643 : vector<2x8x8xf32>
    %cst_266 = arith.constant dense<0.000000e+00> : vector<2x8xf32>
    %645 = vector.multi_reduction <add>, %644, %cst_266 [2] : vector<2x8x8xf32> to vector<2x8xf32>
    %646 = vector.shape_cast %645 : vector<2x8xf32> to vector<2x8x1xf32>
    %647 = vector.broadcast %646 : vector<2x8x1xf32> to vector<2x8x8xf32>
    %648 = arith.divf %644, %647 : vector<2x8x8xf32>
    "tpu.trace_start"() <{level = 10 : i32, message = "bqk,bkd->bqd"}> : () -> ()
    %cst_267 = arith.constant dense<0.000000e+00> : vector<2x8x8xf32>
    %649 = tpu.matmul %648, %632, %cst_267 {dimension_numbers = #tpu.dot_dimension_numbers<[2], [1], [1], [2], [0, 0, 0, 1, 1, 2], [0], [0]>} : vector<2x8x8xf32>, vector<2x8x8xf32>, vector<2x8x8xf32> -> vector<2x8x8xf32>
    "tpu.trace_stop"() : () -> ()
    %650 = vector.shape_cast %649 : vector<2x8x8xf32> to vector<16x8xf32>
    %651 = vector.extract_strided_slice %5 {offsets = [2, 0, 0], sizes = [1, 8, 32], strides = [1, 1, 1]} : vector<4x8x32xf32> to vector<1x8x32xf32>
    %652 = vector.shape_cast %651 : vector<1x8x32xf32> to vector<8x32xf32>
    %cst_268 = arith.constant dense<0.000000e+00> : vector<16x32xf32>
    %653 = tpu.matmul %650, %652, %cst_268 {dimension_numbers = #tpu.dot_dimension_numbers<[1], [0], [0], [1], [0, 0, 1, 1], [], []>} : vector<16x8xf32>, vector<8x32xf32>, vector<16x32xf32> -> vector<16x32xf32>
    %654 = arith.addf %608, %653 : vector<16x32xf32>
    %655 = vector.extract_strided_slice %6 {offsets = [3, 0, 0], sizes = [1, 32, 8], strides = [1, 1, 1]} : vector<4x32x8xf32> to vector<1x32x8xf32>
    %656 = vector.shape_cast %655 : vector<1x32x8xf32> to vector<32x8xf32>
    %cst_269 = arith.constant dense<0.000000e+00> : vector<16x8xf32>
    %657 = tpu.matmul %517, %656, %cst_269 {dimension_numbers = #tpu.dot_dimension_numbers<[1], [0], [0], [1], [0, 0, 1, 1], [], []>} : vector<16x32xf32>, vector<32x8xf32>, vector<16x8xf32> -> vector<16x8xf32>
    %658 = vector.extract_strided_slice %2 {offsets = [3, 0, 0], sizes = [1, 1, 8], strides = [1, 1, 1]} : vector<4x1x8xf32> to vector<1x1x8xf32>
    %659 = vector.shape_cast %658 : vector<1x1x8xf32> to vector<1x8xf32>
    %660 = vector.broadcast %659 : vector<1x8xf32> to vector<16x8xf32>
    %661 = arith.addf %657, %660 : vector<16x8xf32>
    %662 = vector.shape_cast %661 : vector<16x8xf32> to vector<2x8x8xf32>
    %663 = vector.extract_strided_slice %4 {offsets = [3, 0, 0], sizes = [1, 32, 8], strides = [1, 1, 1]} : vector<4x32x8xf32> to vector<1x32x8xf32>
    %664 = vector.shape_cast %663 : vector<1x32x8xf32> to vector<32x8xf32>
    %cst_270 = arith.constant dense<0.000000e+00> : vector<16x8xf32>
    %665 = tpu.matmul %300, %664, %cst_270 {dimension_numbers = #tpu.dot_dimension_numbers<[1], [0], [0], [1], [0, 0, 1, 1], [], []>} : vector<16x32xf32>, vector<32x8xf32>, vector<16x8xf32> -> vector<16x8xf32>
    %666 = vector.extract_strided_slice %0 {offsets = [3, 0, 0], sizes = [1, 1, 8], strides = [1, 1, 1]} : vector<4x1x8xf32> to vector<1x1x8xf32>
    %667 = vector.shape_cast %666 : vector<1x1x8xf32> to vector<1x8xf32>
    %668 = vector.broadcast %667 : vector<1x8xf32> to vector<16x8xf32>
    %669 = arith.addf %665, %668 : vector<16x8xf32>
    %670 = vector.shape_cast %669 : vector<16x8xf32> to vector<2x8x8xf32>
    %671 = vector.extract_strided_slice %7 {offsets = [3, 0, 0], sizes = [1, 32, 8], strides = [1, 1, 1]} : vector<4x32x8xf32> to vector<1x32x8xf32>
    %672 = vector.shape_cast %671 : vector<1x32x8xf32> to vector<32x8xf32>
    %cst_271 = arith.constant dense<0.000000e+00> : vector<16x8xf32>
    %673 = tpu.matmul %300, %672, %cst_271 {dimension_numbers = #tpu.dot_dimension_numbers<[1], [0], [0], [1], [0, 0, 1, 1], [], []>} : vector<16x32xf32>, vector<32x8xf32>, vector<16x8xf32> -> vector<16x8xf32>
    %674 = vector.extract_strided_slice %3 {offsets = [3, 0, 0], sizes = [1, 1, 8], strides = [1, 1, 1]} : vector<4x1x8xf32> to vector<1x1x8xf32>
    %675 = vector.shape_cast %674 : vector<1x1x8xf32> to vector<1x8xf32>
    %676 = vector.broadcast %675 : vector<1x8xf32> to vector<16x8xf32>
    %677 = arith.addf %673, %676 : vector<16x8xf32>
    %678 = vector.shape_cast %677 : vector<16x8xf32> to vector<2x8x8xf32>
    "tpu.trace_start"() <{level = 10 : i32, message = "bqd,bkd->bqk"}> : () -> ()
    %cst_272 = arith.constant dense<0.000000e+00> : vector<2x8x8xf32>
    %679 = tpu.matmul %662, %670, %cst_272 {dimension_numbers = #tpu.dot_dimension_numbers<[2], [2], [1], [1], [0, 0, 0, 1, 1, 1], [0], [0]>} : vector<2x8x8xf32>, vector<2x8x8xf32>, vector<2x8x8xf32> -> vector<2x8x8xf32>
    "tpu.trace_stop"() : () -> ()
    %cst_273 = arith.constant 0.353553385 : f32
    %680 = vector.broadcast %cst_273 : f32 to vector<2x8x8xf32>
    %681 = arith.mulf %679, %680 : vector<2x8x8xf32>
    %cst_274 = arith.constant 5.000000e-01 : f32
    %682 = vector.broadcast %cst_274 : f32 to vector<2x8x8xf32>
    %683 = arith.cmpf ogt, %51, %682 : vector<2x8x8xf32>
    %cst_275 = arith.constant -1.000000e+09 : f32
    %684 = vector.broadcast %cst_275 : f32 to vector<2x8x8xf32>
    %685 = arith.select %683, %681, %684 : vector<2x8x8xi1>, vector<2x8x8xf32>
    %cst_276 = arith.constant dense<0xFF800000> : vector<2x8xf32>
    %686 = vector.multi_reduction <maximumf>, %685, %cst_276 [2] : vector<2x8x8xf32> to vector<2x8xf32>
    %687 = vector.shape_cast %686 : vector<2x8xf32> to vector<2x8x1xf32>
    %688 = vector.broadcast %687 : vector<2x8x1xf32> to vector<2x8x8xf32>
    %689 = arith.subf %685, %688 : vector<2x8x8xf32>
    %690 = math.exp %689 : vector<2x8x8xf32>
    %cst_277 = arith.constant dense<0.000000e+00> : vector<2x8xf32>
    %691 = vector.multi_reduction <add>, %690, %cst_277 [2] : vector<2x8x8xf32> to vector<2x8xf32>
    %692 = vector.shape_cast %691 : vector<2x8xf32> to vector<2x8x1xf32>
    %693 = vector.broadcast %692 : vector<2x8x1xf32> to vector<2x8x8xf32>
    %694 = arith.divf %690, %693 : vector<2x8x8xf32>
    "tpu.trace_start"() <{level = 10 : i32, message = "bqk,bkd->bqd"}> : () -> ()
    %cst_278 = arith.constant dense<0.000000e+00> : vector<2x8x8xf32>
    %695 = tpu.matmul %694, %678, %cst_278 {dimension_numbers = #tpu.dot_dimension_numbers<[2], [1], [1], [2], [0, 0, 0, 1, 1, 2], [0], [0]>} : vector<2x8x8xf32>, vector<2x8x8xf32>, vector<2x8x8xf32> -> vector<2x8x8xf32>
    "tpu.trace_stop"() : () -> ()
    %696 = vector.shape_cast %695 : vector<2x8x8xf32> to vector<16x8xf32>
    %697 = vector.extract_strided_slice %5 {offsets = [3, 0, 0], sizes = [1, 8, 32], strides = [1, 1, 1]} : vector<4x8x32xf32> to vector<1x8x32xf32>
    %698 = vector.shape_cast %697 : vector<1x8x32xf32> to vector<8x32xf32>
    %cst_279 = arith.constant dense<0.000000e+00> : vector<16x32xf32>
    %699 = tpu.matmul %696, %698, %cst_279 {dimension_numbers = #tpu.dot_dimension_numbers<[1], [0], [0], [1], [0, 0, 1, 1], [], []>} : vector<16x8xf32>, vector<8x32xf32>, vector<16x32xf32> -> vector<16x32xf32>
    %700 = arith.addf %654, %699 : vector<16x32xf32>
    %701 = vector.broadcast %1 : vector<1x32xf32> to vector<16x32xf32>
    %702 = arith.addf %700, %701 : vector<16x32xf32>
    %703 = arith.addf %517, %702 : vector<16x32xf32>
    %cst_280 = arith.constant dense<0.000000e+00> : vector<16xf32>
    %704 = vector.multi_reduction <add>, %703, %cst_280 [1] : vector<16x32xf32> to vector<16xf32>
    %705 = vector.shape_cast %704 : vector<16xf32> to vector<16x1xf32>
    %cst_281 = arith.constant 3.200000e+01 : f32
    %706 = vector.broadcast %cst_281 : f32 to vector<16x1xf32>
    %707 = arith.divf %705, %706 : vector<16x1xf32>
    %708 = vector.broadcast %707 : vector<16x1xf32> to vector<16x32xf32>
    %709 = arith.subf %703, %708 : vector<16x32xf32>
    %710 = arith.mulf %709, %709 : vector<16x32xf32>
    %cst_282 = arith.constant dense<0.000000e+00> : vector<16xf32>
    %711 = vector.multi_reduction <add>, %710, %cst_282 [1] : vector<16x32xf32> to vector<16xf32>
    %712 = vector.shape_cast %711 : vector<16xf32> to vector<16x1xf32>
    %cst_283 = arith.constant 3.200000e+01 : f32
    %713 = vector.broadcast %cst_283 : f32 to vector<16x1xf32>
    %714 = arith.divf %712, %713 : vector<16x1xf32>
    %715 = vector.broadcast %707 : vector<16x1xf32> to vector<16x32xf32>
    %716 = arith.subf %703, %715 : vector<16x32xf32>
    %cst_284 = arith.constant 9.99999974E-6 : f32
    %717 = vector.broadcast %cst_284 : f32 to vector<16x1xf32>
    %718 = arith.addf %714, %717 : vector<16x1xf32>
    %719 = math.rsqrt %718 : vector<16x1xf32>
    %720 = vector.broadcast %719 : vector<16x1xf32> to vector<16x32xf32>
    %721 = arith.mulf %716, %720 : vector<16x32xf32>
    %722 = vector.broadcast %14 : vector<1x32xf32> to vector<16x32xf32>
    %723 = arith.mulf %721, %722 : vector<16x32xf32>
    %724 = vector.broadcast %15 : vector<1x32xf32> to vector<16x32xf32>
    %725 = arith.addf %723, %724 : vector<16x32xf32>
    %cst_285 = arith.constant dense<0.000000e+00> : vector<16x64xf32>
    %726 = tpu.matmul %725, %10, %cst_285 {dimension_numbers = #tpu.dot_dimension_numbers<[1], [0], [0], [1], [0, 0, 1, 1], [], []>} : vector<16x32xf32>, vector<32x64xf32>, vector<16x64xf32> -> vector<16x64xf32>
    %727 = vector.broadcast %8 : vector<1x64xf32> to vector<16x64xf32>
    %728 = arith.addf %726, %727 : vector<16x64xf32>
    %cst_286 = arith.constant 0.000000e+00 : f32
    %729 = vector.broadcast %cst_286 : f32 to vector<16x64xf32>
    %730 = arith.maximumf %728, %729 : vector<16x64xf32>
    %cst_287 = arith.constant dense<0.000000e+00> : vector<16x32xf32>
    %731 = tpu.matmul %730, %11, %cst_287 {dimension_numbers = #tpu.dot_dimension_numbers<[1], [0], [0], [1], [0, 0, 1, 1], [], []>} : vector<16x64xf32>, vector<64x32xf32>, vector<16x32xf32> -> vector<16x32xf32>
    %732 = vector.broadcast %9 : vector<1x32xf32> to vector<16x32xf32>
    %733 = arith.addf %731, %732 : vector<16x32xf32>
    %734 = arith.addf %725, %733 : vector<16x32xf32>
    %cst_288 = arith.constant dense<0.000000e+00> : vector<16xf32>
    %735 = vector.multi_reduction <add>, %734, %cst_288 [1] : vector<16x32xf32> to vector<16xf32>
    %736 = vector.shape_cast %735 : vector<16xf32> to vector<16x1xf32>
    %cst_289 = arith.constant 3.200000e+01 : f32
    %737 = vector.broadcast %cst_289 : f32 to vector<16x1xf32>
    %738 = arith.divf %736, %737 : vector<16x1xf32>
    %739 = vector.broadcast %738 : vector<16x1xf32> to vector<16x32xf32>
    %740 = arith.subf %734, %739 : vector<16x32xf32>
    %741 = arith.mulf %740, %740 : vector<16x32xf32>
    %cst_290 = arith.constant dense<0.000000e+00> : vector<16xf32>
    %742 = vector.multi_reduction <add>, %741, %cst_290 [1] : vector<16x32xf32> to vector<16xf32>
    %743 = vector.shape_cast %742 : vector<16xf32> to vector<16x1xf32>
    %cst_291 = arith.constant 3.200000e+01 : f32
    %744 = vector.broadcast %cst_291 : f32 to vector<16x1xf32>
    %745 = arith.divf %743, %744 : vector<16x1xf32>
    %746 = vector.broadcast %738 : vector<16x1xf32> to vector<16x32xf32>
    %747 = arith.subf %734, %746 : vector<16x32xf32>
    %cst_292 = arith.constant 9.99999974E-6 : f32
    %748 = vector.broadcast %cst_292 : f32 to vector<16x1xf32>
    %749 = arith.addf %745, %748 : vector<16x1xf32>
    %750 = math.rsqrt %749 : vector<16x1xf32>
    %751 = vector.broadcast %750 : vector<16x1xf32> to vector<16x32xf32>
    %752 = arith.mulf %747, %751 : vector<16x32xf32>
    %753 = vector.broadcast %16 : vector<1x32xf32> to vector<16x32xf32>
    %754 = arith.mulf %752, %753 : vector<16x32xf32>
    %755 = vector.broadcast %17 : vector<1x32xf32> to vector<16x32xf32>
    %756 = arith.addf %754, %755 : vector<16x32xf32>
    %cst_293 = arith.constant dense<0.000000e+00> : vector<16x128xf32>
    %757 = tpu.matmul %756, %42, %cst_293 {dimension_numbers = #tpu.dot_dimension_numbers<[1], [0], [0], [1], [0, 0, 1, 1], [], []>} : vector<16x32xf32>, vector<32x128xf32>, vector<16x128xf32> -> vector<16x128xf32>
    %758 = vector.broadcast %43 : vector<1x128xf32> to vector<16x128xf32>
    %759 = arith.addf %757, %758 : vector<16x128xf32>
    %c0_294 = arith.constant 0 : index
    %c0_295 = arith.constant 0 : index
    %760 = vector.load %arg54[%c0_294, %c0_295] : memref<16x128xf32, #tpu.memory_space<vmem>>, vector<16x128xf32>
    tpu.vector_store %arg54[%c0_294, %c0_295], %759 {strides = array<i32>} : memref<16x128xf32, #tpu.memory_space<vmem>>, vector<16x128xf32>,
    %761 = tpu.iota {dimensions = array<i32: 1>} : vector<16x128xi32>
    %c64_i32 = arith.constant 64 : i32
    %762 = vector.broadcast %c64_i32 : i32 to vector<16x128xi32>
    %763 = arith.cmpi slt, %761, %762 : vector<16x128xi32>
    %cst_296 = arith.constant -1.000000e+09 : f32
    %764 = vector.broadcast %cst_296 : f32 to vector<16x128xf32>
    %765 = arith.select %763, %759, %764 : vector<16x128xi1>, vector<16x128xf32>
    %cst_297 = arith.constant dense<0xFF800000> : vector<16xf32>
    %766 = vector.multi_reduction <maximumf>, %765, %cst_297 [1] : vector<16x128xf32> to vector<16xf32>
    %767 = vector.shape_cast %766 : vector<16xf32> to vector<16x1xf32>
    %768 = vector.broadcast %767 : vector<16x1xf32> to vector<16x128xf32>
    %769 = arith.subf %765, %768 : vector<16x128xf32>
    %770 = math.exp %769 : vector<16x128xf32>
    %cst_298 = arith.constant dense<0.000000e+00> : vector<16xf32>
    %771 = vector.multi_reduction <add>, %770, %cst_298 [1] : vector<16x128xf32> to vector<16xf32>
    %772 = vector.shape_cast %771 : vector<16xf32> to vector<16x1xf32>
    %773 = math.log %772 : vector<16x1xf32>
    %774 = arith.addf %767, %773 : vector<16x1xf32>
    %775 = vector.broadcast %48 : vector<16x1xi32> to vector<16x128xi32>
    %776 = arith.cmpi eq, %761, %775 : vector<16x128xi32>
    %cst_299 = arith.constant 0.000000e+00 : f32
    %777 = vector.broadcast %cst_299 : f32 to vector<16x128xf32>
    %778 = arith.select %776, %759, %777 : vector<16x128xi1>, vector<16x128xf32>
    %cst_300 = arith.constant dense<0.000000e+00> : vector<16xf32>
    %779 = vector.multi_reduction <add>, %778, %cst_300 [1] : vector<16x128xf32> to vector<16xf32>
    %780 = vector.shape_cast %779 : vector<16xf32> to vector<16x1xf32>
    %781 = arith.subf %774, %780 : vector<16x1xf32>
    %782 = arith.mulf %781, %52 : vector<16x1xf32>
    %783 = vector.shape_cast %782 : vector<16x1xf32> to vector<1x16x1xf32>
    %cst_301 = arith.constant dense<0.000000e+00> : vector<1xf32>
    %784 = vector.multi_reduction <add>, %783, %cst_301 [1, 2] : vector<1x16x1xf32> to vector<1xf32>
    %785 = vector.shape_cast %784 : vector<1xf32> to vector<1x1x1xf32>
    %786 = vector.extract %785[0, 0, 0] : f32 from vector<1x1x1xf32>
    %787 = vector.shape_cast %52 : vector<16x1xf32> to vector<1x16x1xf32>
    %cst_302 = arith.constant dense<0.000000e+00> : vector<1xf32>
    %788 = vector.multi_reduction <add>, %787, %cst_302 [1, 2] : vector<1x16x1xf32> to vector<1xf32>
    %789 = vector.shape_cast %788 : vector<1xf32> to vector<1x1x1xf32>
    %790 = vector.extract %789[0, 0, 0] : f32 from vector<1x1x1xf32>
    %cst_303 = arith.constant 1.000000e+00 : f32
    %791 = arith.maximumf %790, %cst_303 : f32
    %792 = arith.divf %786, %791 : f32
    %793 = vector.broadcast %792 : f32 to vector<1x1xf32>
    %c0_304 = arith.constant 0 : index
    %c0_305 = arith.constant 0 : index
    %794 = vector.load %arg55[%c0_304, %c0_305] : memref<1x1xf32, #tpu.memory_space<vmem>>, vector<1x1xf32>
    tpu.vector_store %arg55[%c0_304, %c0_305], %793 {strides = array<i32>} : memref<1x1xf32, #tpu.memory_space<vmem>>, vector<1x1xf32>,
    return
  }
  func.func @transform_0(%arg0: i32) -> (i32, i32) {
    %c0_i32 = arith.constant 0 : i32
    %c0_i32_0 = arith.constant 0 : i32
    %c0_i32_1 = arith.constant 0 : i32
    return %c0_i32, %c0_i32_0 : i32, i32
  }
  func.func @transform_1(%arg0: i32) -> (i32, i32) {
    %c0_i32 = arith.constant 0 : i32
    %c0_i32_0 = arith.constant 0 : i32
    %c0_i32_1 = arith.constant 0 : i32
    return %c0_i32, %c0_i32_0 : i32, i32
  }
  func.func @transform_2(%arg0: i32) -> (i32, i32) {
    %c0_i32 = arith.constant 0 : i32
    %c0_i32_0 = arith.constant 0 : i32
    %c0_i32_1 = arith.constant 0 : i32
    return %c0_i32, %c0_i32_0 : i32, i32
  }
  func.func @transform_3(%arg0: i32) -> (i32, i32, i32) {
    %c0_i32 = arith.constant 0 : i32
    %c0_i32_0 = arith.constant 0 : i32
    %c0_i32_1 = arith.constant 0 : i32
    %c0_i32_2 = arith.constant 0 : i32
    return %c0_i32, %c0_i32_0, %c0_i32_1 : i32, i32, i32
  }
  func.func @transform_4(%arg0: i32) -> (i32, i32, i32) {
    %c0_i32 = arith.constant 0 : i32
    %c0_i32_0 = arith.constant 0 : i32
    %c0_i32_1 = arith.constant 0 : i32
    %c0_i32_2 = arith.constant 0 : i32
    return %c0_i32, %c0_i32_0, %c0_i32_1 : i32, i32, i32
  }
  func.func @transform_5(%arg0: i32) -> (i32, i32, i32) {
    %c0_i32 = arith.constant 0 : i32
    %c0_i32_0 = arith.constant 0 : i32
    %c0_i32_1 = arith.constant 0 : i32
    %c0_i32_2 = arith.constant 0 : i32
    return %c0_i32, %c0_i32_0, %c0_i32_1 : i32, i32, i32
  }
  func.func @transform_6(%arg0: i32) -> (i32, i32) {
    %c0_i32 = arith.constant 0 : i32
    %c0_i32_0 = arith.constant 0 : i32
    %c0_i32_1 = arith.constant 0 : i32
    return %c0_i32, %c0_i32_0 : i32, i32
  }
  func.func @transform_7(%arg0: i32) -> (i32, i32, i32) {
    %c0_i32 = arith.constant 0 : i32
    %c0_i32_0 = arith.constant 0 : i32
    %c0_i32_1 = arith.constant 0 : i32
    %c0_i32_2 = arith.constant 0 : i32
    return %c0_i32, %c0_i32_0, %c0_i32_1 : i32, i32, i32
  }
  func.func @transform_8(%arg0: i32) -> (i32, i32) {
    %c0_i32 = arith.constant 0 : i32
    %c0_i32_0 = arith.constant 0 : i32
    %c0_i32_1 = arith.constant 0 : i32
    return %c0_i32, %c0_i32_0 : i32, i32
  }
  func.func @transform_9(%arg0: i32) -> (i32, i32, i32) {
    %c0_i32 = arith.constant 0 : i32
    %c0_i32_0 = arith.constant 0 : i32
    %c0_i32_1 = arith.constant 0 : i32
    %c0_i32_2 = arith.constant 0 : i32
    return %c0_i32, %c0_i32_0, %c0_i32_1 : i32, i32, i32
  }
  func.func @transform_10(%arg0: i32) -> (i32, i32, i32) {
    %c0_i32 = arith.constant 0 : i32
    %c0_i32_0 = arith.constant 0 : i32
    %c0_i32_1 = arith.constant 0 : i32
    %c0_i32_2 = arith.constant 0 : i32
    return %c0_i32, %c0_i32_0, %c0_i32_1 : i32, i32, i32
  }
  func.func @transform_11(%arg0: i32) -> (i32, i32, i32) {
    %c0_i32 = arith.constant 0 : i32
    %c0_i32_0 = arith.constant 0 : i32
    %c0_i32_1 = arith.constant 0 : i32
    %c0_i32_2 = arith.constant 0 : i32
    return %c0_i32, %c0_i32_0, %c0_i32_1 : i32, i32, i32
  }
  func.func @transform_12(%arg0: i32) -> (i32, i32, i32) {
    %c0_i32 = arith.constant 0 : i32
    %c0_i32_0 = arith.constant 0 : i32
    %c0_i32_1 = arith.constant 0 : i32
    %c0_i32_2 = arith.constant 0 : i32
    return %c0_i32, %c0_i32_0, %c0_i32_1 : i32, i32, i32
  }
  func.func @transform_13(%arg0: i32) -> (i32, i32, i32) {
    %c0_i32 = arith.constant 0 : i32
    %c0_i32_0 = arith.constant 0 : i32
    %c0_i32_1 = arith.constant 0 : i32
    %c0_i32_2 = arith.constant 0 : i32
    return %c0_i32, %c0_i32_0, %c0_i32_1 : i32, i32, i32
  }
  func.func @transform_14(%arg0: i32) -> (i32, i32, i32) {
    %c0_i32 = arith.constant 0 : i32
    %c0_i32_0 = arith.constant 0 : i32
    %c0_i32_1 = arith.constant 0 : i32
    %c0_i32_2 = arith.constant 0 : i32
    return %c0_i32, %c0_i32_0, %c0_i32_1 : i32, i32, i32
  }
  func.func @transform_15(%arg0: i32) -> (i32, i32) {
    %c0_i32 = arith.constant 0 : i32
    %c0_i32_0 = arith.constant 0 : i32
    %c0_i32_1 = arith.constant 0 : i32
    return %c0_i32, %c0_i32_0 : i32, i32
  }
  func.func @transform_16(%arg0: i32) -> (i32, i32) {
    %c0_i32 = arith.constant 0 : i32
    %c0_i32_0 = arith.constant 0 : i32
    %c0_i32_1 = arith.constant 0 : i32
    return %c0_i32, %c0_i32_0 : i32, i32
  }
  func.func @transform_17(%arg0: i32) -> (i32, i32) {
    %c0_i32 = arith.constant 0 : i32
    %c0_i32_0 = arith.constant 0 : i32
    %c0_i32_1 = arith.constant 0 : i32
    return %c0_i32, %c0_i32_0 : i32, i32
  }
  func.func @transform_18(%arg0: i32) -> (i32, i32) {
    %c0_i32 = arith.constant 0 : i32
    %c0_i32_0 = arith.constant 0 : i32
    %c0_i32_1 = arith.constant 0 : i32
    return %c0_i32, %c0_i32_0 : i32, i32
  }
  func.func @transform_19(%arg0: i32) -> (i32, i32) {
    %c0_i32 = arith.constant 0 : i32
    %c0_i32_0 = arith.constant 0 : i32
    %c0_i32_1 = arith.constant 0 : i32
    return %c0_i32, %c0_i32_0 : i32, i32
  }
  func.func @transform_20(%arg0: i32) -> (i32, i32) {
    %c0_i32 = arith.constant 0 : i32
    %c0_i32_0 = arith.constant 0 : i32
    %c0_i32_1 = arith.constant 0 : i32
    return %c0_i32, %c0_i32_0 : i32, i32
  }
  func.func @transform_21(%arg0: i32) -> (i32, i32) {
    %c0_i32 = arith.constant 0 : i32
    %c0_i32_0 = arith.constant 0 : i32
    %c0_i32_1 = arith.constant 0 : i32
    return %c0_i32, %c0_i32_0 : i32, i32
  }
  func.func @transform_22(%arg0: i32) -> (i32, i32) {
    %c0_i32 = arith.constant 0 : i32
    %c0_i32_0 = arith.constant 0 : i32
    %c0_i32_1 = arith.constant 0 : i32
    return %c0_i32, %c0_i32_0 : i32, i32
  }
  func.func @transform_23(%arg0: i32) -> (i32, i32) {
    %c0_i32 = arith.constant 0 : i32
    %c0_i32_0 = arith.constant 0 : i32
    %c0_i32_1 = arith.constant 0 : i32
    return %c0_i32, %c0_i32_0 : i32, i32
  }
  func.func @transform_24(%arg0: i32) -> (i32, i32) {
    %c0_i32 = arith.constant 0 : i32
    %c0_i32_0 = arith.constant 0 : i32
    %c0_i32_1 = arith.constant 0 : i32
    return %c0_i32, %c0_i32_0 : i32, i32
  }
  func.func @transform_25(%arg0: i32) -> (i32, i32, i32) {
    %c0_i32 = arith.constant 0 : i32
    %c0_i32_0 = arith.constant 0 : i32
    %c0_i32_1 = arith.constant 0 : i32
    %c0_i32_2 = arith.constant 0 : i32
    return %c0_i32, %c0_i32_0, %c0_i32_1 : i32, i32, i32
  }
  func.func @transform_26(%arg0: i32) -> (i32, i32) {
    %c0_i32 = arith.constant 0 : i32
    %c0_i32_0 = arith.constant 0 : i32
    %c0_i32_1 = arith.constant 0 : i32
    return %c0_i32, %c0_i32_0 : i32, i32
  }
  func.func @transform_27(%arg0: i32) -> (i32, i32, i32) {
    %c0_i32 = arith.constant 0 : i32
    %c0_i32_0 = arith.constant 0 : i32
    %c0_i32_1 = arith.constant 0 : i32
    %c0_i32_2 = arith.constant 0 : i32
    return %c0_i32, %c0_i32_0, %c0_i32_1 : i32, i32, i32
  }
  func.func @transform_28(%arg0: i32) -> (i32, i32, i32) {
    %c0_i32 = arith.constant 0 : i32
    %c0_i32_0 = arith.constant 0 : i32
    %c0_i32_1 = arith.constant 0 : i32
    %c0_i32_2 = arith.constant 0 : i32
    return %c0_i32, %c0_i32_0, %c0_i32_1 : i32, i32, i32
  }
  func.func @transform_29(%arg0: i32) -> (i32, i32, i32) {
    %c0_i32 = arith.constant 0 : i32
    %c0_i32_0 = arith.constant 0 : i32
    %c0_i32_1 = arith.constant 0 : i32
    %c0_i32_2 = arith.constant 0 : i32
    return %c0_i32, %c0_i32_0, %c0_i32_1 : i32, i32, i32
  }
  func.func @transform_30(%arg0: i32) -> (i32, i32, i32) {
    %c0_i32 = arith.constant 0 : i32
    %c0_i32_0 = arith.constant 0 : i32
    %c0_i32_1 = arith.constant 0 : i32
    %c0_i32_2 = arith.constant 0 : i32
    return %c0_i32, %c0_i32_0, %c0_i32_1 : i32, i32, i32
  }
  func.func @transform_31(%arg0: i32) -> (i32, i32, i32) {
    %c0_i32 = arith.constant 0 : i32
    %c0_i32_0 = arith.constant 0 : i32
    %c0_i32_1 = arith.constant 0 : i32
    %c0_i32_2 = arith.constant 0 : i32
    return %c0_i32, %c0_i32_0, %c0_i32_1 : i32, i32, i32
  }
  func.func @transform_32(%arg0: i32) -> (i32, i32, i32) {
    %c0_i32 = arith.constant 0 : i32
    %c0_i32_0 = arith.constant 0 : i32
    %c0_i32_1 = arith.constant 0 : i32
    %c0_i32_2 = arith.constant 0 : i32
    return %c0_i32, %c0_i32_0, %c0_i32_1 : i32, i32, i32
  }
  func.func @transform_33(%arg0: i32) -> (i32, i32, i32) {
    %c0_i32 = arith.constant 0 : i32
    %c0_i32_0 = arith.constant 0 : i32
    %c0_i32_1 = arith.constant 0 : i32
    %c0_i32_2 = arith.constant 0 : i32
    return %c0_i32, %c0_i32_0, %c0_i32_1 : i32, i32, i32
  }
  func.func @transform_34(%arg0: i32) -> (i32, i32) {
    %c0_i32 = arith.constant 0 : i32
    %c0_i32_0 = arith.constant 0 : i32
    %c0_i32_1 = arith.constant 0 : i32
    return %c0_i32, %c0_i32_0 : i32, i32
  }
  func.func @transform_35(%arg0: i32) -> (i32, i32, i32) {
    %c0_i32 = arith.constant 0 : i32
    %c0_i32_0 = arith.constant 0 : i32
    %c0_i32_1 = arith.constant 0 : i32
    %c0_i32_2 = arith.constant 0 : i32
    return %c0_i32, %c0_i32_0, %c0_i32_1 : i32, i32, i32
  }
  func.func @transform_36(%arg0: i32) -> (i32, i32, i32) {
    %c0_i32 = arith.constant 0 : i32
    %c0_i32_0 = arith.constant 0 : i32
    %c0_i32_1 = arith.constant 0 : i32
    %c0_i32_2 = arith.constant 0 : i32
    return %c0_i32, %c0_i32_0, %c0_i32_1 : i32, i32, i32
  }
  func.func @transform_37(%arg0: i32) -> (i32, i32, i32) {
    %c0_i32 = arith.constant 0 : i32
    %c0_i32_0 = arith.constant 0 : i32
    %c0_i32_1 = arith.constant 0 : i32
    %c0_i32_2 = arith.constant 0 : i32
    return %c0_i32, %c0_i32_0, %c0_i32_1 : i32, i32, i32
  }
  func.func @transform_38(%arg0: i32) -> (i32, i32, i32) {
    %c0_i32 = arith.constant 0 : i32
    %c0_i32_0 = arith.constant 0 : i32
    %c0_i32_1 = arith.constant 0 : i32
    %c0_i32_2 = arith.constant 0 : i32
    return %c0_i32, %c0_i32_0, %c0_i32_1 : i32, i32, i32
  }
  func.func @transform_39(%arg0: i32) -> (i32, i32, i32) {
    %c0_i32 = arith.constant 0 : i32
    %c0_i32_0 = arith.constant 0 : i32
    %c0_i32_1 = arith.constant 0 : i32
    %c0_i32_2 = arith.constant 0 : i32
    return %c0_i32, %c0_i32_0, %c0_i32_1 : i32, i32, i32
  }
  func.func @transform_40(%arg0: i32) -> (i32, i32, i32) {
    %c0_i32 = arith.constant 0 : i32
    %c0_i32_0 = arith.constant 0 : i32
    %c0_i32_1 = arith.constant 0 : i32
    %c0_i32_2 = arith.constant 0 : i32
    return %c0_i32, %c0_i32_0, %c0_i32_1 : i32, i32, i32
  }
  func.func @transform_41(%arg0: i32) -> (i32, i32) {
    %c0_i32 = arith.constant 0 : i32
    %c0_i32_0 = arith.constant 0 : i32
    %c0_i32_1 = arith.constant 0 : i32
    return %c0_i32, %c0_i32_0 : i32, i32
  }
  func.func @transform_42(%arg0: i32) -> (i32, i32) {
    %c0_i32 = arith.constant 0 : i32
    %c0_i32_0 = arith.constant 0 : i32
    %c0_i32_1 = arith.constant 0 : i32
    return %c0_i32, %c0_i32_0 : i32, i32
  }
  func.func @transform_43(%arg0: i32) -> (i32, i32) {
    %c0_i32 = arith.constant 0 : i32
    %c0_i32_0 = arith.constant 0 : i32
    %c0_i32_1 = arith.constant 0 : i32
    return %c0_i32, %c0_i32_0 : i32, i32
  }
  func.func @transform_44(%arg0: i32) -> (i32, i32) {
    %c0_i32 = arith.constant 0 : i32
    %c0_i32_0 = arith.constant 0 : i32
    %c0_i32_1 = arith.constant 0 : i32
    return %c0_i32, %c0_i32_0 : i32, i32
  }
  func.func @transform_45(%arg0: i32) -> (i32, i32) {
    %c0_i32 = arith.constant 0 : i32
    %c0_i32_0 = arith.constant 0 : i32
    %c0_i32_1 = arith.constant 0 : i32
    return %c0_i32, %c0_i32_0 : i32, i32
  }
  func.func @transform_46(%arg0: i32) -> (i32, i32) {
    %c0_i32 = arith.constant 0 : i32
    %c0_i32_0 = arith.constant 0 : i32
    %c0_i32_1 = arith.constant 0 : i32
    return %c0_i32, %c0_i32_0 : i32, i32
  }
  func.func @transform_47(%arg0: i32) -> (i32, i32) {
    %c0_i32 = arith.constant 0 : i32
    %c0_i32_0 = arith.constant 0 : i32
    %c0_i32_1 = arith.constant 0 : i32
    return %c0_i32, %c0_i32_0 : i32, i32
  }
  func.func @transform_48(%arg0: i32) -> (i32, i32) {
    %c0_i32 = arith.constant 0 : i32
    %c0_i32_0 = arith.constant 0 : i32
    %c0_i32_1 = arith.constant 0 : i32
    return %c0_i32, %c0_i32_0 : i32, i32
  }
  func.func @transform_49(%arg0: i32) -> (i32, i32) {
    %c0_i32 = arith.constant 0 : i32
    %c0_i32_0 = arith.constant 0 : i32
    %c0_i32_1 = arith.constant 0 : i32
    return %c0_i32, %c0_i32_0 : i32, i32
  }
  func.func @transform_50(%arg0: i32) -> (i32, i32) {
    %c0_i32 = arith.constant 0 : i32
    %c0_i32_0 = arith.constant 0 : i32
    %c0_i32_1 = arith.constant 0 : i32
    return %c0_i32, %c0_i32_0 : i32, i32
  }
  func.func @transform_51(%arg0: i32) -> (i32, i32) {
    %c0_i32 = arith.constant 0 : i32
    %c0_i32_0 = arith.constant 0 : i32
    %c0_i32_1 = arith.constant 0 : i32
    return %c0_i32, %c0_i32_0 : i32, i32
  }
  func.func @transform_52(%arg0: i32) -> (i32, i32) {
    %c0_i32 = arith.constant 0 : i32
    %c0_i32_0 = arith.constant 0 : i32
    %c0_i32_1 = arith.constant 0 : i32
    return %c0_i32, %c0_i32_0 : i32, i32
  }
  func.func @transform_53(%arg0: i32) -> (i32, i32) {
    %c0_i32 = arith.constant 0 : i32
    %c0_i32_0 = arith.constant 0 : i32
    %c0_i32_1 = arith.constant 0 : i32
    return %c0_i32, %c0_i32_0 : i32, i32
  }
  func.func @transform_54(%arg0: i32) -> (i32, i32) {
    %c0_i32 = arith.constant 0 : i32
    %c0_i32_0 = arith.constant 0 : i32
    %c0_i32_1 = arith.constant 0 : i32
    return %c0_i32, %c0_i32_0 : i32, i32
  }
}

</mosaic_0001>

<bundles_post_ra>
// kernel: autoregressive_wrapper_forward.1
= control target key start
LH: loop header
LB: loop body
LE: loop exit
PB: predicated region body
PF: predicated region fallthrough
CT: control target
= control target key end

     0   :  { %s10999_s6 = smov 1   ;;  %s11000_s10 = smov 2   ;;  %s12268_s0 = inlined_call_operand.smem [shape: u32[55], index: -1, kind: input, shape index: {}] }
   0x1   :  { %s11066_s5 = sld [smem:[%s12268_s0]]   ;;  %s11001_s14 = smov 3  }
   0x2   :  { %s11071_s9 = sld [smem:[%s12268_s0 + %s10999_s6]]   ;;  %s11002_s18 = smov 4  }
   0x3   :  { %s11076_s13 = sld [smem:[%s12268_s0 + %s11000_s10]]   ;;  %s11003_s22 = smov 5  }
   0x4   :  { %s11081_s17 = sld [smem:[%s12268_s0 + %s11001_s14]]   ;;  %s11004_s26 = smov 6  }
   0x5   :  { %s11086_s21 = sld [smem:[%s12268_s0 + %s11002_s18]]   ;;  %s11005_s30 = smov 7  }
   0x6   :  { %s11091_s25 = sld [smem:[%s12268_s0 + %s11003_s22]]   ;;  %s11006_s4 = smov 8  }
   0x7   :  { %s11096_s29 = sld [smem:[%s12268_s0 + %s11004_s26]]   ;;  %s11007_s10 = smov 9  }
   0x8   :  { %s11101_s3 = sld [smem:[%s12268_s0 + %s11005_s30]]   ;;  %s11008_s15 = smov 10  }
   0x9   :  { %12290 = sst [smem:[#allocation5_spill]] %s11076_s13  ;;  %s11009_s20 = smov 11  }
   0xa   :  { %s11106_s8 = sld [smem:[%s12268_s0 + %s11006_s4]]   ;;  %s11010_s26 = smov 12  }
   0xb   :  { %12291 = sst [smem:[#allocation6_spill]] %s11086_s21  ;;  %s11011_s1 = smov 13  }
   0xc   :  { %12292 = sst [smem:[#allocation7_spill]] %s11091_s25  ;;  %s11012_s7 = smov 14  }
   0xd   :  { %12293 = sst [smem:[#allocation8_spill]] %s11096_s29  ;;  %s11014_s22 = smov 16  }
   0xe   :  { %12294 = sst [smem:[#allocation9_spill]] %s11101_s3  ;;  %s11015_s28 = smov 17  }
   0xf   :  { %s11111_s14 = sld [smem:[%s12268_s0 + %s11007_s10]]  }
  0x10   :  { %12295 = sst [smem:[#allocation10_spill]] %s11106_s8 }
  0x11   :  { %s11116_s19 = sld [smem:[%s12268_s0 + %s11008_s15]]   ;;  %s11013_s15 = smov 15  }
  0x12   :  { %s11121_s24 = sld [smem:[%s12268_s0 + %s11009_s20]]  }
  0x13   :  { %s11126_s30 = sld [smem:[%s12268_s0 + %s11010_s26]]  }
  0x14   :  { %s11131_s6 = sld [smem:[%s12268_s0 + %s11011_s1]]  }
  0x15   :  { %12296 = sst [smem:[#allocation11_spill]] %s11111_s14 }
  0x16   :  { %s11136_s12 = sld [smem:[%s12268_s0 + %s11012_s7]]   ;;  %s11016_s7 = smov 18  }
  0x17   :  { %12297 = sst [smem:[#allocation12_spill]] %s11116_s19 }
  0x18   :  { %12298 = sst [smem:[#allocation13_spill]] %s11121_s24 }
  0x19   :  { %12299 = sst [smem:[#allocation14_spill]] %s11126_s30 }
  0x1a   :  { %12300 = sst [smem:[#allocation15_spill]] %s11131_s6 }
  0x1b   :  { %s11141_s20 = sld [smem:[%s12268_s0 + %s11013_s15]]   ;;  %s11017_s15 = smov 19  }
  0x1c   :  { %12301 = sst [smem:[#allocation16_spill]] %s11136_s12 }
  0x1d   :  { %s11146_s27 = sld [smem:[%s12268_s0 + %s11014_s22]]   ;;  %s11018_s22 = smov 20  }
  0x1e   :  { %s11151_s4 = sld [smem:[%s12268_s0 + %s11015_s28]]   ;;  %s11019_s28 = smov 21  }
  0x1f   :  { %s11156_s29 = sld [smem:[%s12268_s0 + %s11016_s7]]   ;;  %s11020_s7 = smov 22  }
  0x20   :  { %s11161_s13 = sld [smem:[%s12268_s0 + %s11017_s15]]   ;;  %s11021_s15 = smov 23  }
  0x21   :  { %12302 = sst [smem:[#allocation17_spill]] %s11141_s20 }
  0x22   :  { %s11171_s20 = sld [smem:[%s12268_s0 + %s11019_s28]]   ;;  %s11023_s28 = smov 25  }
  0x23   :  { %12303 = sst [smem:[#allocation18_spill]] %s11146_s27 }
  0x24   :  { %12304 = sst [smem:[#allocation19_spill]] %s11151_s4 }
  0x25   :  { %12305 = sst [smem:[#allocation20_spill]] %s11156_s29 }
  0x26   :  { %12306 = sst [smem:[#allocation21_spill]] %s11161_s13 }
  0x27   :  { %s11166_s27 = sld [smem:[%s12268_s0 + %s11018_s22]]   ;;  %s11022_s22 = smov 24  }
  0x28   :  { %12308 = sst [smem:[#allocation23_spill]] %s11171_s20 }
  0x29   :  { %s11176_s29 = sld [smem:[%s12268_s0 + %s11020_s7]]   ;;  %s11024_s7 = smov 26  }
  0x2a   :  { %s11181_s4 = sld [smem:[%s12268_s0 + %s11021_s15]]   ;;  %s11025_s15 = smov 27  }
  0x2b   :  { %s11186_s8 = sld [smem:[%s12268_s0 + %s11022_s22]]   ;;  %s11026_s22 = smov 28  }
  0x2c   :  { %s11191_s20 = sld [smem:[%s12268_s0 + %s11023_s28]]   ;;  %s11027_s28 = smov 29  }
  0x2d   :  { %12307 = sst [smem:[#allocation22_spill]] %s11166_s27 }
  0x2e   :  { %s11211_s30 = sld [smem:[%s12268_s0 + %s11027_s28]]   ;;  %s11031_s28 = smov 33  }
  0x2f   :  { %12309 = sst [smem:[#allocation24_spill]] %s11176_s29 }
  0x30   :  { %12310 = sst [smem:[#allocation25_spill]] %s11181_s4 }
  0x31   :  { %12311 = sst [smem:[#allocation26_spill]] %s11186_s8 }
  0x32   :  { %12312 = sst [smem:[#allocation27_spill]] %s11191_s20 }
  0x33   :  { %s11196_s29 = sld [smem:[%s12268_s0 + %s11024_s7]]   ;;  %s11028_s7 = smov 30  }
  0x34   :  { %s11201_s4 = sld [smem:[%s12268_s0 + %s11025_s15]]   ;;  %s11029_s15 = smov 31  }
  0x35   :  { %s11206_s8 = sld [smem:[%s12268_s0 + %s11026_s22]]   ;;  %s11030_s22 = smov 32  }
  0x36   :  { %12316 = sst [smem:[#allocation31_spill]] %s11211_s30 }
  0x37   :  { %s11216_s25 = sld [smem:[%s12268_s0 + %s11028_s7]]   ;;  %s11032_s7 = smov 34  }
  0x38   :  { %s11221_s19 = sld [smem:[%s12268_s0 + %s11029_s15]]   ;;  %s11033_s15 = smov 35  }
  0x39   :  { %12313 = sst [smem:[#allocation28_spill]] %s11196_s29 }
  0x3a   :  { %12314 = sst [smem:[#allocation29_spill]] %s11201_s4 }
  0x3b   :  { %12315 = sst [smem:[#allocation30_spill]] %s11206_s8 }
  0x3c   :  { %s11226_s14 = sld [smem:[%s12268_s0 + %s11030_s22]]   ;;  %s11034_s22 = smov 36  }
  0x3d   :  { %12317 = sst [smem:[#allocation32_spill]] %s11216_s25 }
  0x3e   :  { %12318 = sst [smem:[#allocation33_spill]] %s11221_s19 }
  0x3f   :  { %s11231_s3 = sld [smem:[%s12268_s0 + %s11031_s28]]   ;;  %s11035_s28 = smov 37  }
  0x40   :  { %s11236_s27 = sld [smem:[%s12268_s0 + %s11032_s7]]   ;;  %s11036_s7 = smov 38  }
  0x41   :  { %s11241_s13 = sld [smem:[%s12268_s0 + %s11033_s15]]   ;;  %s11037_s15 = smov 39  }
  0x42   :  { %12319 = sst [smem:[#allocation34_spill]] %s11226_s14 }
  0x43   :  { %s11246_s12 = sld [smem:[%s12268_s0 + %s11034_s22]]   ;;  %s11038_s22 = smov 40  }
  0x44   :  { %s11251_s6 = sld [smem:[%s12268_s0 + %s11035_s28]]   ;;  %s11039_s28 = smov 41  }
  0x45   :  { %s11256_s24 = sld [smem:[%s12268_s0 + %s11036_s7]]   ;;  %s11040_s7 = smov 42  }
  0x46   :  { %s11261_s29 = sld [smem:[%s12268_s0 + %s11037_s15]]   ;;  %s11041_s15 = smov 43  }
  0x47   :  { %s11266_s25 = sld [smem:[%s12268_s0 + %s11038_s22]]   ;;  %s11042_s22 = smov 44  }
  0x48   :  { %s11271_s21 = sld [smem:[%s12268_s0 + %s11039_s28]]   ;;  %s11043_s28 = smov 45  }
  0x49   :  { %s11276_s8 = sld [smem:[%s12268_s0 + %s11040_s7]]   ;;  %s11044_s7 = smov 46  }
  0x4a   :  { %s11281_s4 = sld [smem:[%s12268_s0 + %s11041_s15]]   ;;  %s11045_s15 = smov 47  }
  0x4b   :  { %s11286_s20 = sld [smem:[%s12268_s0 + %s11042_s22]]   ;;  %s11046_s22 = smov 48  }
  0x4c   :  { %s11291_s14 = sld [smem:[%s12268_s0 + %s11043_s28]]   ;;  %s11047_s28 = smov 49  }
  0x4d   :  { %s11306_s30 = sld [smem:[%s12268_s0 + %s11046_s22]]   ;;  %s11050_s22 = smov 52  }
  0x4e   :  { %12320 = sst [smem:[#allocation35_spill]] %s11271_s21 }
  0x4f   :  { %12321 = sst [smem:[#allocation36_spill]] %s11276_s8 }
  0x50   :  { %s11296_s8 = sld [smem:[%s12268_s0 + %s11044_s7]]   ;;  %s11048_s7 = smov 50  }
  0x51   :  { %s11301_s21 = sld [smem:[%s12268_s0 + %s11045_s15]]   ;;  %s11049_s15 = smov 51  }
  0x52   :  { %s11311_s19 = sld [smem:[%s12268_s0 + %s11047_s28]]   ;;  %s11051_s28 = smov 53  }
  0x53   :  { %12324 = sst [smem:[#allocation39_spill]] %s11306_s30 }
  0x54   :  { %s11326_s30 = sld [smem:[%s12268_s0 + %s11050_s22]]  }
  0x56   :  { %12322 = sst [smem:[#allocation37_spill]] %s11296_s8 }
  0x57   :  { %12323 = sst [smem:[#allocation38_spill]] %s11301_s21 }
  0x58   :  { %12325 = sst [smem:[#allocation40_spill]] %s11311_s19 }
  0x59   :  { %s11316_s8 = sld [smem:[%s12268_s0 + %s11048_s7]]   ;;  %s11052_s7 = smov 54  }
  0x5a   :  { %s11321_s21 = sld [smem:[%s12268_s0 + %s11049_s15]]  }
  0x5b   :  { %s11331_s19 = sld [smem:[%s12268_s0 + %s11051_s28]]  }
  0x5f   :  { %12326 = sst [smem:[#allocation41_spill]] %s11316_s8 }
  0x60   :  { %s11336_s8 = sld [smem:[%s12268_s0 + %s11052_s7]]  }
  0x61   :  { %v469_v0 = vld [vmem:[%s11066_s5] sm:$0xff]  ;;  %v468_v1 = vld [vmem:[%s11326_s30 + $0x38] sm:$0xff]  ;;  %v11053_v2 = vmov 0   ;;  %v467_v3 = vld [vmem:[%s11326_s30 + $0x30] sm:$0xff] }
  0x62   :  { %10840 = vset.pattern.permute.xlu0 %v11053_v2  ;;  %9970 = vmatprep.subr.mxu0 %v468_v1  ;;  %v466_v4 = vld [vmem:[%s11326_s30 + $0x28] sm:$0xff] }
  0x63   :  { %486 = vperm.xlu0 %10840, %v469_v0   ;;  %9971 = vmatpush3.msra.mxu0 %v468_v1  ;;  %v470_v5 = vld [vmem:[%s11066_s5 + $0x8] sm:$0xff] }
  0x64   :  { %9972 = vmatprep.subr.mxu0 %v467_v3  ;;  %10841 = vset.pattern.permute.xlu1 %v11053_v2 }
  0x65   :  { %115 = vsyncpa [#allocation3], 0  ;;  %9973 = vmatpush3.msra.mxu0 %v467_v3  ;;  %v465_v6 = vld [vmem:[%s11326_s30 + $0x20] sm:$0xff]  ;;  %v408_v7 = vld [vmem:[%s11261_s29 + $0x18] sm:$0xff]  ;;  %v483_v14 = vlaneseq  ;;  %vm497_vm0 = vcmask 523264   ;;  %v11054_v17 = vmov 0.0  }
  0x66   :  { %9974 = vmatprep.subr.mxu0 %v466_v4  ;;  %9989 = vmatprep.subr.mxu1 %v408_v7  ;;  %v407_v8 = vld [vmem:[%s11261_s29 + $0x10] sm:$0xff]  ;;  %v464_v9 = vld [vmem:[%s11326_s30 + $0x18] sm:$0xff]  ;;  %v462_v11 = vld [vmem:[%s11326_s30 + $0x8] sm:$0xff]  ;;  %vm585_vm3 = vcmask 261120   ;;  %vm11055_vm4 = vmmov 0   ;;  %vm829_vm5 = vcmask 64512  }
  0x67   :  { %489 = vperm.xlu0 %10840, %v470_v5   ;;  %9975 = vmatpush3.msra.mxu0 %v466_v4  ;;  %v463_v10 = vld [vmem:[%s11326_s30 + $0x10] sm:$0xff]  ;;  %v461_v12 = vld [vmem:[%s11326_s30] sm:$0xff]  ;;  %v424_v13 = vld [vmem:[%s11266_s25 + $0x18] sm:$0xff]  ;;  %v11351_v15 = vand.u32 127, %v483_v14  ;;  %s12327_s0 = sld [smem:[#allocation37_spill]] }
  0x68   :  { %9976 = vmatprep.subr.mxu0 %v465_v6  ;;  %9990 = vmatpush3.msra.mxu1 %v408_v7  ;;  %v423_v21 = vld [vmem:[%s11266_s25 + $0x10] sm:$0xff]  ;;  %v406_v22 = vld [vmem:[%s11261_s29 + $0x8] sm:$0xff]  ;;  %v405_v24 = vld [vmem:[%s11261_s29] sm:$0xff]  ;;  %s12328_s5 = sld [smem:[#allocation33_spill]] }
  0x69   :  { %9977 = vmatpush3.msra.mxu0 %v465_v6  ;;  %9991 = vmatprep.subr.mxu1 %v407_v8  ;;  %v422_v23 = vld [vmem:[%s11266_s25 + $0x8] sm:$0xff]  ;;  %v421_v25 = vld [vmem:[%s11266_s25] sm:$0xff]  ;;  %v388_v26 = vld [vmem:[%s11251_s6 + $0x18] sm:$0xff]  ;;  %s12344_s15 = sld [smem:[#allocation21_spill]]  ;;  %vm9178_vm14 = vcmp.lt.s32.totalorder %v11351_v15, 64 }
  0x6a   :  { %9978 = vmatprep.subr.mxu0 %v464_v9  ;;  %9992 = vmatpush3.msra.mxu1 %v407_v8  ;;  %v460_v28 = vld [vmem:[%s11321_s21] sm:$0xff]  ;;  %v387_v32 = vld [vmem:[%s11251_s6 + $0x10] sm:$0xff]  ;;  %v386_v33 = vld [vmem:[%s11251_s6 + $0x8] sm:$0xff]  ;;  %s12345_s16 = sld [smem:[#allocation22_spill]] }
  0x6b   :  { %9979 = vmatpush3.msra.mxu0 %v464_v9  ;;  %9993 = vmatprep.subr.mxu1 %v406_v22  ;;  %v385_v34 = vld [vmem:[%s11251_s6] sm:$0xff]  ;;  %v11405_v51 = vld [vmem:[%s11081_s17 + $0x8] sm:$0xff]  ;;  %v392_v8 = vld [vmem:[%s11251_s6 + $0x38] sm:$0xff]  ;;  %s12346_s18 = sld [smem:[#allocation9_spill]] }
  0x6c   :  { %9980 = vmatprep.subr.mxu0 %v463_v10  ;;  %9994 = vmatpush3.msra.mxu1 %v406_v22  ;;  %v9334_v37 = vld [vmem:[%s11246_s12] ss:$0 sm:$0xff]  ;;  %vm985_vm6 = vcmp.gt.f32.partialorder %v11405_v51, 0.5  ;;  %v412_v9 = vld [vmem:[%s11261_s29 + $0x38] sm:$0xff]  ;;  %v391_v14 = vld [vmem:[%s11251_s6 + $0x30] sm:$0xff]  ;;  %s12347_s22 = sld [smem:[#allocation11_spill]] }
  0x6d   :  { %9981 = vmatpush3.msra.mxu0 %v463_v10  ;;  %9995 = vmatprep.subr.mxu1 %v405_v24  ;;  %v9331_v42 = vld [vmem:[%s11231_s3] ss:$0 sm:$0xff]  ;;  %v410_v22 = vld [vmem:[%s11261_s29 + $0x28] sm:$0xff]  ;;  %s12348_s23 = sld [smem:[#allocation12_spill]] }
  0x6e   :  { %9982 = vmatprep.subr.mxu0 %v462_v11  ;;  %9996 = vmatpush3.msra.mxu1 %v405_v24  ;;  %v9328_v45 = vld [vmem:[%s11241_s13] ss:$0 sm:$0xff]  ;;  %v428_v24 = vld [vmem:[%s11266_s25 + $0x38] sm:$0xff]  ;;  %s12349_s26 = sld [smem:[#allocation7_spill]] }
  0x6f   :  { %9983 = vmatpush3.msra.mxu0 %v462_v11  ;;  %10000 = vmatprep.subr.mxu1 %v388_v26  ;;  %v11408_v53 = vld [vmem:[%s11081_s17] sm:$0xff]  ;;  %s12331_s17 = sld [smem:[#allocation34_spill]] }
  0x70   :  { %9984 = vmatprep.subr.mxu0 %v461_v12  ;;  %vm984_vm7 = vcmp.gt.f32.partialorder %v11408_v53, 0.5  ;;  %s12350_s28 = sld [smem:[#allocation14_spill]] }
  0x71   :  { %9985 = vmatpush3.msra.mxu0 %v461_v12  ;;  %s12351_s1 = sld [smem:[#allocation10_spill]] }
  0x72   :  { %10011 = vmatprep.subr.mxu0 %v424_v13  ;;  %s12352_s2 = sld [smem:[#allocation19_spill]] }
  0x73   :  { %s12353_s7 = sld [smem:[#allocation20_spill]] }
  0x74   :  { %s12354_s10 = sld [smem:[#allocation23_spill]] }
  0x75   :  { %s12355_s11 = sld [smem:[#allocation24_spill]] }
  0xde   :  { %v487_v16 = vpop.permute.xlu0 %486 }
  0xdf   :  { %vm491_vm1 = vcmp.eq.s32.totalorder %v11351_v15, %v487_v16 }
  0xe0   :  { %v9324_v18 = vsel %vm491_vm1, 1.0, %v11054_v17  ;;  %vm9219_vm1 = vcmask 7168  }
  0xe1   :  { %9986 = vmatprep.mubr.msk.f32.mxu0 %vm497_vm0, %v9324_v18  ;;  %v390_v18 = vld [vmem:[%s11251_s6 + $0x28] sm:$0xff] }
  0xe2   :  { %v490_v19 = vpop.permute.xlu0 %489 }
  0xe3   :  { %vm492_vm2 = vcmp.eq.s32.totalorder %v11351_v15, %v490_v19 }
  0xe4   :  { %v9325_v20 = vsel %vm492_vm2, 1.0, %v11054_v17  ;;  %vm9250_vm2 = vcmask 0  }
  0xe5   :  { %9987 = vmatmul.mubr.msk.f32.vlgmr.msra.gmra.mxu0 %vm497_vm0, %v9325_v20  ;;  %v411_v20 = vld [vmem:[%s11261_s29 + $0x30] sm:$0xff] }
  0xe6   :  { %10012 = vmatpush3.msra.mxu0 %v424_v13 }
  0xe7   :  { %10013 = vmatprep.subr.mxu0 %v423_v21 }
  0xe8   :  { %10014 = vmatpush3.msra.mxu0 %v423_v21  ;;  %v389_v21 = vld [vmem:[%s11251_s6 + $0x20] sm:$0xff] }
  0xe9   :  { %10015 = vmatprep.subr.mxu0 %v422_v23 }
  0xea   :  { %10016 = vmatpush3.msra.mxu0 %v422_v23  ;;  %v409_v23 = vld [vmem:[%s11261_s29 + $0x20] sm:$0xff] }
  0xeb   :  { %10017 = vmatprep.subr.mxu0 %v421_v25 }
  0xec   :  { %10018 = vmatpush3.msra.mxu0 %v421_v25  ;;  %v427_v25 = vld [vmem:[%s11266_s25 + $0x30] sm:$0xff] }
  0xed   :  { %10032 = vmatprep.subr.mxu0 %v11054_v17 }
 0x1a5   :  { %v9988_v27 = vpop.f32.mrf.mxu0 }
 0x1a6   :  { %v11369_v31 = vadd.f32 %v9988_v27, %v460_v28  ;;  %v425_v27 = vld [vmem:[%s11266_s25 + $0x20] sm:$0xff] }
 0x1a7   :  { %v570_v29 = vpop.f32.mrf.mxu0 }
 0x1a8   :  { %v11367_v30 = vadd.f32 %v570_v29, %v460_v28 }
 0x1aa   :  { %9997 = vmatprep.mubr.msk.f32.mxu1 %vm585_vm3, %v11367_v30  ;;  %10019 = vmatprep.mubr.msk.f32.mxu0 %vm585_vm3, %v11367_v30 }
 0x1ab   :  { %9998 = vmatmul.mubr.msk.f32.vlgmr.msra.gmra.mxu1 %vm585_vm3, %v11369_v31  ;;  %10020 = vmatmul.mubr.msk.f32.vlgmr.msra.gmra.mxu0 %vm585_vm3, %v11369_v31 }
 0x1ac   :  { %10001 = vmatpush3.msra.mxu1 %v388_v26  ;;  %10008 = vmatprep.mubr.msk.f32.mxu1 %vm585_vm3, %v11367_v30  ;;  %v426_v26 = vld [vmem:[%s11266_s25 + $0x28] sm:$0xff] }
 0x1ad   :  { %10002 = vmatprep.subr.mxu1 %v387_v32  ;;  %10034 = vmatprep.mubr.msk.f32.mxu0 %vm11055_vm4, %v11054_v17 }
 0x1ae   :  { %10003 = vmatpush3.msra.mxu1 %v387_v32 }
 0x1af   :  { %10004 = vmatprep.subr.mxu1 %v386_v33 }
 0x1b0   :  { %10005 = vmatpush3.msra.mxu1 %v386_v33 }
 0x1b1   :  { %10006 = vmatprep.subr.mxu1 %v385_v34 }
 0x1b2   :  { %10007 = vmatpush3.msra.mxu1 %v385_v34 }
 0x1b3   :  { %10009 = vmatmul.mubr.msk.f32.vlgmr.msra.gmra.mxu1 %vm585_vm3, %v11369_v31  ;;  %10022 = vmatprep.subr.mxu1 %v11054_v17 }
 0x1b4   :  { %10024 = vmatprep.mubr.msk.f32.mxu1 %vm11055_vm4, %v11054_v17 }
 0x26b   :  { %v10021_v35 = vpop.f32.mrf.mxu0  ;;  %v9999_v36 = vpop.f32.mrf.mxu1 }
 0x26c   :  { %v664_v48 = vadd.f32 %v9999_v36, %v9328_v45  ;;  %v826_v49 = vadd.f32 %v10021_v35, %v9334_v37  ;;  %v9346_v35 = vld [vmem:[%s11231_s3 + $0x1] ss:$0 sm:$0xff] }
 0x26d   :  { %v820_v38 = vpop.f32.mrf.mxu0  ;;  %v658_v40 = vpop.f32.mrf.mxu1 }
 0x26e   :  { %v821_v39 = vadd.f32 %v9334_v37, %v820_v38  ;;  %v659_v46 = vadd.f32 %v9328_v45, %v658_v40 }
 0x270   :  { %10033 = vmatpush3.msra.mxu0 %v821_v39  ;;  %v9343_v39 = vld [vmem:[%s11241_s13 + $0x1] ss:$0 sm:$0xff] }
 0x271   :  { %10042 = vmatprep.subr.mxu0 %v412_v9 }
 0x273   :  { %v10010_v41 = vpop.f32.mrf.mxu1 }
 0x274   :  { %v745_v47 = vadd.f32 %v10010_v41, %v9331_v42 }
 0x275   :  { %v739_v43 = vpop.f32.mrf.mxu1 }
 0x276   :  { %v740_v44 = vadd.f32 %v9331_v42, %v739_v43  ;;  %v9349_v43 = vld [vmem:[%s11246_s12 + $0x1] ss:$0 sm:$0xff] }
 0x278   :  { %10023 = vmatpush3.xpose.msk.msra.mxu1 %vm829_vm5, %v740_v44 }
 0x279   :  { %10027 = vmatprep.subr.mxu1 %v11054_v17 }
 0x27b   :  { %10025 = vmatmul.mubr.msk.f32.vlgmr.msra.gmra.mxu1 %vm829_vm5, %v659_v46 }
 0x27c   :  { %10028 = vmatpush3.xpose.msk.msra.mxu1 %vm829_vm5, %v745_v47  ;;  %10029 = vmatprep.mubr.msk.f32.mxu1 %vm11055_vm4, %v11054_v17 }
 0x27d   :  { %10037 = vmatprep.subr.mxu1 %v11054_v17 }
 0x27f   :  { %10030 = vmatmul.mubr.msk.f32.vlgmr.msra.gmra.mxu1 %vm829_vm5, %v664_v48 }
 0x280   :  { %10038 = vmatpush3.msra.mxu1 %v826_v49  ;;  %10039 = vmatprep.mubr.msk.f32.mxu1 %vm11055_vm4, %v11054_v17 }
 0x281   :  { %10053 = vmatprep.subr.mxu1 %v392_v8 }
 0x33b   :  { %v902_v50 = vpop.f32.mrf.mxu1 }
 0x33c   :  { %v982_v55 = vmul.f32 0.35355338, %v902_v50 }
 0x33d   :  { %v10026_v52 = vpop.f32.mrf.mxu1 }
 0x33e   :  { %v986_v60 = vsel %vm984_vm7, %v982_v55, -1e+09 }
 0x33f   :  { %v978_v54 = vpop.f32.mrf.mxu1  ;;  %v988_v61 = vsel %vm829_vm5, %v986_v60, -inf }
 0x340   :  { %v983_v56 = vmul.f32 0.35355338, %v978_v54 }
 0x341   :  { %v10031_v57 = vpop.f32.mrf.mxu1 }
 0x342   :  { %v987_v58 = vsel %vm985_vm6, %v983_v56, -1e+09 }
 0x343   :  { %v991_v59 = vsel %vm829_vm5, %v987_v58, -inf }
 0x344   :  { %992 = vmax.xlane.f32.xlu1 %v991_v59 }
 0x348   :  { %989 = vmax.xlane.f32.xlu1 %v988_v61 }
 0x3cd   :  { %v993_v62 = vpop.xlane.xlu1 %992 }
 0x3ce   :  { %v995_v63 = vsub.f32 %v987_v58, %v993_v62 }
 0x3d0   :  { %v998_v0 = vmul.f32 1.442695, %v995_v63 }
 0x3d1   :  { %v990_v1 = vpop.xlane.xlu1 %989 }
 0x3d2   :  { %10842 = vpow2.f32 %v998_v0  ;;  %v994_v2 = vsub.f32 %v986_v60, %v990_v1 }
 0x3d4   :  { %v996_v3 = vmul.f32 1.442695, %v994_v2 }
 0x3d6   :  { %10844 = vpow2.f32 %v996_v3 }
 0x3df   :  { %v10843_v4 = vpop.eup %10842 }
 0x3e0   :  { %v1003_v5 = vsel %vm829_vm5, %v10843_v4, 0.0 }
 0x3e1   :  { %1004 = vadd.xlane.f32.xlu0 %v1003_v5 }
 0x3e3   :  { %v10845_v6 = vpop.eup %10844 }
 0x3e4   :  { %v1000_v7 = vsel %vm829_vm5, %v10845_v6, 0.0 }
 0x3e5   :  { %1001 = vadd.xlane.f32.xlu1 %v1000_v7  ;;  %v401_v7 = vld [vmem:[%s11256_s24] sm:$0xff] }
 0x46a   :  { %v1005_v10 = vpop.xlane.xlu0 %1004 }
 0x46b   :  { %10846 = vrcp.f32 %v1005_v10 }
 0x46e   :  { %v1002_v11 = vpop.xlane.xlu1 %1001 }
 0x46f   :  { %10848 = vrcp.f32 %v1002_v11 }
 0x478   :  { %v10847_v12 = vpop.eup %10846 }
 0x479   :  { %v1009_v13 = vmul.f32 %v10847_v12, %v10843_v4 }
 0x47b   :  { %10040 = vmatmul.mubr.msk.f32.vlgmr.msra.gmra.mxu1 %vm829_vm5, %v1009_v13 }
 0x47c   :  { %v10849_v16 = vpop.eup %10848  ;;  %10054 = vmatpush3.msra.mxu1 %v392_v8  ;;  %10061 = vmatprep.mubr.msk.f32.mxu1 %vm585_vm3, %v11367_v30 }
 0x47d   :  { %10055 = vmatprep.subr.mxu1 %v391_v14  ;;  %v1007_v19 = vmul.f32 %v10849_v16, %v10845_v6  ;;  %v395_v16 = vld [vmem:[%s11251_s6 + $0x50] sm:$0xff] }
 0x47e   :  { %10056 = vmatpush3.msra.mxu1 %v391_v14  ;;  %v396_v14 = vld [vmem:[%s11251_s6 + $0x58] sm:$0xff] }
 0x47f   :  { %10057 = vmatprep.subr.mxu1 %v390_v18  ;;  %10035 = vmatmul.mubr.msk.f32.vlgmr.msra.gmra.mxu0 %vm829_vm5, %v1007_v19  ;;  %v393_v19 = vld [vmem:[%s11251_s6 + $0x40] sm:$0xff] }
 0x480   :  { %10043 = vmatpush3.msra.mxu0 %v412_v9  ;;  %10058 = vmatpush3.msra.mxu1 %v390_v18  ;;  %v394_v18 = vld [vmem:[%s11251_s6 + $0x48] sm:$0xff] }
 0x481   :  { %10044 = vmatprep.subr.mxu0 %v411_v20  ;;  %10050 = vmatprep.mubr.msk.f32.mxu0 %vm585_vm3, %v11367_v30 }
 0x482   :  { %10059 = vmatprep.subr.mxu1 %v389_v21  ;;  %10045 = vmatpush3.msra.mxu0 %v411_v20  ;;  %v402_v20 = vld [vmem:[%s11256_s24 + $0x8] sm:$0xff] }
 0x483   :  { %10060 = vmatpush3.msra.mxu1 %v389_v21  ;;  %10046 = vmatprep.subr.mxu0 %v410_v22  ;;  %v416_v21 = vld [vmem:[%s11261_s29 + $0x58] sm:$0xff] }
 0x484   :  { %10062 = vmatmul.mubr.msk.f32.vlgmr.msra.gmra.mxu1 %vm585_vm3, %v11369_v31  ;;  %10047 = vmatpush3.msra.mxu0 %v410_v22 }
 0x485   :  { %10048 = vmatprep.subr.mxu0 %v409_v23  ;;  %10075 = vmatprep.subr.mxu1 %v11054_v17 }
 0x486   :  { %10049 = vmatpush3.msra.mxu0 %v409_v23  ;;  %10077 = vmatprep.mubr.msk.f32.mxu1 %vm11055_vm4, %v11054_v17 }
 0x487   :  { %10051 = vmatmul.mubr.msk.f32.vlgmr.msra.gmra.mxu0 %vm585_vm3, %v11369_v31  ;;  %10064 = vmatprep.subr.mxu0 %v428_v24 }
 0x488   :  { %10065 = vmatpush3.msra.mxu0 %v428_v24  ;;  %10072 = vmatprep.mubr.msk.f32.mxu0 %vm585_vm3, %v11367_v30 }
 0x489   :  { %10066 = vmatprep.subr.mxu0 %v427_v25 }
 0x48a   :  { %10067 = vmatpush3.msra.mxu0 %v427_v25  ;;  %v415_v25 = vld [vmem:[%s11261_s29 + $0x50] sm:$0xff] }
 0x48b   :  { %10068 = vmatprep.subr.mxu0 %v426_v26 }
 0x48c   :  { %10069 = vmatpush3.msra.mxu0 %v426_v26 }
 0x48d   :  { %10070 = vmatprep.subr.mxu0 %v425_v27 }
 0x48e   :  { %10071 = vmatpush3.msra.mxu0 %v425_v27  ;;  %v414_v27 = vld [vmem:[%s11261_s29 + $0x48] sm:$0xff] }
 0x48f   :  { %10073 = vmatmul.mubr.msk.f32.vlgmr.msra.gmra.mxu0 %vm585_vm3, %v11369_v31  ;;  %10085 = vmatprep.subr.mxu0 %v11054_v17 }
 0x490   :  { %10087 = vmatprep.mubr.msk.f32.mxu0 %vm11055_vm4, %v11054_v17 }
 0x53b   :  { %v11452_v28 = vpop.f32.mrf.mxu1 }
 0x53d   :  { %v10041_v29 = vpop.f32.mrf.mxu1 }
 0x53f   :  { %v11454_v32 = vpop.f32.mrf.mxu0 }
 0x541   :  { %v10036_v33 = vpop.f32.mrf.mxu0 }
 0x542   :  { %v431_v33 = vld [vmem:[%s11266_s25 + $0x50] sm:$0xff] }
 0x544   :  { %v10063_v34 = vpop.f32.mrf.mxu1 }
 0x545   :  { %v1315_v42 = vadd.f32 %v10063_v34, %v9346_v35 }
 0x546   :  { %v1309_v36 = vpop.f32.mrf.mxu1 }
 0x547   :  { %v1310_v37 = vadd.f32 %v9346_v35, %v1309_v36  ;;  %v10052_v38 = vpop.f32.mrf.mxu0  ;;  %v9365_v35 = vld [vmem:[%s11231_s3 + $0x2] ss:$0 sm:$0xff]  ;;  %v430_v36 = vld [vmem:[%s11266_s25 + $0x48] sm:$0xff] }
 0x548   :  { %v1234_v44 = vadd.f32 %v10052_v38, %v9343_v39  ;;  %v429_v38 = vld [vmem:[%s11266_s25 + $0x40] sm:$0xff] }
 0x549   :  { %10076 = vmatpush3.xpose.msk.msra.mxu1 %vm829_vm5, %v1310_v37  ;;  %v1228_v40 = vpop.f32.mrf.mxu0 }
 0x54a   :  { %v1229_v41 = vadd.f32 %v9343_v39, %v1228_v40  ;;  %10080 = vmatprep.subr.mxu1 %v11054_v17 }
 0x54c   :  { %10078 = vmatmul.mubr.msk.f32.vlgmr.msra.gmra.mxu1 %vm829_vm5, %v1229_v41 }
 0x54d   :  { %10081 = vmatpush3.xpose.msk.msra.mxu1 %vm829_vm5, %v1315_v42  ;;  %10082 = vmatprep.mubr.msk.f32.mxu1 %vm11055_vm4, %v11054_v17 }
 0x54e   :  { %10090 = vmatprep.subr.mxu1 %v11054_v17 }
 0x54f   :  { %v10074_v45 = vpop.f32.mrf.mxu0 }
 0x550   :  { %v1396_v46 = vadd.f32 %v10074_v45, %v9349_v43  ;;  %10083 = vmatmul.mubr.msk.f32.vlgmr.msra.gmra.mxu1 %vm829_vm5, %v1234_v44  ;;  %v9362_v45 = vld [vmem:[%s11241_s13 + $0x2] ss:$0 sm:$0xff] }
 0x551   :  { %v1390_v47 = vpop.f32.mrf.mxu0  ;;  %10092 = vmatprep.mubr.msk.f32.mxu1 %vm11055_vm4, %v11054_v17 }
 0x552   :  { %v1391_v48 = vadd.f32 %v9349_v43, %v1390_v47  ;;  %10091 = vmatpush3.msra.mxu1 %v1396_v46 }
 0x553   :  { %10100 = vmatprep.subr.mxu1 %v401_v7 }
 0x554   :  { %10086 = vmatpush3.msra.mxu0 %v1391_v48  ;;  %v9368_v48 = vld [vmem:[%s11246_s12 + $0x2] ss:$0 sm:$0xff] }
 0x555   :  { %10095 = vmatprep.subr.mxu0 %v402_v20 }
 0x60c   :  { %v1471_v49 = vpop.f32.mrf.mxu1 }
 0x60d   :  { %v1551_v50 = vmul.f32 0.35355338, %v1471_v49 }
 0x60e   :  { %v10079_v52 = vpop.f32.mrf.mxu1 }
 0x60f   :  { %v1553_v54 = vsel %vm984_vm7, %v1551_v50, -1e+09 }
 0x610   :  { %v1547_v55 = vpop.f32.mrf.mxu1  ;;  %v1555_v56 = vsel %vm829_vm5, %v1553_v54, -inf }
 0x611   :  { %v1552_v57 = vmul.f32 0.35355338, %v1547_v55  ;;  %1556 = vmax.xlane.f32.xlu1 %v1555_v56 }
 0x612   :  { %v10084_v58 = vpop.f32.mrf.mxu1 }
 0x613   :  { %v1554_v59 = vsel %vm985_vm6, %v1552_v57, -1e+09 }
 0x614   :  { %v1558_v60 = vsel %vm829_vm5, %v1554_v59, -inf }
 0x615   :  { %1559 = vmax.xlane.f32.xlu1 %v1558_v60 }
 0x69a   :  { %v1557_v61 = vpop.xlane.xlu1 %1556 }
 0x69b   :  { %v1561_v62 = vsub.f32 %v1553_v54, %v1557_v61 }
 0x69d   :  { %v1563_v63 = vmul.f32 1.442695, %v1561_v62 }
 0x69e   :  { %v1560_v0 = vpop.xlane.xlu1 %1559 }
 0x69f   :  { %10850 = vpow2.f32 %v1563_v63  ;;  %v1562_v1 = vsub.f32 %v1554_v59, %v1560_v0 }
 0x6a1   :  { %v1565_v2 = vmul.f32 1.442695, %v1562_v1 }
 0x6a3   :  { %10852 = vpow2.f32 %v1565_v2 }
 0x6ac   :  { %v10851_v3 = vpop.eup %10850 }
 0x6ad   :  { %v1567_v4 = vsel %vm829_vm5, %v10851_v3, 0.0 }
 0x6ae   :  { %1568 = vadd.xlane.f32.xlu1 %v1567_v4 }
 0x6b0   :  { %v10853_v5 = vpop.eup %10852 }
 0x6b1   :  { %v1570_v6 = vsel %vm829_vm5, %v10853_v5, 0.0 }
 0x6b2   :  { %1571 = vadd.xlane.f32.xlu1 %v1570_v6 }
 0x737   :  { %v1569_v8 = vpop.xlane.xlu1 %1568 }
 0x738   :  { %10854 = vrcp.f32 %v1569_v8 }
 0x73b   :  { %v1572_v9 = vpop.xlane.xlu1 %1571 }
 0x73c   :  { %10856 = vrcp.f32 %v1572_v9 }
 0x745   :  { %v10855_v10 = vpop.eup %10854 }
 0x746   :  { %v1574_v11 = vmul.f32 %v10855_v10, %v10851_v3 }
 0x748   :  { %10088 = vmatmul.mubr.msk.f32.vlgmr.msra.gmra.mxu0 %vm829_vm5, %v1574_v11 }
 0x749   :  { %v10857_v12 = vpop.eup %10856  ;;  %10096 = vmatpush3.msra.mxu0 %v402_v20 }
 0x74a   :  { %v1576_v13 = vmul.f32 %v10857_v12, %v10853_v5  ;;  %10105 = vmatprep.subr.mxu0 %v416_v21  ;;  %v420_v12 = vld [vmem:[%s11261_s29 + $0x78] sm:$0xff] }
 0x74c   :  { %10093 = vmatmul.mubr.msk.f32.vlgmr.msra.gmra.mxu1 %vm829_vm5, %v1576_v13 }
 0x74d   :  { %10102 = vmatprep.mubr.msk.f32.mxu1 %vm829_vm5, %v11454_v32  ;;  %10101 = vmatpush3.msra.mxu1 %v401_v7  ;;  %v432_v32 = vld [vmem:[%s11266_s25 + $0x58] sm:$0xff] }
 0x74e   :  { %10116 = vmatprep.subr.mxu1 %v396_v14 }
 0x750   :  { %10103 = vmatmul.mubr.msk.f32.vlgmr.msra.gmra.mxu1 %vm829_vm5, %v11452_v28  ;;  %v413_v28 = vld [vmem:[%s11261_s29 + $0x40] sm:$0xff] }
 0x751   :  { %10117 = vmatpush3.msra.mxu1 %v396_v14  ;;  %10124 = vmatprep.mubr.msk.f32.mxu1 %vm585_vm3, %v11367_v30 }
 0x752   :  { %10118 = vmatprep.subr.mxu1 %v395_v16 }
 0x753   :  { %10119 = vmatpush3.msra.mxu1 %v395_v16 }
 0x754   :  { %10120 = vmatprep.subr.mxu1 %v394_v18 }
 0x755   :  { %10121 = vmatpush3.msra.mxu1 %v394_v18 }
 0x756   :  { %10122 = vmatprep.subr.mxu1 %v393_v19 }
 0x757   :  { %10123 = vmatpush3.msra.mxu1 %v393_v19 }
 0x758   :  { %10125 = vmatmul.mubr.msk.f32.vlgmr.msra.gmra.mxu1 %vm585_vm3, %v11369_v31  ;;  %10138 = vmatprep.subr.mxu1 %v11054_v17 }
 0x759   :  { %10140 = vmatprep.mubr.msk.f32.mxu1 %vm11055_vm4, %v11054_v17 }
 0x808   :  { %v1646_v22 = vpop.f32.mrf.mxu0 }
 0x809   :  { %10097 = vmatprep.mubr.msk.f32.mxu0 %vm829_vm5, %v1646_v22  ;;  %v418_v22 = vld [vmem:[%s11261_s29 + $0x68] sm:$0xff] }
 0x80a   :  { %v10089_v23 = vpop.f32.mrf.mxu0 }
 0x80b   :  { %v417_v23 = vld [vmem:[%s11261_s29 + $0x60] sm:$0xff] }
 0x80c   :  { %v1719_v24 = vpop.f32.mrf.mxu1 }
 0x80d   :  { %10098 = vmatmul.mubr.msk.f32.vlgmr.msra.gmra.mxu0 %vm829_vm5, %v1719_v24  ;;  %v436_v24 = vld [vmem:[%s11266_s25 + $0x78] sm:$0xff] }
 0x80e   :  { %10106 = vmatpush3.msra.mxu0 %v416_v21  ;;  %v10094_v26 = vpop.f32.mrf.mxu1  ;;  %10113 = vmatprep.mubr.msk.f32.mxu0 %vm585_vm3, %v11367_v30  ;;  %v419_v21 = vld [vmem:[%s11261_s29 + $0x70] sm:$0xff]  ;;  %s12334_s29 = sld [smem:[#allocation30_spill]] }
 0x80f   :  { %10107 = vmatprep.subr.mxu0 %v415_v25  ;;  %v434_v26 = vld [vmem:[%s11266_s25 + $0x68] sm:$0xff] }
 0x810   :  { %10108 = vmatpush3.msra.mxu0 %v415_v25  ;;  %v11504_v29 = vpop.f32.mrf.mxu1  ;;  %v435_v25 = vld [vmem:[%s11266_s25 + $0x70] sm:$0xff] }
 0x811   :  { %10109 = vmatprep.subr.mxu0 %v414_v27 }
 0x812   :  { %10110 = vmatpush3.msra.mxu0 %v414_v27  ;;  %v11510_v34 = vpop.f32.mrf.mxu1  ;;  %v433_v27 = vld [vmem:[%s11266_s25 + $0x60] sm:$0xff]  ;;  %s12333_s25 = sld [smem:[#allocation29_spill]] }
 0x813   :  { %10111 = vmatprep.subr.mxu0 %v413_v28 }
 0x814   :  { %10112 = vmatpush3.msra.mxu0 %v413_v28  ;;  %v403_v28 = vld [vmem:[%s11256_s24 + $0x10] sm:$0xff] }
 0x815   :  { %10114 = vmatmul.mubr.msk.f32.vlgmr.msra.gmra.mxu0 %vm585_vm3, %v11369_v31  ;;  %10127 = vmatprep.subr.mxu0 %v432_v32 }
 0x816   :  { %10128 = vmatpush3.msra.mxu0 %v432_v32  ;;  %10135 = vmatprep.mubr.msk.f32.mxu0 %vm585_vm3, %v11367_v30  ;;  %v400_v32 = vld [vmem:[%s11251_s6 + $0x78] sm:$0xff] }
 0x817   :  { %10129 = vmatprep.subr.mxu0 %v431_v33 }
 0x818   :  { %v10126_v37 = vpop.f32.mrf.mxu1  ;;  %10130 = vmatpush3.msra.mxu0 %v431_v33 }
 0x819   :  { %v2044_v39 = vadd.f32 %v10126_v37, %v9365_v35  ;;  %10131 = vmatprep.subr.mxu0 %v430_v36  ;;  %v399_v37 = vld [vmem:[%s11251_s6 + $0x70] sm:$0xff] }
 0x81a   :  { %v2038_v40 = vpop.f32.mrf.mxu1  ;;  %10132 = vmatpush3.msra.mxu0 %v430_v36 }
 0x81b   :  { %v2039_v41 = vadd.f32 %v9365_v35, %v2038_v40  ;;  %10133 = vmatprep.subr.mxu0 %v429_v38  ;;  %v397_v40 = vld [vmem:[%s11251_s6 + $0x60] sm:$0xff] }
 0x81c   :  { %10134 = vmatpush3.msra.mxu0 %v429_v38 }
 0x81d   :  { %10136 = vmatmul.mubr.msk.f32.vlgmr.msra.gmra.mxu0 %vm585_vm3, %v11369_v31  ;;  %10139 = vmatpush3.xpose.msk.msra.mxu1 %vm829_vm5, %v2039_v41 }
 0x81e   :  { %10143 = vmatprep.subr.mxu1 %v11054_v17  ;;  %10148 = vmatprep.subr.mxu0 %v11054_v17 }
 0x81f   :  { %10150 = vmatprep.mubr.msk.f32.mxu0 %vm11055_vm4, %v11054_v17 }
 0x8cd   :  { %v11524_v42 = vpop.f32.mrf.mxu0 }
 0x8cf   :  { %v11526_v43 = vpop.f32.mrf.mxu0 }
 0x8d5   :  { %v10115_v44 = vpop.f32.mrf.mxu0 }
 0x8d6   :  { %v1963_v49 = vadd.f32 %v10115_v44, %v9362_v45 }
 0x8d7   :  { %v1957_v46 = vpop.f32.mrf.mxu0 }
 0x8d8   :  { %v1958_v47 = vadd.f32 %v9362_v45, %v1957_v46  ;;  %v9385_v45 = vld [vmem:[%s11246_s12 + $0x3] ss:$0 sm:$0xff]  ;;  %s12340_s12 = sld [smem:[#allocation38_spill]] }
 0x8da   :  { %10141 = vmatmul.mubr.msk.f32.vlgmr.msra.gmra.mxu1 %vm829_vm5, %v1958_v47 }
 0x8db   :  { %10144 = vmatpush3.xpose.msk.msra.mxu1 %vm829_vm5, %v2044_v39  ;;  %10145 = vmatprep.mubr.msk.f32.mxu1 %vm11055_vm4, %v11054_v17  ;;  %v398_v39 = vld [vmem:[%s11251_s6 + $0x68] sm:$0xff]  ;;  %s12339_s6 = sld [smem:[#allocation13_spill]] }
 0x8dc   :  { %10153 = vmatprep.subr.mxu1 %v11054_v17 }
 0x8dd   :  { %v10137_v50 = vpop.f32.mrf.mxu0 }
 0x8de   :  { %v2125_v52 = vadd.f32 %v10137_v50, %v9368_v48  ;;  %10146 = vmatmul.mubr.msk.f32.vlgmr.msra.gmra.mxu1 %vm829_vm5, %v1963_v49  ;;  %v1882_v50 = vadd.f32 %v11504_v29, %v11524_v42 }
 0x8df   :  { %v2119_v54 = vpop.f32.mrf.mxu0  ;;  %10155 = vmatprep.mubr.msk.f32.mxu1 %vm11055_vm4, %v11054_v17 }
 0x8e0   :  { %v2120_v55 = vadd.f32 %v9368_v48, %v2119_v54  ;;  %10154 = vmatpush3.msra.mxu1 %v2125_v52  ;;  %v1877_v54 = vadd.f32 %v11510_v34, %v11526_v43 }
 0x8e1   :  { %10163 = vmatprep.subr.mxu1 %v420_v12 }
 0x8e2   :  { %10149 = vmatpush3.msra.mxu0 %v2120_v55 }
 0x8e3   :  { %10158 = vmatprep.subr.mxu0 %v403_v28 }
 0x99a   :  { %v2200_v56 = vpop.f32.mrf.mxu1 }
 0x99b   :  { %v2280_v57 = vmul.f32 0.35355338, %v2200_v56 }
 0x99c   :  { %v10142_v58 = vpop.f32.mrf.mxu1 }
 0x99d   :  { %v2282_v59 = vsel %vm984_vm7, %v2280_v57, -1e+09 }
 0x99e   :  { %v2276_v60 = vpop.f32.mrf.mxu1  ;;  %v2284_v61 = vsel %vm829_vm5, %v2282_v59, -inf }
 0x99f   :  { %v2281_v62 = vmul.f32 0.35355338, %v2276_v60  ;;  %2285 = vmax.xlane.f32.xlu1 %v2284_v61 }
 0x9a0   :  { %v10147_v63 = vpop.f32.mrf.mxu1 }
 0x9a1   :  { %v2283_v0 = vsel %vm985_vm6, %v2281_v62, -1e+09  ;;  %v9379_v62 = vld [vmem:[%s11241_s13 + $0x3] ss:$0 sm:$0xff]  ;;  %s12330_s13 = sld [smem:[#allocation35_spill]] }
 0x9a2   :  { %v2287_v1 = vsel %vm829_vm5, %v2283_v0, -inf }
 0x9a3   :  { %2288 = vmax.xlane.f32.xlu1 %v2287_v1 }
 0xa28   :  { %v2286_v2 = vpop.xlane.xlu1 %2285 }
 0xa29   :  { %v2290_v3 = vsub.f32 %v2282_v59, %v2286_v2  ;;  %v9382_v59 = vld [vmem:[%s11231_s3 + $0x3] ss:$0 sm:$0xff]  ;;  %s12335_s3 = sld [smem:[#allocation6_spill]] }
 0xa2b   :  { %v2292_v4 = vmul.f32 1.442695, %v2290_v3 }
 0xa2c   :  { %v2289_v5 = vpop.xlane.xlu1 %2288 }
 0xa2d   :  { %10858 = vpow2.f32 %v2292_v4  ;;  %v2291_v6 = vsub.f32 %v2283_v0, %v2289_v5 }
 0xa2f   :  { %v2294_v7 = vmul.f32 1.442695, %v2291_v6 }
 0xa31   :  { %10860 = vpow2.f32 %v2294_v7 }
 0xa3a   :  { %v10859_v8 = vpop.eup %10858 }
 0xa3b   :  { %v2296_v9 = vsel %vm829_vm5, %v10859_v8, 0.0 }
 0xa3c   :  { %2297 = vadd.xlane.f32.xlu1 %v2296_v9 }
 0xa3e   :  { %v10861_v10 = vpop.eup %10860 }
 0xa3f   :  { %v2299_v11 = vsel %vm829_vm5, %v10861_v10, 0.0 }
 0xa40   :  { %2300 = vadd.xlane.f32.xlu0 %v2299_v11 }
 0xac5   :  { %v2298_v13 = vpop.xlane.xlu1 %2297 }
 0xac6   :  { %10862 = vrcp.f32 %v2298_v13 }
 0xac9   :  { %v2301_v14 = vpop.xlane.xlu0 %2300 }
 0xaca   :  { %10864 = vrcp.f32 %v2301_v14 }
 0xad3   :  { %v10863_v16 = vpop.eup %10862 }
 0xad4   :  { %v2303_v18 = vmul.f32 %v10863_v16, %v10859_v8 }
 0xad6   :  { %10151 = vmatmul.mubr.msk.f32.vlgmr.msra.gmra.mxu0 %vm829_vm5, %v2303_v18 }
 0xad7   :  { %v10865_v19 = vpop.eup %10864  ;;  %10159 = vmatpush3.msra.mxu0 %v403_v28 }
 0xad8   :  { %v2305_v20 = vmul.f32 %v10865_v19, %v10861_v10  ;;  %10174 = vmatprep.subr.mxu0 %v400_v32 }
 0xada   :  { %10156 = vmatmul.mubr.msk.f32.vlgmr.msra.gmra.mxu1 %vm829_vm5, %v2305_v20 }
 0xadb   :  { %10164 = vmatpush3.msra.mxu1 %v420_v12  ;;  %10171 = vmatprep.mubr.msk.f32.mxu1 %vm585_vm3, %v11367_v30 }
 0xadc   :  { %10165 = vmatprep.subr.mxu1 %v419_v21 }
 0xadd   :  { %10166 = vmatpush3.msra.mxu1 %v419_v21 }
 0xade   :  { %10167 = vmatprep.subr.mxu1 %v418_v22 }
 0xadf   :  { %10168 = vmatpush3.msra.mxu1 %v418_v22 }
 0xae0   :  { %10169 = vmatprep.subr.mxu1 %v417_v23 }
 0xae1   :  { %10170 = vmatpush3.msra.mxu1 %v417_v23 }
 0xae2   :  { %10172 = vmatmul.mubr.msk.f32.vlgmr.msra.gmra.mxu1 %vm585_vm3, %v11369_v31  ;;  %10185 = vmatprep.subr.mxu1 %v436_v24 }
 0xae3   :  { %10186 = vmatpush3.msra.mxu1 %v436_v24  ;;  %10193 = vmatprep.mubr.msk.f32.mxu1 %vm585_vm3, %v11367_v30  ;;  %v404_v24 = vld [vmem:[%s11256_s24 + $0x18] sm:$0xff]  ;;  %s12337_s24 = sld [smem:[#allocation36_spill]] }
 0xae4   :  { %10187 = vmatprep.subr.mxu1 %v435_v25 }
 0xae5   :  { %10188 = vmatpush3.msra.mxu1 %v435_v25 }
 0xae6   :  { %10189 = vmatprep.subr.mxu1 %v434_v26 }
 0xae7   :  { %10190 = vmatpush3.msra.mxu1 %v434_v26 }
 0xae8   :  { %10191 = vmatprep.subr.mxu1 %v433_v27 }
 0xae9   :  { %10192 = vmatpush3.msra.mxu1 %v433_v27 }
 0xaea   :  { %10194 = vmatmul.mubr.msk.f32.vlgmr.msra.gmra.mxu1 %vm585_vm3, %v11369_v31  ;;  %10206 = vmatprep.subr.mxu1 %v11054_v17 }
 0xaeb   :  { %10208 = vmatprep.mubr.msk.f32.mxu1 %vm11055_vm4, %v11054_v17 }
 0xb96   :  { %v2375_v33 = vpop.f32.mrf.mxu0 }
 0xb97   :  { %10160 = vmatprep.mubr.msk.f32.mxu0 %vm829_vm5, %v2375_v33 }
 0xb98   :  { %v10152_v35 = vpop.f32.mrf.mxu0 }
 0xb9a   :  { %v2448_v36 = vpop.f32.mrf.mxu1 }
 0xb9b   :  { %10161 = vmatmul.mubr.msk.f32.vlgmr.msra.gmra.mxu0 %vm829_vm5, %v2448_v36 }
 0xb9c   :  { %10175 = vmatpush3.msra.mxu0 %v400_v32  ;;  %v10157_v38 = vpop.f32.mrf.mxu1  ;;  %10182 = vmatprep.mubr.msk.f32.mxu0 %vm585_vm3, %v11367_v30  ;;  %v9396_v32 = vld [vmem:[%s11236_s27] ss:$0 sm:$0xff]  ;;  %s12342_s27 = sld [smem:[#allocation15_spill]] }
 0xb9d   :  { %10176 = vmatprep.subr.mxu0 %v399_v37 }
 0xb9e   :  { %10177 = vmatpush3.msra.mxu0 %v399_v37 }
 0xb9f   :  { %10178 = vmatprep.subr.mxu0 %v398_v39 }
 0xba0   :  { %10179 = vmatpush3.msra.mxu0 %v398_v39 }
 0xba1   :  { %10180 = vmatprep.subr.mxu0 %v397_v40 }
 0xba2   :  { %10181 = vmatpush3.msra.mxu0 %v397_v40  ;;  %v10173_v41 = vpop.f32.mrf.mxu1 }
 0xba3   :  { %10183 = vmatmul.mubr.msk.f32.vlgmr.msra.gmra.mxu0 %vm585_vm3, %v11369_v31  ;;  %10196 = vmatprep.subr.mxu0 %v11054_v17  ;;  %v2613_v34 = vadd.f32 %v10173_v41, %v9379_v62 }
 0xba4   :  { %10198 = vmatprep.mubr.msk.f32.mxu0 %vm11055_vm4, %v11054_v17  ;;  %v2607_v44 = vpop.f32.mrf.mxu1 }
 0xba5   :  { %v2608_v63 = vadd.f32 %v9379_v62, %v2607_v44  ;;  %v10968_v62 = vld [vmem:[%s11326_s30 + $0x38] sm:$0xff] }
 0xbaa   :  { %v10195_v46 = vpop.f32.mrf.mxu1 }
 0xbab   :  { %v2775_v47 = vadd.f32 %v10195_v46, %v9385_v45 }
 0xbac   :  { %v2769_v48 = vpop.f32.mrf.mxu1 }
 0xbad   :  { %v2770_v49 = vadd.f32 %v9385_v45, %v2769_v48 }
 0xbaf   :  { %10207 = vmatpush3.msra.mxu1 %v2770_v49 }
 0xbb0   :  { %10216 = vmatprep.subr.mxu1 %v404_v24 }
 0xc5b   :  { %v10162_v52 = vpop.f32.mrf.mxu0 }
 0xc5c   :  { %v11586_v55 = vadd.f32 %v10162_v52, %v1882_v50 }
 0xc5d   :  { %v2524_v56 = vpop.f32.mrf.mxu0 }
 0xc5e   :  { %v11588_v57 = vadd.f32 %v2524_v56, %v1877_v54  ;;  %v471_v56 = vld [vmem:[%s11071_s9] sm:$0xff] }
 0xc63   :  { %v10184_v58 = vpop.f32.mrf.mxu0 }
 0xc64   :  { %v2694_v29 = vadd.f32 %v10184_v58, %v9382_v59  ;;  %v442_v58 = vld [vmem:[%s11281_s4 + $0x18] sm:$0xff] }
 0xc65   :  { %v2688_v60 = vpop.f32.mrf.mxu0 }
 0xc66   :  { %v2689_v61 = vadd.f32 %v9382_v59, %v2688_v60  ;;  %v441_v59 = vld [vmem:[%s11281_s4 + $0x10] sm:$0xff]  ;;  %v440_v60 = vld [vmem:[%s11281_s4 + $0x8] sm:$0xff] }
 0xc68   :  { %10197 = vmatpush3.xpose.msk.msra.mxu0 %vm829_vm5, %v2689_v61  ;;  %v439_v61 = vld [vmem:[%s11281_s4] sm:$0xff]  ;;  %s12343_s4 = sld [smem:[#allocation16_spill]] }
 0xc69   :  { %10201 = vmatprep.subr.mxu0 %v11054_v17 }
 0xc6b   :  { %10199 = vmatmul.mubr.msk.f32.vlgmr.msra.gmra.mxu0 %vm829_vm5, %v2608_v63  ;;  %v450_v63 = vld [vmem:[%s11286_s20 + $0x38] sm:$0xff] }
 0xc6c   :  { %10202 = vmatpush3.xpose.msk.msra.mxu0 %vm829_vm5, %v2694_v29  ;;  %10203 = vmatprep.mubr.msk.f32.mxu0 %vm11055_vm4, %v11054_v17  ;;  %v449_v29 = vld [vmem:[%s11286_s20 + $0x30] sm:$0xff] }
 0xc6d   :  { %10211 = vmatprep.subr.mxu0 %v11054_v17 }
 0xc6f   :  { %10204 = vmatmul.mubr.msk.f32.vlgmr.msra.gmra.mxu0 %vm829_vm5, %v2613_v34  ;;  %v448_v34 = vld [vmem:[%s11286_s20 + $0x28] sm:$0xff] }
 0xc70   :  { %10212 = vmatpush3.msra.mxu0 %v2775_v47  ;;  %10213 = vmatprep.mubr.msk.f32.mxu0 %vm11055_vm4, %v11054_v17 }
 0xc71   :  { %10221 = vmatprep.subr.mxu0 %v442_v58 }
 0xd2b   :  { %v2850_v42 = vpop.f32.mrf.mxu0 }
 0xd2c   :  { %v2930_v43 = vmul.f32 0.35355338, %v2850_v42  ;;  %v447_v42 = vld [vmem:[%s11286_s20 + $0x20] sm:$0xff] }
 0xd2d   :  { %v10200_v0 = vpop.f32.mrf.mxu0 }
 0xd2e   :  { %v2932_v1 = vsel %vm984_vm7, %v2930_v43, -1e+09 }
 0xd2f   :  { %v2926_v2 = vpop.f32.mrf.mxu0  ;;  %v2934_v3 = vsel %vm829_vm5, %v2932_v1, -inf }
 0xd30   :  { %v2931_v4 = vmul.f32 0.35355338, %v2926_v2  ;;  %2935 = vmax.xlane.f32.xlu1 %v2934_v3 }
 0xd31   :  { %v10205_v5 = vpop.f32.mrf.mxu0 }
 0xd32   :  { %v2933_v6 = vsel %vm985_vm6, %v2931_v4, -1e+09 }
 0xd33   :  { %v2937_v7 = vsel %vm829_vm5, %v2933_v6, -inf }
 0xd34   :  { %2938 = vmax.xlane.f32.xlu0 %v2937_v7 }
 0xdb9   :  { %v2936_v8 = vpop.xlane.xlu1 %2935 }
 0xdba   :  { %v2940_v9 = vsub.f32 %v2932_v1, %v2936_v8 }
 0xdbc   :  { %v2942_v10 = vmul.f32 1.442695, %v2940_v9 }
 0xdbd   :  { %v2939_v11 = vpop.xlane.xlu0 %2938 }
 0xdbe   :  { %10866 = vpow2.f32 %v2942_v10  ;;  %v2941_v12 = vsub.f32 %v2933_v6, %v2939_v11  ;;  %v9397_v6 = vld [vmem:[%s11291_s14] ss:$0 sm:$0xff]  ;;  %s12336_s14 = sld [smem:[#allocation32_spill]] }
 0xdc0   :  { %v2944_v53 = vmul.f32 1.442695, %v2941_v12  ;;  %v9398_v12 = vld [vmem:[%s12327_s0] ss:$0 sm:$0xff]  ;;  %s12356_s0 = sld [smem:[#allocation17_spill]] }
 0xdc2   :  { %10868 = vpow2.f32 %v2944_v53 }
 0xdcb   :  { %v10867_v13 = vpop.eup %10866 }
 0xdcc   :  { %v2946_v14 = vsel %vm829_vm5, %v10867_v13, 0.0 }
 0xdcd   :  { %2947 = vadd.xlane.f32.xlu1 %v2946_v14 }
 0xdcf   :  { %v10869_v16 = vpop.eup %10868 }
 0xdd0   :  { %v2949_v51 = vsel %vm829_vm5, %v10869_v16, 0.0 }
 0xdd1   :  { %2950 = vadd.xlane.f32.xlu0 %v2949_v51  ;;  %v10969_v51 = vld [vmem:[%s11326_s30 + $0x30] sm:$0xff] }
 0xe56   :  { %v2948_v18 = vpop.xlane.xlu1 %2947 }
 0xe57   :  { %10870 = vrcp.f32 %v2948_v18  ;;  %v10970_v18 = vld [vmem:[%s11326_s30 + $0x28] sm:$0xff] }
 0xe5a   :  { %v2951_v19 = vpop.xlane.xlu0 %2950 }
 0xe5b   :  { %10872 = vrcp.f32 %v2951_v19  ;;  %v10971_v19 = vld [vmem:[%s11326_s30 + $0x20] sm:$0xff] }
 0xe64   :  { %v10871_v20 = vpop.eup %10870 }
 0xe65   :  { %v2953_v21 = vmul.f32 %v10871_v20, %v10867_v13  ;;  %v10972_v20 = vld [vmem:[%s11326_s30 + $0x18] sm:$0xff] }
 0xe67   :  { %10209 = vmatmul.mubr.msk.f32.vlgmr.msra.gmra.mxu1 %vm829_vm5, %v2953_v21 }
 0xe68   :  { %v10873_v22 = vpop.eup %10872  ;;  %10217 = vmatpush3.msra.mxu1 %v404_v24  ;;  %v10975_v24 = vld [vmem:[%s11326_s30] sm:$0xff] }
 0xe69   :  { %v2955_v23 = vmul.f32 %v10873_v22, %v10869_v16  ;;  %10232 = vmatprep.subr.mxu1 %v450_v63  ;;  %v10973_v22 = vld [vmem:[%s11326_s30 + $0x10] sm:$0xff] }
 0xe6b   :  { %10214 = vmatmul.mubr.msk.f32.vlgmr.msra.gmra.mxu0 %vm829_vm5, %v2955_v23  ;;  %v10974_v23 = vld [vmem:[%s11326_s30 + $0x8] sm:$0xff]  ;;  %s12338_s30 = sld [smem:[#allocation28_spill]] }
 0xe6c   :  { %10222 = vmatpush3.msra.mxu0 %v442_v58  ;;  %v357_v58 = vld [vmem:[%s12331_s17 + $0x8] sm:$0xff] }
 0xe6d   :  { %10223 = vmatprep.subr.mxu0 %v441_v59 }
 0xe6e   :  { %10224 = vmatpush3.msra.mxu0 %v441_v59  ;;  %v356_v59 = vld [vmem:[%s12331_s17] sm:$0xff] }
 0xe6f   :  { %10225 = vmatprep.subr.mxu0 %v440_v60 }
 0xe70   :  { %10226 = vmatpush3.msra.mxu0 %v440_v60 }
 0xe71   :  { %10227 = vmatprep.subr.mxu0 %v439_v61 }
 0xe72   :  { %10228 = vmatpush3.msra.mxu0 %v439_v61 }
 0xe73   :  { %10251 = vmatprep.subr.mxu0 %v10968_v62 }
 0xf27   :  { %v3025_v25 = vpop.f32.mrf.mxu1 }
 0xf28   :  { %10218 = vmatprep.mubr.msk.f32.mxu1 %vm829_vm5, %v3025_v25 }
 0xf29   :  { %v10210_v26 = vpop.f32.mrf.mxu1 }
 0xf2a   :  { %v446_v26 = vld [vmem:[%s11286_s20 + $0x18] sm:$0xff] }
 0xf2b   :  { %v3098_v27 = vpop.f32.mrf.mxu0 }
 0xf2c   :  { %10219 = vmatmul.mubr.msk.f32.vlgmr.msra.gmra.mxu1 %vm829_vm5, %v3098_v27  ;;  %v445_v27 = vld [vmem:[%s11286_s20 + $0x10] sm:$0xff] }
 0xf2d   :  { %v10215_v28 = vpop.f32.mrf.mxu0  ;;  %10233 = vmatpush3.msra.mxu1 %v450_v63 }
 0xf2e   :  { %10234 = vmatprep.subr.mxu1 %v449_v29  ;;  %v444_v28 = vld [vmem:[%s11286_s20 + $0x8] sm:$0xff] }
 0xf2f   :  { %10235 = vmatpush3.msra.mxu1 %v449_v29 }
 0xf30   :  { %10236 = vmatprep.subr.mxu1 %v448_v34 }
 0xf31   :  { %10237 = vmatpush3.msra.mxu1 %v448_v34  ;;  %v9411_v34 = vld [vmem:[%s12333_s25] ss:$0 sm:$0xff] }
 0xf32   :  { %10238 = vmatprep.subr.mxu1 %v447_v42 }
 0xf33   :  { %10239 = vmatpush3.msra.mxu1 %v447_v42 }
 0xf34   :  { %10240 = vmatprep.subr.mxu1 %v446_v26 }
 0xf35   :  { %10241 = vmatpush3.msra.mxu1 %v446_v26 }
 0xf36   :  { %10242 = vmatprep.subr.mxu1 %v445_v27 }
 0xf37   :  { %10243 = vmatpush3.msra.mxu1 %v445_v27 }
 0xf38   :  { %10244 = vmatprep.subr.mxu1 %v444_v28 }
 0xf39   :  { %10245 = vmatpush3.msra.mxu1 %v444_v28 }
 0xfec   :  { %v10220_v33 = vpop.f32.mrf.mxu1 }
 0xfed   :  { %v3184_v35 = vadd.f32 %v10220_v33, %v11586_v55  ;;  %v343_v33 = vld [vmem:[%s12328_s5 + $0x18] sm:$0xff] }
 0xfee   :  { %v3174_v36 = vpop.f32.mrf.mxu1 }
 0xfef   :  { %v3192_v37 = vadd.f32 %v9396_v32, %v3184_v35  ;;  %v3183_v38 = vadd.f32 %v3174_v36, %v11588_v57  ;;  %v472_v57 = vld [vmem:[%s11071_s9 + $0x8] sm:$0xff]  ;;  %s12329_s9 = sld [smem:[#allocation31_spill]] }
 0xff1   :  { %v3191_v39 = vadd.f32 %v9396_v32, %v3183_v38  ;;  %v3194_v40 = vadd.f32 %v3192_v37, %v11369_v31  ;;  %v443_v32 = vld [vmem:[%s11286_s20] sm:$0xff]  ;;  %s12341_s20 = sld [smem:[#allocation39_spill]] }
 0xff2   :  { %10246 = vmatprep.subr.mxu1 %v443_v32 }
 0xff3   :  { %v3198_v41 = vsel %vm585_vm3, %v3194_v40, 0.0  ;;  %v3193_v44 = vadd.f32 %v3191_v39, %v11367_v30  ;;  %10247 = vmatpush3.msra.mxu1 %v443_v32  ;;  %v9399_v39 = vld [vmem:[%s12330_s13] ss:$0 sm:$0xff]  ;;  %s12359_s13 = sld [smem:[#allocation25_spill]] }
 0xff4   :  { %3199 = vadd.xlane.f32.xlu0 %v3198_v41  ;;  %10270 = vmatprep.subr.mxu1 %v343_v33 }
 0xff5   :  { %v3195_v45 = vsel %vm585_vm3, %v3193_v44, 0.0  ;;  %v323_v35 = vld [vmem:[%s12329_s9 + $0x18] sm:$0xff]  ;;  %v322_v36 = vld [vmem:[%s12329_s9 + $0x10] sm:$0xff]  ;;  %v321_v37 = vld [vmem:[%s12329_s9 + $0x8] sm:$0xff] }
 0xff6   :  { %3196 = vadd.xlane.f32.xlu1 %v3195_v45  ;;  %v320_v38 = vld [vmem:[%s12329_s9] sm:$0xff] }
0x107d   :  { %v3200_v46 = vpop.xlane.xlu0 %3199 }
0x107e   :  { %v3203_v47 = vmul.f32 0.03125, %v3200_v46 }
0x107f   :  { %v3197_v48 = vpop.xlane.xlu1 %3196 }
0x1080   :  { %v3205_v49 = vsub.f32 %v3194_v40, %v3203_v47  ;;  %v3202_v50 = vmul.f32 0.03125, %v3197_v48  ;;  %v342_v48 = vld [vmem:[%s12328_s5 + $0x10] sm:$0xff] }
0x1082   :  { %v3204_v52 = vsub.f32 %v3193_v44, %v3202_v50  ;;  %v3207_v31 = vmul.f32 %v3205_v49, %v3205_v49  ;;  %v340_v50 = vld [vmem:[%s12328_s5] sm:$0xff] }
0x1084   :  { %v3211_v54 = vsel %vm585_vm3, %v3207_v31, 0.0  ;;  %v3206_v30 = vmul.f32 %v3204_v52, %v3204_v52 }
0x1085   :  { %3212 = vadd.xlane.f32.xlu0 %v3211_v54 }
0x1086   :  { %v3208_v55 = vsel %vm585_vm3, %v3206_v30, 0.0  ;;  %v10976_v30 = vld [vmem:[%s11321_s21] sm:$0xff]  ;;  %s12332_s21 = sld [smem:[#allocation27_spill]] }
0x1087   :  { %3209 = vadd.xlane.f32.xlu1 %v3208_v55 }
0x1098   :  { %3459 = vperm.xlu1 %10841, %v471_v56  }
0x109b   :  { %3462 = vperm.xlu0 %10840, %v472_v57   ;;  %v358_v57 = vld [vmem:[%s12331_s17 + $0x10] sm:$0xff] }
0x110e   :  { %v3213_v43 = vpop.xlane.xlu0 %3212 }
0x110f   :  { %v3215_v0 = vmul.f32 0.03125, %v3213_v43 }
0x1110   :  { %v3210_v1 = vpop.xlane.xlu1 %3209 }
0x1111   :  { %v3217_v2 = vadd.f32 1e-05, %v3215_v0  ;;  %v3214_v3 = vmul.f32 0.03125, %v3210_v1 }
0x1113   :  { %10874 = vrsqrt.f32 %v3217_v2  ;;  %v3216_v4 = vadd.f32 1e-05, %v3214_v3 }
0x1114   :  { %v3460_v9 = vpop.permute.xlu1 %3459 }
0x1115   :  { %10876 = vrsqrt.f32 %v3216_v4  ;;  %vm3464_vm8 = vcmp.eq.s32.totalorder %v11351_v15, %v3460_v9  ;;  %v9417_v4 = vld [vmem:[%s12334_s29] ss:$0 sm:$0xff]  ;;  %v11718_v9 = vld [vmem:[%s12335_s3 + $0x8] sm:$0xff] }
0x1116   :  { %v9407_v16 = vsel %vm3464_vm8, 1.0, %v11054_v17  ;;  %v3463_v21 = vpop.permute.xlu0 %3462  ;;  %vm3955_vm10 = vcmp.gt.f32.partialorder %v11718_v9, 0.5 }
0x1117   :  { %vm3465_vm9 = vcmp.eq.s32.totalorder %v11351_v15, %v3463_v21 }
0x1118   :  { %v9408_v25 = vsel %vm3465_vm9, 1.0, %v11054_v17 }
0x1120   :  { %v10875_v5 = vpop.eup %10874 }
0x1121   :  { %v3221_v7 = vmul.f32 %v10875_v5, %v3205_v49  ;;  %v341_v49 = vld [vmem:[%s12328_s5 + $0x8] sm:$0xff] }
0x1122   :  { %v10877_v8 = vpop.eup %10876 }
0x1123   :  { %v3220_v10 = vmul.f32 %v10877_v8, %v3204_v52  ;;  %v3229_v11 = vmul.f32 %v9397_v6, %v3221_v7  ;;  %v359_v52 = vld [vmem:[%s12331_s17 + $0x18] sm:$0xff] }
0x1125   :  { %v3228_v53 = vmul.f32 %v9397_v6, %v3220_v10  ;;  %v11640_v14 = vadd.f32 %v9398_v12, %v3229_v11  ;;  %v11721_v10 = vld [vmem:[%s12335_s3] sm:$0xff] }
0x1126   :  { %vm3954_vm11 = vcmp.gt.f32.partialorder %v11721_v10, 0.5 }
0x1127   :  { %v11638_v13 = vadd.f32 %v9398_v12, %v3228_v53 }
0x1129   :  { %10229 = vmatprep.mubr.msk.f32.mxu0 %vm585_vm3, %v11638_v13 }
0x112a   :  { %10230 = vmatmul.mubr.msk.f32.vlgmr.msra.gmra.mxu0 %vm585_vm3, %v11640_v14 }
0x112b   :  { %10252 = vmatpush3.msra.mxu0 %v10968_v62  ;;  %10267 = vmatprep.mubr.msk.f32.mxu0 %vm497_vm0, %v9407_v16  ;;  %v9414_v62 = vld [vmem:[%s12332_s21] ss:$0 sm:$0xff] }
0x112c   :  { %10253 = vmatprep.subr.mxu0 %v10969_v51 }
0x112d   :  { %10254 = vmatpush3.msra.mxu0 %v10969_v51 }
0x112e   :  { %10255 = vmatprep.subr.mxu0 %v10970_v18 }
0x112f   :  { %10256 = vmatpush3.msra.mxu0 %v10970_v18 }
0x1130   :  { %10257 = vmatprep.subr.mxu0 %v10971_v19 }
0x1131   :  { %10258 = vmatpush3.msra.mxu0 %v10971_v19 }
0x1132   :  { %10259 = vmatprep.subr.mxu0 %v10972_v20 }
0x1133   :  { %10260 = vmatpush3.msra.mxu0 %v10972_v20 }
0x1134   :  { %10261 = vmatprep.subr.mxu0 %v10973_v22 }
0x1135   :  { %10262 = vmatpush3.msra.mxu0 %v10973_v22 }
0x1136   :  { %10263 = vmatprep.subr.mxu0 %v10974_v23 }
0x1137   :  { %10264 = vmatpush3.msra.mxu0 %v10974_v23 }
0x1138   :  { %10265 = vmatprep.subr.mxu0 %v10975_v24 }
0x1139   :  { %10266 = vmatpush3.msra.mxu0 %v10975_v24 }
0x113a   :  { %10268 = vmatmul.mubr.msk.f32.vlgmr.msra.gmra.mxu0 %vm497_vm0, %v9408_v25  ;;  %10281 = vmatprep.subr.mxu0 %v323_v35 }
0x113b   :  { %10282 = vmatpush3.msra.mxu0 %v323_v35 }
0x113c   :  { %10283 = vmatprep.subr.mxu0 %v322_v36 }
0x113d   :  { %10284 = vmatpush3.msra.mxu0 %v322_v36 }
0x113e   :  { %10285 = vmatprep.subr.mxu0 %v321_v37 }
0x113f   :  { %10286 = vmatpush3.msra.mxu0 %v321_v37  ;;  %v327_v37 = vld [vmem:[%s12329_s9 + $0x38] sm:$0xff] }
0x1140   :  { %10287 = vmatprep.subr.mxu0 %v320_v38 }
0x1141   :  { %10288 = vmatpush3.msra.mxu0 %v320_v38  ;;  %v347_v38 = vld [vmem:[%s12328_s5 + $0x38] sm:$0xff] }
0x1142   :  { %10303 = vmatprep.subr.mxu0 %v11054_v17 }
0x11ea   :  { %v10231_v40 = vpop.f32.mrf.mxu0 }
0x11eb   :  { %v3322_v41 = vadd.f32 %v10231_v40, %v9399_v39 }
0x11ec   :  { %v3316_v44 = vpop.f32.mrf.mxu0 }
0x11ed   :  { %v3317_v45 = vadd.f32 %v9399_v39, %v3316_v44  ;;  %v3326_v47 = vmax.f32 %v3322_v41, 0.0 }
0x11ef   :  { %v3325_v46 = vmax.f32 %v3317_v45, 0.0 }
0x11f1   :  { %10248 = vmatprep.mubr.msk.f32.mxu1 %vm497_vm0, %v3325_v46  ;;  %v326_v46 = vld [vmem:[%s12329_s9 + $0x30] sm:$0xff] }
0x11f2   :  { %10249 = vmatmul.mubr.msk.f32.vlgmr.msra.gmra.mxu1 %vm497_vm0, %v3326_v47 }
0x11f3   :  { %10271 = vmatpush3.msra.mxu1 %v343_v33 }
0x11f4   :  { %10272 = vmatprep.subr.mxu1 %v342_v48 }
0x11f5   :  { %10273 = vmatpush3.msra.mxu1 %v342_v48  ;;  %v346_v48 = vld [vmem:[%s12328_s5 + $0x30] sm:$0xff] }
0x11f6   :  { %10274 = vmatprep.subr.mxu1 %v341_v49 }
0x11f7   :  { %10275 = vmatpush3.msra.mxu1 %v341_v49  ;;  %v325_v49 = vld [vmem:[%s12329_s9 + $0x28] sm:$0xff] }
0x11f8   :  { %10276 = vmatprep.subr.mxu1 %v340_v50 }
0x11f9   :  { %10277 = vmatpush3.msra.mxu1 %v340_v50  ;;  %v345_v50 = vld [vmem:[%s12328_s5 + $0x28] sm:$0xff] }
0x11fa   :  { %v10269_v31 = vpop.f32.mrf.mxu0  ;;  %10292 = vmatprep.subr.mxu1 %v359_v52 }
0x11fb   :  { %v11678_v56 = vadd.f32 %v10976_v30, %v10269_v31  ;;  %v344_v31 = vld [vmem:[%s12328_s5 + $0x20] sm:$0xff] }
0x11fc   :  { %v3542_v54 = vpop.f32.mrf.mxu0 }
0x11fd   :  { %v11676_v55 = vadd.f32 %v10976_v30, %v3542_v54  ;;  %v363_v54 = vld [vmem:[%s12331_s17 + $0x38] sm:$0xff]  ;;  %v362_v30 = vld [vmem:[%s12331_s17 + $0x30] sm:$0xff] }
0x11ff   :  { %10278 = vmatprep.mubr.msk.f32.mxu1 %vm585_vm3, %v11676_v55  ;;  %10289 = vmatprep.mubr.msk.f32.mxu0 %vm585_vm3, %v11676_v55 }
0x1200   :  { %10279 = vmatmul.mubr.msk.f32.vlgmr.msra.gmra.mxu1 %vm585_vm3, %v11678_v56  ;;  %10290 = vmatmul.mubr.msk.f32.vlgmr.msra.gmra.mxu0 %vm585_vm3, %v11678_v56 }
0x1201   :  { %10293 = vmatpush3.msra.mxu1 %v359_v52  ;;  %10300 = vmatprep.mubr.msk.f32.mxu1 %vm585_vm3, %v11676_v55  ;;  %v324_v52 = vld [vmem:[%s12329_s9 + $0x20] sm:$0xff] }
0x1202   :  { %10294 = vmatprep.subr.mxu1 %v358_v57  ;;  %10305 = vmatprep.mubr.msk.f32.mxu0 %vm11055_vm4, %v11054_v17 }
0x1203   :  { %10295 = vmatpush3.msra.mxu1 %v358_v57  ;;  %v361_v57 = vld [vmem:[%s12331_s17 + $0x28] sm:$0xff] }
0x1204   :  { %10296 = vmatprep.subr.mxu1 %v357_v58 }
0x1205   :  { %10297 = vmatpush3.msra.mxu1 %v357_v58  ;;  %v360_v58 = vld [vmem:[%s12331_s17 + $0x20] sm:$0xff] }
0x1206   :  { %10298 = vmatprep.subr.mxu1 %v356_v59 }
0x1207   :  { %10299 = vmatpush3.msra.mxu1 %v356_v59 }
0x1208   :  { %10301 = vmatmul.mubr.msk.f32.vlgmr.msra.gmra.mxu1 %vm585_vm3, %v11678_v56  ;;  %10308 = vmatprep.subr.mxu1 %v11054_v17 }
0x1209   :  { %10310 = vmatprep.mubr.msk.f32.mxu1 %vm11055_vm4, %v11054_v17 }
0x12b2   :  { %v11700_v60 = vpop.f32.mrf.mxu1 }
0x12b4   :  { %v11702_v61 = vpop.f32.mrf.mxu1 }
0x12c0   :  { %v10280_v63 = vpop.f32.mrf.mxu1  ;;  %v10291_v29 = vpop.f32.mrf.mxu0 }
0x12c1   :  { %v3716_v42 = vadd.f32 %v10291_v29, %v9414_v62  ;;  %v3635_v2 = vadd.f32 %v10280_v63, %v9411_v34 }
0x12c2   :  { %v3710_v43 = vpop.f32.mrf.mxu0  ;;  %v3629_v0 = vpop.f32.mrf.mxu1 }
0x12c3   :  { %v3711_v1 = vadd.f32 %v9414_v62, %v3710_v43  ;;  %10309 = vmatpush3.xpose.msk.msra.mxu1 %vm829_vm5, %v3716_v42  ;;  %v3630_v3 = vadd.f32 %v9411_v34, %v3629_v0  ;;  %v9429_v43 = vld [vmem:[%s12332_s21 + $0x1] ss:$0 sm:$0xff] }
0x12c4   :  { %10318 = vmatprep.subr.mxu1 %v11054_v17 }
0x12c5   :  { %10304 = vmatpush3.xpose.msk.msra.mxu0 %vm829_vm5, %v3711_v1  ;;  %v9426_v1 = vld [vmem:[%s12333_s25 + $0x1] ss:$0 sm:$0xff] }
0x12c6   :  { %10311 = vmatmul.mubr.msk.f32.vlgmr.msra.gmra.mxu1 %vm829_vm5, %v3635_v2  ;;  %10313 = vmatprep.subr.mxu0 %v11054_v17 }
0x12c7   :  { %10320 = vmatprep.mubr.msk.f32.mxu1 %vm11055_vm4, %v11054_v17 }
0x12c8   :  { %v10302_v5 = vpop.f32.mrf.mxu1  ;;  %10306 = vmatmul.mubr.msk.f32.vlgmr.msra.gmra.mxu0 %vm829_vm5, %v3630_v3 }
0x12c9   :  { %v3797_v6 = vadd.f32 %v10302_v5, %v9417_v4  ;;  %10315 = vmatprep.mubr.msk.f32.mxu0 %vm11055_vm4, %v11054_v17 }
0x12ca   :  { %v3791_v7 = vpop.f32.mrf.mxu1 }
0x12cb   :  { %v3792_v8 = vadd.f32 %v9417_v4, %v3791_v7  ;;  %10319 = vmatpush3.msra.mxu1 %v3797_v6  ;;  %v9432_v6 = vld [vmem:[%s12334_s29 + $0x1] ss:$0 sm:$0xff] }
0x12cc   :  { %10334 = vmatprep.subr.mxu1 %v327_v37 }
0x12cd   :  { %10314 = vmatpush3.msra.mxu0 %v3792_v8 }
0x12ce   :  { %10323 = vmatprep.subr.mxu0 %v347_v38 }
0x1386   :  { %v3948_v11 = vpop.f32.mrf.mxu1 }
0x1387   :  { %v3953_v12 = vmul.f32 0.35355338, %v3948_v11 }
0x1388   :  { %v3872_v53 = vpop.f32.mrf.mxu0  ;;  %v10312_v16 = vpop.f32.mrf.mxu1 }
0x1389   :  { %v3952_v51 = vmul.f32 0.35355338, %v3872_v53  ;;  %v3957_v18 = vsel %vm3955_vm10, %v3953_v12, -1e+09 }
0x138a   :  { %v10307_v19 = vpop.f32.mrf.mxu0  ;;  %v3961_v20 = vsel %vm829_vm5, %v3957_v18, -inf }
0x138b   :  { %3962 = vmax.xlane.f32.xlu1 %v3961_v20  ;;  %v3956_v21 = vsel %vm3954_vm11, %v3952_v51, -1e+09 }
0x138c   :  { %v3958_v22 = vsel %vm829_vm5, %v3956_v21, -inf }
0x138d   :  { %3959 = vmax.xlane.f32.xlu0 %v3958_v22 }
0x1414   :  { %v3963_v23 = vpop.xlane.xlu1 %3962 }
0x1415   :  { %v3965_v24 = vsub.f32 %v3957_v18, %v3963_v23 }
0x1416   :  { %v3960_v25 = vpop.xlane.xlu0 %3959 }
0x1417   :  { %v3968_v26 = vmul.f32 1.442695, %v3965_v24  ;;  %v3964_v27 = vsub.f32 %v3956_v21, %v3960_v25 }
0x1419   :  { %10878 = vpow2.f32 %v3968_v26  ;;  %v3966_v28 = vmul.f32 1.442695, %v3964_v27 }
0x141b   :  { %10880 = vpow2.f32 %v3966_v28 }
0x1426   :  { %v10879_v32 = vpop.eup %10878 }
0x1427   :  { %v3973_v33 = vsel %vm829_vm5, %v10879_v32, 0.0 }
0x1428   :  { %v10881_v35 = vpop.eup %10880  ;;  %3974 = vadd.xlane.f32.xlu1 %v3973_v33 }
0x1429   :  { %v3970_v36 = vsel %vm829_vm5, %v10881_v35, 0.0 }
0x142a   :  { %3971 = vadd.xlane.f32.xlu0 %v3970_v36 }
0x14b1   :  { %v3975_v39 = vpop.xlane.xlu1 %3974 }
0x14b2   :  { %10882 = vrcp.f32 %v3975_v39 }
0x14b3   :  { %v3972_v40 = vpop.xlane.xlu0 %3971 }
0x14b4   :  { %10884 = vrcp.f32 %v3972_v40  ;;  %v336_v40 = vld [vmem:[%s12336_s14] sm:$0xff] }
0x14bf   :  { %v10883_v41 = vpop.eup %10882 }
0x14c0   :  { %v3979_v44 = vmul.f32 %v10883_v41, %v10879_v32 }
0x14c1   :  { %v10885_v45 = vpop.eup %10884 }
0x14c2   :  { %10321 = vmatmul.mubr.msk.f32.vlgmr.msra.gmra.mxu1 %vm829_vm5, %v3979_v44  ;;  %v3977_v47 = vmul.f32 %v10885_v45, %v10881_v35 }
0x14c3   :  { %10335 = vmatpush3.msra.mxu1 %v327_v37  ;;  %10342 = vmatprep.mubr.msk.f32.mxu1 %vm585_vm3, %v11676_v55 }
0x14c4   :  { %10336 = vmatprep.subr.mxu1 %v326_v46  ;;  %10316 = vmatmul.mubr.msk.f32.vlgmr.msra.gmra.mxu0 %vm829_vm5, %v3977_v47 }
0x14c5   :  { %10324 = vmatpush3.msra.mxu0 %v347_v38  ;;  %10337 = vmatpush3.msra.mxu1 %v326_v46 }
0x14c6   :  { %10325 = vmatprep.subr.mxu0 %v346_v48  ;;  %10331 = vmatprep.mubr.msk.f32.mxu0 %vm585_vm3, %v11676_v55 }
0x14c7   :  { %10338 = vmatprep.subr.mxu1 %v325_v49  ;;  %10326 = vmatpush3.msra.mxu0 %v346_v48 }
0x14c8   :  { %10339 = vmatpush3.msra.mxu1 %v325_v49  ;;  %10327 = vmatprep.subr.mxu0 %v345_v50  ;;  %v331_v49 = vld [vmem:[%s12329_s9 + $0x58] sm:$0xff] }
0x14c9   :  { %10340 = vmatprep.subr.mxu1 %v324_v52  ;;  %10328 = vmatpush3.msra.mxu0 %v345_v50  ;;  %v330_v50 = vld [vmem:[%s12329_s9 + $0x50] sm:$0xff] }
0x14ca   :  { %10341 = vmatpush3.msra.mxu1 %v324_v52  ;;  %10329 = vmatprep.subr.mxu0 %v344_v31  ;;  %v329_v52 = vld [vmem:[%s12329_s9 + $0x48] sm:$0xff] }
0x14cb   :  { %10343 = vmatmul.mubr.msk.f32.vlgmr.msra.gmra.mxu1 %vm585_vm3, %v11678_v56  ;;  %10330 = vmatpush3.msra.mxu0 %v344_v31  ;;  %v328_v31 = vld [vmem:[%s12329_s9 + $0x40] sm:$0xff] }
0x14cc   :  { %10332 = vmatmul.mubr.msk.f32.vlgmr.msra.gmra.mxu0 %vm585_vm3, %v11678_v56  ;;  %10345 = vmatprep.subr.mxu0 %v363_v54 }
0x14cd   :  { %10346 = vmatpush3.msra.mxu0 %v363_v54  ;;  %10353 = vmatprep.mubr.msk.f32.mxu0 %vm585_vm3, %v11676_v55  ;;  %v337_v54 = vld [vmem:[%s12336_s14 + $0x8] sm:$0xff] }
0x14ce   :  { %10347 = vmatprep.subr.mxu0 %v362_v30  ;;  %10356 = vmatprep.subr.mxu1 %v11054_v17 }
0x14cf   :  { %10348 = vmatpush3.msra.mxu0 %v362_v30  ;;  %10358 = vmatprep.mubr.msk.f32.mxu1 %vm11055_vm4, %v11054_v17  ;;  %v351_v30 = vld [vmem:[%s12328_s5 + $0x58] sm:$0xff] }
0x14d0   :  { %10349 = vmatprep.subr.mxu0 %v361_v57 }
0x14d1   :  { %10350 = vmatpush3.msra.mxu0 %v361_v57 }
0x14d2   :  { %10351 = vmatprep.subr.mxu0 %v360_v58 }
0x14d3   :  { %10352 = vmatpush3.msra.mxu0 %v360_v58 }
0x14d4   :  { %10354 = vmatmul.mubr.msk.f32.vlgmr.msra.gmra.mxu0 %vm585_vm3, %v11678_v56  ;;  %10366 = vmatprep.subr.mxu0 %v11054_v17 }
0x14d5   :  { %10368 = vmatprep.mubr.msk.f32.mxu0 %vm11055_vm4, %v11054_v17 }
0x1582   :  { %v11765_v59 = vpop.f32.mrf.mxu1 }
0x1584   :  { %v11767_v62 = vpop.f32.mrf.mxu0  ;;  %v10322_v63 = vpop.f32.mrf.mxu1 }
0x1586   :  { %v10317_v29 = vpop.f32.mrf.mxu0 }
0x1587   :  { %v349_v29 = vld [vmem:[%s12328_s5 + $0x48] sm:$0xff] }
0x158b   :  { %v10344_v34 = vpop.f32.mrf.mxu1 }
0x158c   :  { %v10333_v42 = vpop.f32.mrf.mxu0  ;;  %v4285_v5 = vadd.f32 %v10344_v34, %v9429_v43  ;;  %v348_v34 = vld [vmem:[%s12328_s5 + $0x40] sm:$0xff] }
0x158d   :  { %v4279_v0 = vpop.f32.mrf.mxu1  ;;  %v4204_v8 = vadd.f32 %v10333_v42, %v9426_v1 }
0x158e   :  { %v4280_v2 = vadd.f32 %v9429_v43, %v4279_v0  ;;  %v4198_v3 = vpop.f32.mrf.mxu0  ;;  %v367_v43 = vld [vmem:[%s12331_s17 + $0x58] sm:$0xff]  ;;  %v366_v0 = vld [vmem:[%s12331_s17 + $0x50] sm:$0xff] }
0x158f   :  { %v4199_v4 = vadd.f32 %v9426_v1, %v4198_v3  ;;  %v365_v3 = vld [vmem:[%s12331_s17 + $0x48] sm:$0xff] }
0x1590   :  { %10357 = vmatpush3.xpose.msk.msra.mxu1 %vm829_vm5, %v4280_v2  ;;  %v9448_v2 = vld [vmem:[%s12332_s21 + $0x2] ss:$0 sm:$0xff] }
0x1591   :  { %10361 = vmatprep.subr.mxu1 %v11054_v17 }
0x1593   :  { %10359 = vmatmul.mubr.msk.f32.vlgmr.msra.gmra.mxu1 %vm829_vm5, %v4199_v4 }
0x1594   :  { %10362 = vmatpush3.xpose.msk.msra.mxu1 %vm829_vm5, %v4285_v5  ;;  %v10355_v7 = vpop.f32.mrf.mxu0  ;;  %10363 = vmatprep.mubr.msk.f32.mxu1 %vm11055_vm4, %v11054_v17  ;;  %v364_v5 = vld [vmem:[%s12331_s17 + $0x40] sm:$0xff] }
0x1595   :  { %v4366_v11 = vadd.f32 %v10355_v7, %v9432_v6  ;;  %10371 = vmatprep.subr.mxu1 %v11054_v17 }
0x1596   :  { %v4360_v12 = vpop.f32.mrf.mxu0 }
0x1597   :  { %v4361_v53 = vadd.f32 %v9432_v6, %v4360_v12  ;;  %10364 = vmatmul.mubr.msk.f32.vlgmr.msra.gmra.mxu1 %vm829_vm5, %v4204_v8 }
0x1598   :  { %10372 = vmatpush3.msra.mxu1 %v4366_v11  ;;  %10373 = vmatprep.mubr.msk.f32.mxu1 %vm11055_vm4, %v11054_v17 }
0x1599   :  { %10367 = vmatpush3.msra.mxu0 %v4361_v53  ;;  %10381 = vmatprep.subr.mxu1 %v336_v40 }
0x159a   :  { %10376 = vmatprep.subr.mxu0 %v337_v54 }
0x1653   :  { %v4441_v16 = vpop.f32.mrf.mxu1 }
0x1654   :  { %v4521_v51 = vmul.f32 0.35355338, %v4441_v16  ;;  %v9445_v16 = vld [vmem:[%s12333_s25 + $0x2] ss:$0 sm:$0xff] }
0x1655   :  { %v10360_v18 = vpop.f32.mrf.mxu1 }
0x1656   :  { %v4523_v19 = vsel %vm3954_vm11, %v4521_v51, -1e+09 }
0x1657   :  { %v4517_v20 = vpop.f32.mrf.mxu1  ;;  %v4525_v21 = vsel %vm829_vm5, %v4523_v19, -inf }
0x1658   :  { %v4522_v22 = vmul.f32 0.35355338, %v4517_v20  ;;  %4526 = vmax.xlane.f32.xlu1 %v4525_v21 }
0x1659   :  { %v10365_v23 = vpop.f32.mrf.mxu1 }
0x165a   :  { %v4524_v24 = vsel %vm3955_vm10, %v4522_v22, -1e+09 }
0x165b   :  { %v4528_v25 = vsel %vm829_vm5, %v4524_v24, -inf }
0x165c   :  { %4529 = vmax.xlane.f32.xlu0 %v4528_v25 }
0x16e1   :  { %v4527_v26 = vpop.xlane.xlu1 %4526 }
0x16e2   :  { %v4531_v27 = vsub.f32 %v4523_v19, %v4527_v26  ;;  %v9451_v19 = vld [vmem:[%s12334_s29 + $0x2] ss:$0 sm:$0xff] }
0x16e4   :  { %v4533_v28 = vmul.f32 1.442695, %v4531_v27 }
0x16e5   :  { %v4530_v32 = vpop.xlane.xlu0 %4529 }
0x16e6   :  { %10886 = vpow2.f32 %v4533_v28  ;;  %v4532_v33 = vsub.f32 %v4524_v24, %v4530_v32 }
0x16e8   :  { %v4535_v35 = vmul.f32 1.442695, %v4532_v33 }
0x16ea   :  { %10888 = vpow2.f32 %v4535_v35 }
0x16f3   :  { %v10887_v36 = vpop.eup %10886 }
0x16f4   :  { %v4537_v37 = vsel %vm829_vm5, %v10887_v36, 0.0 }
0x16f5   :  { %4538 = vadd.xlane.f32.xlu1 %v4537_v37 }
0x16f7   :  { %v10889_v38 = vpop.eup %10888 }
0x16f8   :  { %v4540_v39 = vsel %vm829_vm5, %v10889_v38, 0.0 }
0x16f9   :  { %4541 = vadd.xlane.f32.xlu0 %v4540_v39 }
0x177e   :  { %v4539_v41 = vpop.xlane.xlu1 %4538 }
0x177f   :  { %10890 = vrcp.f32 %v4539_v41 }
0x1782   :  { %v4542_v44 = vpop.xlane.xlu0 %4541 }
0x1783   :  { %10892 = vrcp.f32 %v4542_v44 }
0x178c   :  { %v10891_v45 = vpop.eup %10890 }
0x178d   :  { %v4544_v46 = vmul.f32 %v10891_v45, %v10887_v36 }
0x178f   :  { %10369 = vmatmul.mubr.msk.f32.vlgmr.msra.gmra.mxu0 %vm829_vm5, %v4544_v46 }
0x1790   :  { %v10893_v47 = vpop.eup %10892  ;;  %10377 = vmatpush3.msra.mxu0 %v337_v54 }
0x1791   :  { %v4546_v48 = vmul.f32 %v10893_v47, %v10889_v38  ;;  %10386 = vmatprep.subr.mxu0 %v351_v30 }
0x1793   :  { %10374 = vmatmul.mubr.msk.f32.vlgmr.msra.gmra.mxu1 %vm829_vm5, %v4546_v48 }
0x1794   :  { %10383 = vmatprep.mubr.msk.f32.mxu1 %vm829_vm5, %v11767_v62  ;;  %10382 = vmatpush3.msra.mxu1 %v336_v40  ;;  %v350_v62 = vld [vmem:[%s12328_s5 + $0x50] sm:$0xff] }
0x1795   :  { %10397 = vmatprep.subr.mxu1 %v331_v49 }
0x1797   :  { %10384 = vmatmul.mubr.msk.f32.vlgmr.msra.gmra.mxu1 %vm829_vm5, %v11765_v59 }
0x1798   :  { %10398 = vmatpush3.msra.mxu1 %v331_v49  ;;  %10405 = vmatprep.mubr.msk.f32.mxu1 %vm585_vm3, %v11676_v55 }
0x1799   :  { %10399 = vmatprep.subr.mxu1 %v330_v50 }
0x179a   :  { %10400 = vmatpush3.msra.mxu1 %v330_v50 }
0x179b   :  { %10401 = vmatprep.subr.mxu1 %v329_v52 }
0x179c   :  { %10402 = vmatpush3.msra.mxu1 %v329_v52  ;;  %v355_v52 = vld [vmem:[%s12328_s5 + $0x78] sm:$0xff] }
0x179d   :  { %10403 = vmatprep.subr.mxu1 %v328_v31 }
0x179e   :  { %10404 = vmatpush3.msra.mxu1 %v328_v31 }
0x179f   :  { %10406 = vmatmul.mubr.msk.f32.vlgmr.msra.gmra.mxu1 %vm585_vm3, %v11678_v56  ;;  %10419 = vmatprep.subr.mxu1 %v11054_v17 }
0x17a0   :  { %10421 = vmatprep.mubr.msk.f32.mxu1 %vm11055_vm4, %v11054_v17 }
0x184f   :  { %v4616_v57 = vpop.f32.mrf.mxu0 }
0x1850   :  { %10378 = vmatprep.mubr.msk.f32.mxu0 %vm829_vm5, %v4616_v57 }
0x1851   :  { %v10370_v58 = vpop.f32.mrf.mxu0 }
0x1853   :  { %v4689_v59 = vpop.f32.mrf.mxu1 }
0x1854   :  { %10379 = vmatmul.mubr.msk.f32.vlgmr.msra.gmra.mxu0 %vm829_vm5, %v4689_v59 }
0x1855   :  { %10387 = vmatpush3.msra.mxu0 %v351_v30  ;;  %v10375_v63 = vpop.f32.mrf.mxu1  ;;  %10394 = vmatprep.mubr.msk.f32.mxu0 %vm585_vm3, %v11676_v55 }
0x1856   :  { %10388 = vmatprep.subr.mxu0 %v350_v62  ;;  %v353_v63 = vld [vmem:[%s12328_s5 + $0x68] sm:$0xff] }
0x1857   :  { %10389 = vmatpush3.msra.mxu0 %v350_v62  ;;  %v11817_v42 = vpop.f32.mrf.mxu1  ;;  %v354_v62 = vld [vmem:[%s12328_s5 + $0x70] sm:$0xff] }
0x1858   :  { %10390 = vmatprep.subr.mxu0 %v349_v29 }
0x1859   :  { %10391 = vmatpush3.msra.mxu0 %v349_v29  ;;  %v11823_v1 = vpop.f32.mrf.mxu1  ;;  %v352_v29 = vld [vmem:[%s12328_s5 + $0x60] sm:$0xff]  ;;  %s12357_s5 = sld [smem:[#allocation18_spill]] }
0x185a   :  { %10392 = vmatprep.subr.mxu0 %v348_v34 }
0x185b   :  { %10393 = vmatpush3.msra.mxu0 %v348_v34  ;;  %v371_v34 = vld [vmem:[%s12331_s17 + $0x78] sm:$0xff] }
0x185c   :  { %10395 = vmatmul.mubr.msk.f32.vlgmr.msra.gmra.mxu0 %vm585_vm3, %v11678_v56  ;;  %10408 = vmatprep.subr.mxu0 %v367_v43 }
0x185d   :  { %10409 = vmatpush3.msra.mxu0 %v367_v43  ;;  %10416 = vmatprep.mubr.msk.f32.mxu0 %vm585_vm3, %v11676_v55  ;;  %v370_v43 = vld [vmem:[%s12331_s17 + $0x70] sm:$0xff] }
0x185e   :  { %10410 = vmatprep.subr.mxu0 %v366_v0 }
0x185f   :  { %v10407_v4 = vpop.f32.mrf.mxu1  ;;  %10411 = vmatpush3.msra.mxu0 %v366_v0  ;;  %v369_v0 = vld [vmem:[%s12331_s17 + $0x68] sm:$0xff] }
0x1860   :  { %v5014_v6 = vadd.f32 %v10407_v4, %v9448_v2  ;;  %10412 = vmatprep.subr.mxu0 %v365_v3  ;;  %v335_v4 = vld [vmem:[%s12329_s9 + $0x78] sm:$0xff] }
0x1861   :  { %v5008_v7 = vpop.f32.mrf.mxu1  ;;  %10413 = vmatpush3.msra.mxu0 %v365_v3  ;;  %v338_v3 = vld [vmem:[%s12336_s14 + $0x10] sm:$0xff] }
0x1862   :  { %v5009_v8 = vadd.f32 %v9448_v2, %v5008_v7  ;;  %10414 = vmatprep.subr.mxu0 %v364_v5  ;;  %v368_v2 = vld [vmem:[%s12331_s17 + $0x60] sm:$0xff]  ;;  %s12360_s17 = sld [smem:[#allocation26_spill]] }
0x1863   :  { %10415 = vmatpush3.msra.mxu0 %v364_v5 }
0x1864   :  { %10417 = vmatmul.mubr.msk.f32.vlgmr.msra.gmra.mxu0 %vm585_vm3, %v11678_v56  ;;  %10420 = vmatpush3.xpose.msk.msra.mxu1 %vm829_vm5, %v5009_v8  ;;  %v334_v8 = vld [vmem:[%s12329_s9 + $0x70] sm:$0xff] }
0x1865   :  { %10424 = vmatprep.subr.mxu1 %v11054_v17  ;;  %10429 = vmatprep.subr.mxu0 %v11054_v17 }
0x1866   :  { %10431 = vmatprep.mubr.msk.f32.mxu0 %vm11055_vm4, %v11054_v17 }
0x1914   :  { %v11837_v11 = vpop.f32.mrf.mxu0 }
0x1916   :  { %v11839_v12 = vpop.f32.mrf.mxu0 }
0x191c   :  { %v10396_v53 = vpop.f32.mrf.mxu0 }
0x191d   :  { %v4933_v20 = vadd.f32 %v10396_v53, %v9445_v16 }
0x191e   :  { %v4927_v51 = vpop.f32.mrf.mxu0 }
0x191f   :  { %v4928_v18 = vadd.f32 %v9445_v16, %v4927_v51  ;;  %v333_v16 = vld [vmem:[%s12329_s9 + $0x68] sm:$0xff]  ;;  %v332_v51 = vld [vmem:[%s12329_s9 + $0x60] sm:$0xff]  ;;  %s12358_s9 = sld [smem:[#allocation40_spill]] }
0x1921   :  { %10422 = vmatmul.mubr.msk.f32.vlgmr.msra.gmra.mxu1 %vm829_vm5, %v4928_v18 }
0x1922   :  { %10425 = vmatpush3.xpose.msk.msra.mxu1 %vm829_vm5, %v5014_v6  ;;  %10426 = vmatprep.mubr.msk.f32.mxu1 %vm11055_vm4, %v11054_v17 }
0x1923   :  { %10434 = vmatprep.subr.mxu1 %v11054_v17 }
0x1924   :  { %v10418_v21 = vpop.f32.mrf.mxu0 }
0x1925   :  { %v5095_v22 = vadd.f32 %v10418_v21, %v9451_v19  ;;  %10427 = vmatmul.mubr.msk.f32.vlgmr.msra.gmra.mxu1 %vm829_vm5, %v4933_v20  ;;  %v9468_v20 = vld [vmem:[%s12334_s29 + $0x3] ss:$0 sm:$0xff]  ;;  %s12363_s29 = sld [smem:[#allocation8_spill]] }
0x1926   :  { %v5089_v23 = vpop.f32.mrf.mxu0  ;;  %10436 = vmatprep.mubr.msk.f32.mxu1 %vm11055_vm4, %v11054_v17 }
0x1927   :  { %v5090_v24 = vadd.f32 %v9451_v19, %v5089_v23  ;;  %10435 = vmatpush3.msra.mxu1 %v5095_v22 }
0x1928   :  { %10444 = vmatprep.subr.mxu1 %v355_v52 }
0x1929   :  { %10430 = vmatpush3.msra.mxu0 %v5090_v24 }
0x192a   :  { %10439 = vmatprep.subr.mxu0 %v338_v3 }
0x19e1   :  { %v5170_v25 = vpop.f32.mrf.mxu1 }
0x19e2   :  { %v5250_v26 = vmul.f32 0.35355338, %v5170_v25  ;;  %v4852_v25 = vadd.f32 %v11817_v42, %v11837_v11 }
0x19e3   :  { %v10423_v27 = vpop.f32.mrf.mxu1 }
0x19e4   :  { %v5252_v28 = vsel %vm3954_vm11, %v5250_v26, -1e+09  ;;  %v4847_v27 = vadd.f32 %v11823_v1, %v11839_v12 }
0x19e5   :  { %v5246_v32 = vpop.f32.mrf.mxu1  ;;  %v5254_v33 = vsel %vm829_vm5, %v5252_v28, -inf }
0x19e6   :  { %v5251_v35 = vmul.f32 0.35355338, %v5246_v32  ;;  %5255 = vmax.xlane.f32.xlu1 %v5254_v33 }
0x19e7   :  { %v10428_v36 = vpop.f32.mrf.mxu1 }
0x19e8   :  { %v5253_v37 = vsel %vm3955_vm10, %v5251_v35, -1e+09  ;;  %v9465_v36 = vld [vmem:[%s12332_s21 + $0x3] ss:$0 sm:$0xff]  ;;  %s12361_s21 = sld [smem:[#allocation41_spill]] }
0x19e9   :  { %v5257_v38 = vsel %vm829_vm5, %v5253_v37, -inf }
0x19ea   :  { %5258 = vmax.xlane.f32.xlu0 %v5257_v38 }
0x1a6f   :  { %v5256_v39 = vpop.xlane.xlu1 %5255 }
0x1a70   :  { %v5260_v40 = vsub.f32 %v5252_v28, %v5256_v39  ;;  %v9462_v39 = vld [vmem:[%s12333_s25 + $0x3] ss:$0 sm:$0xff]  ;;  %s12362_s25 = sld [smem:[#allocation5_spill]] }
0x1a72   :  { %v5262_v41 = vmul.f32 1.442695, %v5260_v40 }
0x1a73   :  { %v5259_v44 = vpop.xlane.xlu0 %5258 }
0x1a74   :  { %10894 = vpow2.f32 %v5262_v41  ;;  %v5261_v45 = vsub.f32 %v5253_v37, %v5259_v44 }
0x1a76   :  { %v5264_v46 = vmul.f32 1.442695, %v5261_v45 }
0x1a78   :  { %10896 = vpow2.f32 %v5264_v46 }
0x1a81   :  { %v10895_v47 = vpop.eup %10894 }
0x1a82   :  { %v5266_v48 = vsel %vm829_vm5, %v10895_v47, 0.0 }
0x1a83   :  { %5267 = vadd.xlane.f32.xlu1 %v5266_v48 }
0x1a85   :  { %v10897_v49 = vpop.eup %10896 }
0x1a86   :  { %v5269_v50 = vsel %vm829_vm5, %v10897_v49, 0.0 }
0x1a87   :  { %5270 = vadd.xlane.f32.xlu0 %v5269_v50 }
0x1b0c   :  { %v5268_v31 = vpop.xlane.xlu1 %5267 }
0x1b0d   :  { %10898 = vrcp.f32 %v5268_v31 }
0x1b10   :  { %v5271_v54 = vpop.xlane.xlu0 %5270 }
0x1b11   :  { %10900 = vrcp.f32 %v5271_v54 }
0x1b1a   :  { %v10899_v30 = vpop.eup %10898 }
0x1b1b   :  { %v5273_v57 = vmul.f32 %v10899_v30, %v10895_v47 }
0x1b1d   :  { %10432 = vmatmul.mubr.msk.f32.vlgmr.msra.gmra.mxu0 %vm829_vm5, %v5273_v57 }
0x1b1e   :  { %v10901_v58 = vpop.eup %10900  ;;  %10440 = vmatpush3.msra.mxu0 %v338_v3 }
0x1b1f   :  { %v5275_v59 = vmul.f32 %v10901_v58, %v10897_v49  ;;  %10455 = vmatprep.subr.mxu0 %v335_v4  ;;  %v9402_v58 = vld [vmem:[%s12337_s24] ss:$0 sm:$0xff] }
0x1b21   :  { %10437 = vmatmul.mubr.msk.f32.vlgmr.msra.gmra.mxu1 %vm829_vm5, %v5275_v59  ;;  %v3406_v59 = vadd.f32 %v9402_v58, %v11702_v61 }
0x1b22   :  { %10445 = vmatpush3.msra.mxu1 %v355_v52  ;;  %10452 = vmatprep.mubr.msk.f32.mxu1 %vm585_vm3, %v11676_v55 }
0x1b23   :  { %10446 = vmatprep.subr.mxu1 %v354_v62 }
0x1b24   :  { %10447 = vmatpush3.msra.mxu1 %v354_v62 }
0x1b25   :  { %10448 = vmatprep.subr.mxu1 %v353_v63 }
0x1b26   :  { %10449 = vmatpush3.msra.mxu1 %v353_v63  ;;  %v3411_v63 = vadd.f32 %v11700_v60, %v9402_v58 }
0x1b27   :  { %10450 = vmatprep.subr.mxu1 %v352_v29 }
0x1b28   :  { %10451 = vmatpush3.msra.mxu1 %v352_v29  ;;  %v3414_v29 = vadd.f32 %v3406_v59, %v11638_v13 }
0x1b29   :  { %10453 = vmatmul.mubr.msk.f32.vlgmr.msra.gmra.mxu1 %vm585_vm3, %v11678_v56  ;;  %10466 = vmatprep.subr.mxu1 %v371_v34 }
0x1b2a   :  { %10467 = vmatpush3.msra.mxu1 %v371_v34  ;;  %10474 = vmatprep.mubr.msk.f32.mxu1 %vm585_vm3, %v11676_v55 }
0x1b2b   :  { %10468 = vmatprep.subr.mxu1 %v370_v43 }
0x1b2c   :  { %10469 = vmatpush3.msra.mxu1 %v370_v43  ;;  %v3416_v43 = vsel %vm585_vm3, %v3414_v29, 0.0 }
0x1b2d   :  { %10470 = vmatprep.subr.mxu1 %v369_v0 }
0x1b2e   :  { %10471 = vmatpush3.msra.mxu1 %v369_v0 }
0x1b2f   :  { %10472 = vmatprep.subr.mxu1 %v368_v2 }
0x1b30   :  { %10473 = vmatpush3.msra.mxu1 %v368_v2  ;;  %v3415_v2 = vadd.f32 %v3411_v63, %v11640_v14 }
0x1b31   :  { %10475 = vmatmul.mubr.msk.f32.vlgmr.msra.gmra.mxu1 %vm585_vm3, %v11678_v56  ;;  %10487 = vmatprep.subr.mxu1 %v11054_v17 }
0x1b32   :  { %10489 = vmatprep.mubr.msk.f32.mxu1 %vm11055_vm4, %v11054_v17  ;;  %v3419_v61 = vsel %vm585_vm3, %v3415_v2, 0.0 }
0x1bdd   :  { %v5345_v5 = vpop.f32.mrf.mxu0 }
0x1bde   :  { %10441 = vmatprep.mubr.msk.f32.mxu0 %vm829_vm5, %v5345_v5 }
0x1bdf   :  { %v10433_v6 = vpop.f32.mrf.mxu0 }
0x1be1   :  { %v5418_v7 = vpop.f32.mrf.mxu1 }
0x1be2   :  { %10442 = vmatmul.mubr.msk.f32.vlgmr.msra.gmra.mxu0 %vm829_vm5, %v5418_v7  ;;  %v339_v7 = vld [vmem:[%s12336_s14 + $0x18] sm:$0xff]  ;;  %s11056_s14 = smov 1.0  }
0x1be3   :  { %10456 = vmatpush3.msra.mxu0 %v335_v4  ;;  %v10438_v53 = vpop.f32.mrf.mxu1  ;;  %10463 = vmatprep.mubr.msk.f32.mxu0 %vm585_vm3, %v11676_v55 }
0x1be4   :  { %10457 = vmatprep.subr.mxu0 %v334_v8 }
0x1be5   :  { %10458 = vmatpush3.msra.mxu0 %v334_v8 }
0x1be6   :  { %10459 = vmatprep.subr.mxu0 %v333_v16 }
0x1be7   :  { %10460 = vmatpush3.msra.mxu0 %v333_v16 }
0x1be8   :  { %10461 = vmatprep.subr.mxu0 %v332_v51 }
0x1be9   :  { %10462 = vmatpush3.msra.mxu0 %v332_v51  ;;  %v10454_v18 = vpop.f32.mrf.mxu1 }
0x1bea   :  { %10464 = vmatmul.mubr.msk.f32.vlgmr.msra.gmra.mxu0 %vm585_vm3, %v11678_v56  ;;  %10477 = vmatprep.subr.mxu0 %v11054_v17  ;;  %v5583_v1 = vadd.f32 %v10454_v18, %v9462_v39 }
0x1beb   :  { %10479 = vmatprep.mubr.msk.f32.mxu0 %vm11055_vm4, %v11054_v17  ;;  %v5577_v19 = vpop.f32.mrf.mxu1 }
0x1bec   :  { %v5578_v40 = vadd.f32 %v9462_v39, %v5577_v19 }
0x1bf1   :  { %v10476_v21 = vpop.f32.mrf.mxu1 }
0x1bf2   :  { %v5745_v22 = vadd.f32 %v10476_v21, %v9468_v20 }
0x1bf3   :  { %v5739_v23 = vpop.f32.mrf.mxu1 }
0x1bf4   :  { %v5740_v24 = vadd.f32 %v9468_v20, %v5739_v23  ;;  %v9479_v20 = vld [vmem:[%s12338_s30] ss:$0 sm:$0xff]  ;;  %s11057_s30 = smov [#allocation2]  }
0x1bf6   :  { %10488 = vmatpush3.msra.mxu1 %v5740_v24 }
0x1bf7   :  { %10497 = vmatprep.subr.mxu1 %v339_v7 }
0x1ca2   :  { %v10443_v26 = vpop.f32.mrf.mxu0 }
0x1ca3   :  { %v11899_v28 = vadd.f32 %v10443_v26, %v4852_v25 }
0x1ca4   :  { %v5494_v32 = vpop.f32.mrf.mxu0 }
0x1ca5   :  { %v11901_v33 = vadd.f32 %v5494_v32, %v4847_v27 }
0x1caa   :  { %v10465_v35 = vpop.f32.mrf.mxu0 }
0x1cab   :  { %v5664_v42 = vadd.f32 %v10465_v35, %v9465_v36 }
0x1cac   :  { %v5658_v37 = vpop.f32.mrf.mxu0 }
0x1cad   :  { %v5659_v38 = vadd.f32 %v9465_v36, %v5658_v37 }
0x1caf   :  { %10478 = vmatpush3.xpose.msk.msra.mxu0 %vm829_vm5, %v5659_v38 }
0x1cb0   :  { %10482 = vmatprep.subr.mxu0 %v11054_v17 }
0x1cb2   :  { %10480 = vmatmul.mubr.msk.f32.vlgmr.msra.gmra.mxu0 %vm829_vm5, %v5578_v40 }
0x1cb3   :  { %10483 = vmatpush3.xpose.msk.msra.mxu0 %vm829_vm5, %v5664_v42  ;;  %10484 = vmatprep.mubr.msk.f32.mxu0 %vm11055_vm4, %v11054_v17 }
0x1cb4   :  { %10492 = vmatprep.subr.mxu0 %v11054_v17 }
0x1cb6   :  { %10485 = vmatmul.mubr.msk.f32.vlgmr.msra.gmra.mxu0 %vm829_vm5, %v5583_v1  ;;  %v238_v1 = vld [vmem:[%s12339_s6 + $0x18] sm:$0xff] }
0x1cb7   :  { %10493 = vmatpush3.msra.mxu0 %v5745_v22  ;;  %10494 = vmatprep.mubr.msk.f32.mxu0 %vm11055_vm4, %v11054_v17 }
0x1d72   :  { %v5820_v11 = vpop.f32.mrf.mxu0 }
0x1d73   :  { %v5900_v12 = vmul.f32 0.35355338, %v5820_v11  ;;  %v235_v11 = vld [vmem:[%s12339_s6] sm:$0xff] }
0x1d74   :  { %v10481_v41 = vpop.f32.mrf.mxu0 }
0x1d75   :  { %v5902_v44 = vsel %vm3954_vm11, %v5900_v12, -1e+09 }
0x1d76   :  { %v5896_v45 = vpop.f32.mrf.mxu0  ;;  %v5904_v46 = vsel %vm829_vm5, %v5902_v44, -inf }
0x1d77   :  { %v5901_v47 = vmul.f32 0.35355338, %v5896_v45  ;;  %5905 = vmax.xlane.f32.xlu1 %v5904_v46 }
0x1d78   :  { %v10486_v48 = vpop.f32.mrf.mxu0 }
0x1d79   :  { %v5903_v49 = vsel %vm3955_vm10, %v5901_v47, -1e+09 }
0x1d7a   :  { %v5907_v50 = vsel %vm829_vm5, %v5903_v49, -inf }
0x1d7b   :  { %5908 = vmax.xlane.f32.xlu0 %v5907_v50 }
0x1e00   :  { %v5906_v52 = vpop.xlane.xlu1 %5905 }
0x1e01   :  { %v5910_v31 = vsub.f32 %v5902_v44, %v5906_v52 }
0x1e03   :  { %v5912_v54 = vmul.f32 1.442695, %v5910_v31 }
0x1e04   :  { %v5909_v30 = vpop.xlane.xlu0 %5908 }
0x1e05   :  { %10902 = vpow2.f32 %v5912_v54  ;;  %v5911_v10 = vsub.f32 %v5903_v49, %v5909_v30 }
0x1e07   :  { %v5914_v57 = vmul.f32 1.442695, %v5911_v10 }
0x1e09   :  { %10904 = vpow2.f32 %v5914_v57 }
0x1e12   :  { %v10903_v62 = vpop.eup %10902 }
0x1e13   :  { %v5916_v9 = vsel %vm829_vm5, %v10903_v62, 0.0 }
0x1e14   :  { %5917 = vadd.xlane.f32.xlu1 %v5916_v9 }
0x1e16   :  { %v10905_v34 = vpop.eup %10904 }
0x1e17   :  { %v5919_v0 = vsel %vm829_vm5, %v10905_v34, 0.0 }
0x1e18   :  { %3417 = vadd.xlane.f32.xlu1 %v3416_v43  ;;  %5920 = vadd.xlane.f32.xlu0 %v5919_v0  ;;  %v9406_v43 = vld [vmem:[%s12341_s20] ss:$0 sm:$0xff] }
0x1e1c   :  { %3420 = vadd.xlane.f32.xlu0 %v3419_v61 }
0x1e9d   :  { %v5918_v3 = vpop.xlane.xlu1 %5917 }
0x1e9e   :  { %10906 = vrcp.f32 %v5918_v3  ;;  %v258_v3 = vld [vmem:[%s12342_s27 + $0x18] sm:$0xff] }
0x1e9f   :  { %10502 = vmatprep.subr.mxu0 %v258_v3 }
0x1ea1   :  { %v5921_v60 = vpop.xlane.xlu0 %5920  ;;  %v3418_v18 = vpop.xlane.xlu1 %3417 }
0x1ea2   :  { %10908 = vrcp.f32 %v5921_v60  ;;  %v3422_v22 = vmul.f32 0.03125, %v3418_v18  ;;  %v257_v60 = vld [vmem:[%s12342_s27 + $0x10] sm:$0xff] }
0x1ea4   :  { %v3424_v32 = vsub.f32 %v3414_v29, %v3422_v22 }
0x1ea5   :  { %v3421_v51 = vpop.xlane.xlu0 %3420 }
0x1ea6   :  { %v3423_v19 = vmul.f32 0.03125, %v3421_v51  ;;  %v3426_v40 = vmul.f32 %v3424_v32, %v3424_v32 }
0x1ea8   :  { %v3425_v25 = vsub.f32 %v3415_v2, %v3423_v19  ;;  %v9480_v19 = vld [vmem:[%s12344_s15] ss:$0 sm:$0xff] }
0x1eaa   :  { %v3427_v39 = vmul.f32 %v3425_v25, %v3425_v25 }
0x1eab   :  { %v10907_v4 = vpop.eup %10906 }
0x1eac   :  { %v5923_v13 = vmul.f32 %v10907_v4, %v10903_v62  ;;  %v3431_v42 = vsel %vm585_vm3, %v3427_v39, 0.0  ;;  %v9405_v62 = vld [vmem:[%s12340_s12] ss:$0 sm:$0xff]  ;;  %v256_v4 = vld [vmem:[%s12342_s27 + $0x8] sm:$0xff] }
0x1eae   :  { %10490 = vmatmul.mubr.msk.f32.vlgmr.msra.gmra.mxu1 %vm829_vm5, %v5923_v13  ;;  %v255_v13 = vld [vmem:[%s12342_s27] sm:$0xff] }
0x1eaf   :  { %v10909_v5 = vpop.eup %10908  ;;  %10498 = vmatpush3.msra.mxu1 %v339_v7 }
0x1eb0   :  { %v5925_v6 = vmul.f32 %v10909_v5, %v10905_v34  ;;  %10513 = vmatprep.subr.mxu1 %v238_v1  ;;  %v274_v5 = vld [vmem:[%s12343_s4 + $0x18] sm:$0xff] }
0x1eb2   :  { %10495 = vmatmul.mubr.msk.f32.vlgmr.msra.gmra.mxu0 %vm829_vm5, %v5925_v6 }
0x1eb3   :  { %10503 = vmatpush3.msra.mxu0 %v258_v3 }
0x1eb4   :  { %10504 = vmatprep.subr.mxu0 %v257_v60 }
0x1eb5   :  { %10505 = vmatpush3.msra.mxu0 %v257_v60  ;;  %v262_v60 = vld [vmem:[%s12342_s27 + $0x38] sm:$0xff] }
0x1eb6   :  { %10506 = vmatprep.subr.mxu0 %v256_v4 }
0x1eb7   :  { %10507 = vmatpush3.msra.mxu0 %v256_v4  ;;  %v242_v4 = vld [vmem:[%s12339_s6 + $0x38] sm:$0xff] }
0x1eb8   :  { %10508 = vmatprep.subr.mxu0 %v255_v13 }
0x1eb9   :  { %10509 = vmatpush3.msra.mxu0 %v255_v13 }
0x1eba   :  { %10524 = vmatprep.subr.mxu0 %v274_v5 }
0x1f6e   :  { %v5995_v14 = vpop.f32.mrf.mxu1 }
0x1f6f   :  { %10499 = vmatprep.mubr.msk.f32.mxu1 %vm829_vm5, %v5995_v14 }
0x1f70   :  { %v10491_v8 = vpop.f32.mrf.mxu1 }
0x1f72   :  { %v6068_v53 = vpop.f32.mrf.mxu0 }
0x1f73   :  { %10500 = vmatmul.mubr.msk.f32.vlgmr.msra.gmra.mxu1 %vm829_vm5, %v6068_v53 }
0x1f74   :  { %v10496_v16 = vpop.f32.mrf.mxu0  ;;  %10514 = vmatpush3.msra.mxu1 %v238_v1 }
0x2033   :  { %v10501_v21 = vpop.f32.mrf.mxu1 }
0x2034   :  { %v6154_v23 = vadd.f32 %v10501_v21, %v11899_v28 }
0x2035   :  { %v6144_v24 = vpop.f32.mrf.mxu1 }
0x2036   :  { %v6162_v26 = vadd.f32 %v9479_v20, %v6154_v23  ;;  %v6153_v27 = vadd.f32 %v6144_v24, %v11901_v33  ;;  %v3428_v33 = vsel %vm585_vm3, %v3426_v40, 0.0  ;;  %v9481_v23 = vld [vmem:[%s12345_s16] ss:$0 sm:$0xff] }
0x2038   :  { %v6161_v35 = vadd.f32 %v9479_v20, %v6153_v27  ;;  %v6164_v36 = vadd.f32 %v6162_v26, %v11678_v56  ;;  %v237_v56 = vld [vmem:[%s12339_s6 + $0x10] sm:$0xff] }
0x2039   :  { %10515 = vmatprep.subr.mxu1 %v237_v56  ;;  %v273_v27 = vld [vmem:[%s12343_s4 + $0x10] sm:$0xff] }
0x203a   :  { %v6168_v37 = vsel %vm585_vm3, %v6164_v36, 0.0  ;;  %v6163_v38 = vadd.f32 %v6161_v35, %v11676_v55  ;;  %10516 = vmatpush3.msra.mxu1 %v237_v56  ;;  %v236_v55 = vld [vmem:[%s12339_s6 + $0x8] sm:$0xff]  ;;  %v271_v35 = vld [vmem:[%s12343_s4] sm:$0xff] }
0x203b   :  { %6169 = vadd.xlane.f32.xlu0 %v6168_v37  ;;  %10517 = vmatprep.subr.mxu1 %v236_v55  ;;  %v9488_v56 = vld [vmem:[%s12348_s23] ss:$0 sm:$0xff] }
0x203c   :  { %v6165_v28 = vsel %vm585_vm3, %v6163_v38, 0.0  ;;  %10518 = vmatpush3.msra.mxu1 %v236_v55 }
0x203d   :  { %6166 = vadd.xlane.f32.xlu1 %v6165_v28  ;;  %10519 = vmatprep.subr.mxu1 %v235_v11 }
0x203e   :  { %10520 = vmatpush3.msra.mxu1 %v235_v11 }
0x203f   :  { %3432 = vadd.xlane.f32.xlu0 %v3431_v42  ;;  %10535 = vmatprep.subr.mxu1 %v11054_v17  ;;  %v9482_v42 = vld [vmem:[%s12347_s22] ss:$0 sm:$0xff] }
0x2041   :  { %3429 = vadd.xlane.f32.xlu1 %v3428_v33 }
0x20c4   :  { %v6170_v12 = vpop.xlane.xlu0 %6169 }
0x20c5   :  { %v6172_v41 = vmul.f32 0.03125, %v6170_v12 }
0x20c6   :  { %v6167_v44 = vpop.xlane.xlu1 %6166 }
0x20c7   :  { %v6174_v45 = vsub.f32 %v6164_v36, %v6172_v41  ;;  %v6171_v46 = vmul.f32 0.03125, %v6167_v44  ;;  %v9485_v36 = vld [vmem:[%s12346_s18] ss:$0 sm:$0xff] }
0x20c8   :  { %v3433_v47 = vpop.xlane.xlu0 %3432 }
0x20c9   :  { %v6173_v48 = vsub.f32 %v6163_v38, %v6171_v46  ;;  %v3435_v49 = vmul.f32 0.03125, %v3433_v47  ;;  %v6176_v50 = vmul.f32 %v6174_v45, %v6174_v45 }
0x20ca   :  { %v3430_v52 = vpop.xlane.xlu1 %3429 }
0x20cb   :  { %v3437_v31 = vadd.f32 1e-05, %v3435_v49  ;;  %v3434_v54 = vmul.f32 0.03125, %v3430_v52  ;;  %v6180_v30 = vsel %vm585_vm3, %v6176_v50, 0.0  ;;  %v6175_v10 = vmul.f32 %v6173_v48, %v6173_v48 }
0x20cc   :  { %6181 = vadd.xlane.f32.xlu0 %v6180_v30 }
0x20cd   :  { %10910 = vrsqrt.f32 %v3437_v31  ;;  %v3436_v57 = vadd.f32 1e-05, %v3434_v54  ;;  %v6177_v58 = vsel %vm585_vm3, %v6175_v10, 0.0 }
0x20ce   :  { %6178 = vadd.xlane.f32.xlu1 %v6177_v58 }
0x20cf   :  { %10912 = vrsqrt.f32 %v3436_v57 }
0x20da   :  { %v10911_v59 = vpop.eup %10910 }
0x20db   :  { %v3441_v63 = vmul.f32 %v10911_v59, %v3425_v25 }
0x20dc   :  { %v10913_v9 = vpop.eup %10912 }
0x20dd   :  { %v3440_v29 = vmul.f32 %v10913_v9, %v3424_v32  ;;  %v3449_v34 = vmul.f32 %v9405_v62, %v3441_v63  ;;  %v272_v32 = vld [vmem:[%s12343_s4 + $0x8] sm:$0xff] }
0x20df   :  { %v3448_v0 = vmul.f32 %v9405_v62, %v3440_v29  ;;  %v11955_v61 = vadd.f32 %v9406_v43, %v3449_v34 }
0x20e1   :  { %v11953_v2 = vadd.f32 %v9406_v43, %v3448_v0 }
0x20e3   :  { %10521 = vmatprep.mubr.msk.f32.mxu1 %vm585_vm3, %v11953_v2 }
0x20e4   :  { %10522 = vmatmul.mubr.msk.f32.vlgmr.msra.gmra.mxu1 %vm585_vm3, %v11955_v61 }
0x20e5   :  { %10537 = vmatprep.mubr.msk.f32.mxu1 %vm11055_vm4, %v11054_v17 }
0x2155   :  { %v6182_v6 = vpop.xlane.xlu0 %6181 }
0x2156   :  { %v6184_v7 = vmul.f32 0.03125, %v6182_v6 }
0x2157   :  { %v6179_v14 = vpop.xlane.xlu1 %6178 }
0x2158   :  { %v6186_v8 = vadd.f32 1e-05, %v6184_v7  ;;  %v6183_v53 = vmul.f32 0.03125, %v6179_v14  ;;  %v261_v14 = vld [vmem:[%s12342_s27 + $0x30] sm:$0xff] }
0x215a   :  { %10914 = vrsqrt.f32 %v6186_v8  ;;  %v6185_v16 = vadd.f32 1e-05, %v6183_v53  ;;  %v260_v53 = vld [vmem:[%s12342_s27 + $0x28] sm:$0xff] }
0x215c   :  { %10916 = vrsqrt.f32 %v6185_v16 }
0x2167   :  { %v10915_v51 = vpop.eup %10914 }
0x2168   :  { %v6190_v18 = vmul.f32 %v10915_v51, %v6174_v45  ;;  %v12002_v45 = vld [vmem:[%s12349_s26] sm:$0xff] }
0x2169   :  { %v10917_v20 = vpop.eup %10916  ;;  %vm6616_vm12 = vcmp.gt.f32.partialorder %v12002_v45, 0.5  ;;  %v259_v51 = vld [vmem:[%s12342_s27 + $0x20] sm:$0xff] }
0x216a   :  { %v6189_v21 = vmul.f32 %v10917_v20, %v6173_v48  ;;  %v6198_v22 = vmul.f32 %v9480_v19, %v6190_v18  ;;  %v12006_v48 = vld [vmem:[%s12349_s26 + $0x8] sm:$0xff]  ;;  %v241_v18 = vld [vmem:[%s12339_s6 + $0x30] sm:$0xff]  ;;  %v278_v20 = vld [vmem:[%s12343_s4 + $0x38] sm:$0xff] }
0x216b   :  { %vm6617_vm13 = vcmp.gt.f32.partialorder %v12006_v48, 0.5 }
0x216c   :  { %v6197_v24 = vmul.f32 %v9480_v19, %v6189_v21  ;;  %v11972_v26 = vadd.f32 %v9481_v23, %v6198_v22  ;;  %v240_v19 = vld [vmem:[%s12339_s6 + $0x28] sm:$0xff]  ;;  %v239_v21 = vld [vmem:[%s12339_s6 + $0x20] sm:$0xff]  ;;  %v277_v22 = vld [vmem:[%s12343_s4 + $0x30] sm:$0xff] }
0x216e   :  { %v11970_v25 = vadd.f32 %v9481_v23, %v6197_v24  ;;  %v276_v23 = vld [vmem:[%s12343_s4 + $0x28] sm:$0xff]  ;;  %v275_v24 = vld [vmem:[%s12343_s4 + $0x20] sm:$0xff] }
0x2170   :  { %10510 = vmatprep.mubr.msk.f32.mxu0 %vm585_vm3, %v11970_v25 }
0x2171   :  { %10511 = vmatmul.mubr.msk.f32.vlgmr.msra.gmra.mxu0 %vm585_vm3, %v11972_v26 }
0x2172   :  { %10525 = vmatpush3.msra.mxu0 %v274_v5  ;;  %10532 = vmatprep.mubr.msk.f32.mxu0 %vm585_vm3, %v11953_v2 }
0x2173   :  { %10526 = vmatprep.subr.mxu0 %v273_v27 }
0x2174   :  { %10527 = vmatpush3.msra.mxu0 %v273_v27 }
0x2175   :  { %10528 = vmatprep.subr.mxu0 %v272_v32 }
0x2176   :  { %10529 = vmatpush3.msra.mxu0 %v272_v32 }
0x2177   :  { %10530 = vmatprep.subr.mxu0 %v271_v35 }
0x2178   :  { %10531 = vmatpush3.msra.mxu0 %v271_v35 }
0x2179   :  { %10533 = vmatmul.mubr.msk.f32.vlgmr.msra.gmra.mxu0 %vm585_vm3, %v11955_v61  ;;  %10545 = vmatprep.subr.mxu0 %v11054_v17 }
0x217a   :  { %10547 = vmatprep.mubr.msk.f32.mxu0 %vm11055_vm4, %v11054_v17 }
0x21a4   :  { %v10523_v37 = vpop.f32.mrf.mxu1 }
0x21a5   :  { %v6378_v38 = vadd.f32 %v10523_v37, %v9485_v36 }
0x21a6   :  { %v6372_v39 = vpop.f32.mrf.mxu1 }
0x21a7   :  { %v6373_v28 = vadd.f32 %v9485_v36, %v6372_v39  ;;  %v9500_v39 = vld [vmem:[%s12346_s18 + $0x1] ss:$0 sm:$0xff] }
0x21a9   :  { %10536 = vmatpush3.xpose.msk.msra.mxu1 %vm829_vm5, %v6373_v28 }
0x21aa   :  { %10540 = vmatprep.subr.mxu1 %v11054_v17 }
0x2231   :  { %v10512_v40 = vpop.f32.mrf.mxu0 }
0x2232   :  { %v6291_v55 = vadd.f32 %v10512_v40, %v9482_v42 }
0x2233   :  { %v6285_v33 = vpop.f32.mrf.mxu0 }
0x2234   :  { %v6286_v1 = vadd.f32 %v9482_v42, %v6285_v33  ;;  %v9497_v33 = vld [vmem:[%s12347_s22 + $0x1] ss:$0 sm:$0xff] }
0x2236   :  { %10538 = vmatmul.mubr.msk.f32.vlgmr.msra.gmra.mxu1 %vm829_vm5, %v6286_v1 }
0x2237   :  { %10541 = vmatpush3.xpose.msk.msra.mxu1 %vm829_vm5, %v6378_v38  ;;  %10542 = vmatprep.mubr.msk.f32.mxu1 %vm11055_vm4, %v11054_v17 }
0x2238   :  { %10550 = vmatprep.subr.mxu1 %v11054_v17 }
0x2239   :  { %v10534_v11 = vpop.f32.mrf.mxu0 }
0x223a   :  { %v6459_v12 = vadd.f32 %v10534_v11, %v9488_v56  ;;  %10543 = vmatmul.mubr.msk.f32.vlgmr.msra.gmra.mxu1 %vm829_vm5, %v6291_v55  ;;  %v9503_v11 = vld [vmem:[%s12348_s23 + $0x1] ss:$0 sm:$0xff] }
0x223b   :  { %v6453_v41 = vpop.f32.mrf.mxu0  ;;  %10552 = vmatprep.mubr.msk.f32.mxu1 %vm11055_vm4, %v11054_v17 }
0x223c   :  { %v6454_v44 = vadd.f32 %v9488_v56, %v6453_v41  ;;  %10551 = vmatpush3.msra.mxu1 %v6459_v12 }
0x223d   :  { %10566 = vmatprep.subr.mxu1 %v242_v4 }
0x223e   :  { %10546 = vmatpush3.msra.mxu0 %v6454_v44 }
0x223f   :  { %10555 = vmatprep.subr.mxu0 %v262_v60 }
0x22f6   :  { %v6534_v46 = vpop.f32.mrf.mxu1 }
0x22f7   :  { %v6614_v47 = vmul.f32 0.35355338, %v6534_v46 }
0x22f8   :  { %v10539_v49 = vpop.f32.mrf.mxu1 }
0x22f9   :  { %v6618_v50 = vsel %vm6616_vm12, %v6614_v47, -1e+09 }
0x22fa   :  { %v6610_v52 = vpop.f32.mrf.mxu1  ;;  %v6620_v31 = vsel %vm829_vm5, %v6618_v50, -inf }
0x22fb   :  { %v6615_v54 = vmul.f32 0.35355338, %v6610_v52  ;;  %6621 = vmax.xlane.f32.xlu0 %v6620_v31 }
0x22fc   :  { %v10544_v30 = vpop.f32.mrf.mxu1 }
0x22fd   :  { %v6619_v10 = vsel %vm6617_vm13, %v6615_v54, -1e+09 }
0x22fe   :  { %v6623_v57 = vsel %vm829_vm5, %v6619_v10, -inf }
0x22ff   :  { %6624 = vmax.xlane.f32.xlu1 %v6623_v57 }
0x2384   :  { %v6622_v58 = vpop.xlane.xlu0 %6621 }
0x2385   :  { %v6626_v59 = vsub.f32 %v6618_v50, %v6622_v58 }
0x2387   :  { %v6628_v62 = vmul.f32 1.442695, %v6626_v59 }
0x2388   :  { %v6625_v63 = vpop.xlane.xlu1 %6624 }
0x2389   :  { %10918 = vpow2.f32 %v6628_v62  ;;  %v6627_v9 = vsub.f32 %v6619_v10, %v6625_v63 }
0x238b   :  { %v6630_v29 = vmul.f32 1.442695, %v6627_v9 }
0x238d   :  { %10920 = vpow2.f32 %v6630_v29 }
0x2396   :  { %v10919_v34 = vpop.eup %10918 }
0x2397   :  { %v6632_v43 = vsel %vm829_vm5, %v10919_v34, 0.0 }
0x2398   :  { %6633 = vadd.xlane.f32.xlu0 %v6632_v43 }
0x239a   :  { %v10921_v0 = vpop.eup %10920 }
0x239b   :  { %v6635_v3 = vsel %vm829_vm5, %v10921_v0, 0.0 }
0x239c   :  { %6636 = vadd.xlane.f32.xlu1 %v6635_v3 }
0x2421   :  { %v6634_v13 = vpop.xlane.xlu0 %6633 }
0x2422   :  { %10922 = vrcp.f32 %v6634_v13 }
0x2425   :  { %v6637_v5 = vpop.xlane.xlu1 %6636 }
0x2426   :  { %10924 = vrcp.f32 %v6637_v5 }
0x242f   :  { %v10923_v6 = vpop.eup %10922 }
0x2430   :  { %v6639_v7 = vmul.f32 %v10923_v6, %v10919_v34 }
0x2432   :  { %10548 = vmatmul.mubr.msk.f32.vlgmr.msra.gmra.mxu0 %vm829_vm5, %v6639_v7 }
0x2433   :  { %v10925_v8 = vpop.eup %10924  ;;  %10556 = vmatpush3.msra.mxu0 %v262_v60  ;;  %10563 = vmatprep.mubr.msk.f32.mxu0 %vm585_vm3, %v11970_v25 }
0x2434   :  { %10557 = vmatprep.subr.mxu0 %v261_v14  ;;  %v6641_v16 = vmul.f32 %v10925_v8, %v10921_v0 }
0x2435   :  { %10558 = vmatpush3.msra.mxu0 %v261_v14 }
0x2436   :  { %10559 = vmatprep.subr.mxu0 %v260_v53  ;;  %10553 = vmatmul.mubr.msk.f32.vlgmr.msra.gmra.mxu1 %vm829_vm5, %v6641_v16  ;;  %v245_v16 = vld [vmem:[%s12339_s6 + $0x50] sm:$0xff] }
0x2437   :  { %10560 = vmatpush3.msra.mxu0 %v260_v53  ;;  %10567 = vmatpush3.msra.mxu1 %v242_v4  ;;  %v251_v4 = vld [vmem:[%s12350_s28] sm:$0xff]  ;;  %v246_v53 = vld [vmem:[%s12339_s6 + $0x58] sm:$0xff] }
0x2438   :  { %10561 = vmatprep.subr.mxu0 %v259_v51  ;;  %10568 = vmatprep.subr.mxu1 %v241_v18 }
0x2439   :  { %10574 = vmatprep.mubr.msk.f32.mxu1 %vm585_vm3, %v11953_v2  ;;  %10562 = vmatpush3.msra.mxu0 %v259_v51  ;;  %v244_v51 = vld [vmem:[%s12339_s6 + $0x48] sm:$0xff] }
0x243a   :  { %10569 = vmatpush3.msra.mxu1 %v241_v18  ;;  %10564 = vmatmul.mubr.msk.f32.vlgmr.msra.gmra.mxu0 %vm585_vm3, %v11972_v26  ;;  %v243_v18 = vld [vmem:[%s12339_s6 + $0x40] sm:$0xff] }
0x243b   :  { %10570 = vmatprep.subr.mxu1 %v240_v19  ;;  %10577 = vmatprep.subr.mxu0 %v278_v20 }
0x243c   :  { %10571 = vmatpush3.msra.mxu1 %v240_v19  ;;  %10578 = vmatpush3.msra.mxu0 %v278_v20  ;;  %v252_v19 = vld [vmem:[%s12350_s28 + $0x8] sm:$0xff]  ;;  %v266_v20 = vld [vmem:[%s12342_s27 + $0x58] sm:$0xff] }
0x243d   :  { %10585 = vmatprep.mubr.msk.f32.mxu0 %vm585_vm3, %v11953_v2  ;;  %10572 = vmatprep.subr.mxu1 %v239_v21 }
0x243e   :  { %10579 = vmatprep.subr.mxu0 %v277_v22  ;;  %10573 = vmatpush3.msra.mxu1 %v239_v21 }
0x243f   :  { %10580 = vmatpush3.msra.mxu0 %v277_v22  ;;  %10575 = vmatmul.mubr.msk.f32.vlgmr.msra.gmra.mxu1 %vm585_vm3, %v11955_v61 }
0x2440   :  { %10581 = vmatprep.subr.mxu0 %v276_v23  ;;  %10588 = vmatprep.subr.mxu1 %v11054_v17 }
0x2441   :  { %10582 = vmatpush3.msra.mxu0 %v276_v23  ;;  %10590 = vmatprep.mubr.msk.f32.mxu1 %vm11055_vm4, %v11054_v17 }
0x2442   :  { %10583 = vmatprep.subr.mxu0 %v275_v24 }
0x2443   :  { %10584 = vmatpush3.msra.mxu0 %v275_v24  ;;  %v265_v24 = vld [vmem:[%s12342_s27 + $0x50] sm:$0xff] }
0x2444   :  { %10586 = vmatmul.mubr.msk.f32.vlgmr.msra.gmra.mxu0 %vm585_vm3, %v11955_v61  ;;  %10598 = vmatprep.subr.mxu0 %v11054_v17 }
0x2445   :  { %10600 = vmatprep.mubr.msk.f32.mxu0 %vm11055_vm4, %v11054_v17 }
0x24f2   :  { %v12049_v27 = vpop.f32.mrf.mxu0 }
0x24f4   :  { %v10549_v32 = vpop.f32.mrf.mxu0 }
0x24f5   :  { %v264_v32 = vld [vmem:[%s12342_s27 + $0x48] sm:$0xff] }
0x24f6   :  { %v12051_v35 = vpop.f32.mrf.mxu1 }
0x24f8   :  { %v10554_v36 = vpop.f32.mrf.mxu1 }
0x24fa   :  { %v10565_v37 = vpop.f32.mrf.mxu0 }
0x24fb   :  { %v6866_v44 = vadd.f32 %v10565_v37, %v9497_v33  ;;  %v282_v37 = vld [vmem:[%s12343_s4 + $0x58] sm:$0xff] }
0x24fc   :  { %v6860_v40 = vpop.f32.mrf.mxu0 }
0x24fd   :  { %v6861_v56 = vadd.f32 %v9497_v33, %v6860_v40  ;;  %v280_v40 = vld [vmem:[%s12343_s4 + $0x48] sm:$0xff]  ;;  %v279_v33 = vld [vmem:[%s12343_s4 + $0x40] sm:$0xff] }
0x24ff   :  { %v10576_v38 = vpop.f32.mrf.mxu1 }
0x2500   :  { %v6947_v55 = vadd.f32 %v10576_v38, %v9500_v39  ;;  %v281_v38 = vld [vmem:[%s12343_s4 + $0x50] sm:$0xff] }
0x2501   :  { %v6941_v28 = vpop.f32.mrf.mxu1 }
0x2502   :  { %v6942_v42 = vadd.f32 %v9500_v39, %v6941_v28  ;;  %v9519_v28 = vld [vmem:[%s12346_s18 + $0x2] ss:$0 sm:$0xff] }
0x2504   :  { %v10587_v1 = vpop.f32.mrf.mxu0  ;;  %10589 = vmatpush3.xpose.msk.msra.mxu1 %vm829_vm5, %v6942_v42 }
0x2505   :  { %10593 = vmatprep.subr.mxu1 %v11054_v17  ;;  %v7028_v46 = vadd.f32 %v10587_v1, %v9503_v11 }
0x2506   :  { %v7022_v12 = vpop.f32.mrf.mxu0 }
0x2507   :  { %v7023_v41 = vadd.f32 %v9503_v11, %v7022_v12  ;;  %10591 = vmatmul.mubr.msk.f32.vlgmr.msra.gmra.mxu1 %vm829_vm5, %v6861_v56 }
0x2508   :  { %10594 = vmatpush3.xpose.msk.msra.mxu1 %vm829_vm5, %v6947_v55  ;;  %10595 = vmatprep.mubr.msk.f32.mxu1 %vm11055_vm4, %v11054_v17 }
0x2509   :  { %10599 = vmatpush3.msra.mxu0 %v7023_v41  ;;  %10603 = vmatprep.subr.mxu1 %v11054_v17 }
0x250a   :  { %10608 = vmatprep.subr.mxu0 %v252_v19 }
0x250b   :  { %10596 = vmatmul.mubr.msk.f32.vlgmr.msra.gmra.mxu1 %vm829_vm5, %v6866_v44  ;;  %v9516_v44 = vld [vmem:[%s12347_s22 + $0x2] ss:$0 sm:$0xff] }
0x250c   :  { %10604 = vmatpush3.msra.mxu1 %v7028_v46  ;;  %10605 = vmatprep.mubr.msk.f32.mxu1 %vm11055_vm4, %v11054_v17 }
0x250d   :  { %10613 = vmatprep.subr.mxu1 %v251_v4 }
0x25c7   :  { %v7103_v47 = vpop.f32.mrf.mxu1 }
0x25c8   :  { %v7183_v49 = vmul.f32 0.35355338, %v7103_v47 }
0x25c9   :  { %v10592_v50 = vpop.f32.mrf.mxu1 }
0x25ca   :  { %v7185_v52 = vsel %vm6616_vm12, %v7183_v49, -1e+09  ;;  %v9522_v49 = vld [vmem:[%s12348_s23 + $0x2] ss:$0 sm:$0xff] }
0x25cb   :  { %v7179_v31 = vpop.f32.mrf.mxu1  ;;  %v7187_v54 = vsel %vm829_vm5, %v7185_v52, -inf }
0x25cc   :  { %v7184_v30 = vmul.f32 0.35355338, %v7179_v31  ;;  %7188 = vmax.xlane.f32.xlu1 %v7187_v54 }
0x25cd   :  { %v10597_v10 = vpop.f32.mrf.mxu1 }
0x25ce   :  { %v7186_v57 = vsel %vm6617_vm13, %v7184_v30, -1e+09 }
0x25cf   :  { %v7190_v58 = vsel %vm829_vm5, %v7186_v57, -inf }
0x25d0   :  { %7191 = vmax.xlane.f32.xlu0 %v7190_v58 }
0x2655   :  { %v7189_v59 = vpop.xlane.xlu1 %7188 }
0x2656   :  { %v7193_v62 = vsub.f32 %v7185_v52, %v7189_v59 }
0x2658   :  { %v7195_v63 = vmul.f32 1.442695, %v7193_v62 }
0x2659   :  { %v7192_v9 = vpop.xlane.xlu0 %7191 }
0x265a   :  { %10926 = vpow2.f32 %v7195_v63  ;;  %v7194_v29 = vsub.f32 %v7186_v57, %v7192_v9 }
0x265c   :  { %v7197_v34 = vmul.f32 1.442695, %v7194_v29 }
0x265e   :  { %10928 = vpow2.f32 %v7197_v34 }
0x2667   :  { %v10927_v43 = vpop.eup %10926 }
0x2668   :  { %v7199_v0 = vsel %vm829_vm5, %v10927_v43, 0.0 }
0x2669   :  { %7200 = vadd.xlane.f32.xlu1 %v7199_v0 }
0x266b   :  { %v10929_v3 = vpop.eup %10928 }
0x266c   :  { %v7202_v60 = vsel %vm829_vm5, %v10929_v3, 0.0 }
0x266d   :  { %7203 = vadd.xlane.f32.xlu0 %v7202_v60 }
0x26f2   :  { %v7201_v13 = vpop.xlane.xlu1 %7200 }
0x26f3   :  { %10930 = vrcp.f32 %v7201_v13 }
0x26f6   :  { %v7204_v5 = vpop.xlane.xlu0 %7203 }
0x26f7   :  { %10932 = vrcp.f32 %v7204_v5 }
0x2700   :  { %v10931_v6 = vpop.eup %10930 }
0x2701   :  { %v7206_v7 = vmul.f32 %v10931_v6, %v10927_v43 }
0x2703   :  { %10601 = vmatmul.mubr.msk.f32.vlgmr.msra.gmra.mxu0 %vm829_vm5, %v7206_v7 }
0x2704   :  { %v10933_v14 = vpop.eup %10932  ;;  %10609 = vmatpush3.msra.mxu0 %v252_v19 }
0x2705   :  { %v7208_v8 = vmul.f32 %v10933_v14, %v10929_v3  ;;  %10618 = vmatprep.subr.mxu0 %v266_v20 }
0x2707   :  { %10606 = vmatmul.mubr.msk.f32.vlgmr.msra.gmra.mxu1 %vm829_vm5, %v7208_v8 }
0x2708   :  { %10615 = vmatprep.mubr.msk.f32.mxu1 %vm829_vm5, %v12049_v27  ;;  %10614 = vmatpush3.msra.mxu1 %v251_v4 }
0x2709   :  { %10629 = vmatprep.subr.mxu1 %v246_v53 }
0x270b   :  { %10616 = vmatmul.mubr.msk.f32.vlgmr.msra.gmra.mxu1 %vm829_vm5, %v12051_v35  ;;  %v263_v35 = vld [vmem:[%s12342_s27 + $0x40] sm:$0xff] }
0x270c   :  { %10630 = vmatpush3.msra.mxu1 %v246_v53  ;;  %10637 = vmatprep.mubr.msk.f32.mxu1 %vm585_vm3, %v11953_v2  ;;  %v270_v53 = vld [vmem:[%s12342_s27 + $0x78] sm:$0xff] }
0x270d   :  { %10631 = vmatprep.subr.mxu1 %v245_v16 }
0x270e   :  { %10632 = vmatpush3.msra.mxu1 %v245_v16 }
0x270f   :  { %10633 = vmatprep.subr.mxu1 %v244_v51 }
0x2710   :  { %10634 = vmatpush3.msra.mxu1 %v244_v51 }
0x2711   :  { %10635 = vmatprep.subr.mxu1 %v243_v18 }
0x2712   :  { %10636 = vmatpush3.msra.mxu1 %v243_v18 }
0x2713   :  { %10638 = vmatmul.mubr.msk.f32.vlgmr.msra.gmra.mxu1 %vm585_vm3, %v11955_v61  ;;  %10651 = vmatprep.subr.mxu1 %v11054_v17 }
0x2714   :  { %10653 = vmatprep.mubr.msk.f32.mxu1 %vm11055_vm4, %v11054_v17 }
0x27c3   :  { %v7278_v21 = vpop.f32.mrf.mxu0 }
0x27c4   :  { %10610 = vmatprep.mubr.msk.f32.mxu0 %vm829_vm5, %v7278_v21 }
0x27c5   :  { %v10602_v22 = vpop.f32.mrf.mxu0 }
0x27c6   :  { %v269_v22 = vld [vmem:[%s12342_s27 + $0x70] sm:$0xff] }
0x27c7   :  { %v7351_v23 = vpop.f32.mrf.mxu1 }
0x27c8   :  { %10611 = vmatmul.mubr.msk.f32.vlgmr.msra.gmra.mxu0 %vm829_vm5, %v7351_v23  ;;  %v268_v23 = vld [vmem:[%s12342_s27 + $0x68] sm:$0xff] }
0x27c9   :  { %10619 = vmatpush3.msra.mxu0 %v266_v20  ;;  %v10607_v27 = vpop.f32.mrf.mxu1  ;;  %10626 = vmatprep.mubr.msk.f32.mxu0 %vm585_vm3, %v11970_v25 }
0x27ca   :  { %10620 = vmatprep.subr.mxu0 %v265_v24  ;;  %v286_v27 = vld [vmem:[%s12343_s4 + $0x78] sm:$0xff] }
0x27cb   :  { %10621 = vmatpush3.msra.mxu0 %v265_v24  ;;  %v12101_v36 = vpop.f32.mrf.mxu1  ;;  %v267_v24 = vld [vmem:[%s12342_s27 + $0x60] sm:$0xff] }
0x27cc   :  { %10622 = vmatprep.subr.mxu0 %v264_v32 }
0x27cd   :  { %10623 = vmatpush3.msra.mxu0 %v264_v32  ;;  %v12107_v39 = vpop.f32.mrf.mxu1  ;;  %v285_v32 = vld [vmem:[%s12343_s4 + $0x70] sm:$0xff] }
0x27ce   :  { %10624 = vmatprep.subr.mxu0 %v263_v35 }
0x27cf   :  { %10625 = vmatpush3.msra.mxu0 %v263_v35  ;;  %v284_v35 = vld [vmem:[%s12343_s4 + $0x68] sm:$0xff] }
0x27d0   :  { %10627 = vmatmul.mubr.msk.f32.vlgmr.msra.gmra.mxu0 %vm585_vm3, %v11972_v26  ;;  %10640 = vmatprep.subr.mxu0 %v282_v37 }
0x27d1   :  { %10641 = vmatpush3.msra.mxu0 %v282_v37  ;;  %10648 = vmatprep.mubr.msk.f32.mxu0 %vm585_vm3, %v11953_v2  ;;  %v283_v37 = vld [vmem:[%s12343_s4 + $0x60] sm:$0xff] }
0x27d2   :  { %10642 = vmatprep.subr.mxu0 %v281_v38 }
0x27d3   :  { %v10639_v42 = vpop.f32.mrf.mxu1  ;;  %10643 = vmatpush3.msra.mxu0 %v281_v38  ;;  %v253_v38 = vld [vmem:[%s12350_s28 + $0x10] sm:$0xff] }
0x27d4   :  { %v7676_v1 = vadd.f32 %v10639_v42, %v9519_v28  ;;  %10644 = vmatprep.subr.mxu0 %v280_v40 }
0x27d5   :  { %v7670_v56 = vpop.f32.mrf.mxu1  ;;  %10645 = vmatpush3.msra.mxu0 %v280_v40 }
0x27d6   :  { %v7671_v55 = vadd.f32 %v9519_v28, %v7670_v56  ;;  %10646 = vmatprep.subr.mxu0 %v279_v33  ;;  %v250_v28 = vld [vmem:[%s12339_s6 + $0x78] sm:$0xff] }
0x27d7   :  { %10647 = vmatpush3.msra.mxu0 %v279_v33 }
0x27d8   :  { %10649 = vmatmul.mubr.msk.f32.vlgmr.msra.gmra.mxu0 %vm585_vm3, %v11955_v61  ;;  %10652 = vmatpush3.xpose.msk.msra.mxu1 %vm829_vm5, %v7671_v55  ;;  %v248_v55 = vld [vmem:[%s12339_s6 + $0x68] sm:$0xff] }
0x27d9   :  { %10656 = vmatprep.subr.mxu1 %v11054_v17  ;;  %10661 = vmatprep.subr.mxu0 %v11054_v17 }
0x27da   :  { %10663 = vmatprep.mubr.msk.f32.mxu0 %vm11055_vm4, %v11054_v17 }
0x2888   :  { %v12121_v11 = vpop.f32.mrf.mxu0 }
0x288a   :  { %v12123_v12 = vpop.f32.mrf.mxu0 }
0x2890   :  { %v10628_v41 = vpop.f32.mrf.mxu0 }
0x2891   :  { %v7595_v50 = vadd.f32 %v10628_v41, %v9516_v44  ;;  %v247_v41 = vld [vmem:[%s12339_s6 + $0x60] sm:$0xff] }
0x2892   :  { %v7589_v46 = vpop.f32.mrf.mxu0 }
0x2893   :  { %v7590_v47 = vadd.f32 %v9516_v44, %v7589_v46 }
0x2895   :  { %10654 = vmatmul.mubr.msk.f32.vlgmr.msra.gmra.mxu1 %vm829_vm5, %v7590_v47 }
0x2896   :  { %10657 = vmatpush3.xpose.msk.msra.mxu1 %vm829_vm5, %v7676_v1  ;;  %10658 = vmatprep.mubr.msk.f32.mxu1 %vm11055_vm4, %v11054_v17  ;;  %v249_v1 = vld [vmem:[%s12339_s6 + $0x70] sm:$0xff]  ;;  %s9260_s6 = sshll.u32 %s11057_s30, 4  ;;  %s9261_s6 = int_to_ptr.vmem [resolvable:$true] %s9260_s6 }
0x2897   :  { %10666 = vmatprep.subr.mxu1 %v11054_v17  ;;  %s10977_s27 = scalar_lea.vmem %s9261_s6, 16  ;;  %s10981_s4 = scalar_lea.vmem %s9261_s6, 32 }
0x2898   :  { %v10650_v52 = vpop.f32.mrf.mxu0  ;;  %p10978_p0 = scmp.ne.s32.totalorder %s9261_s6, %s10977_s27  ;;  %p10982_p1 = scmp.lt.s32.totalorder %s9261_s6, %s9261_s6 }
0x2899   :  { %v7757_v31 = vadd.f32 %v10650_v52, %v9522_v49  ;;  %10659 = vmatmul.mubr.msk.f32.vlgmr.msra.gmra.mxu1 %vm829_vm5, %v7595_v50  ;;  %p10983_p2 = scmp.lt.s32.totalorder %s10981_s4, %s10977_s27 }
0x289a   :  { %v7751_v54 = vpop.f32.mrf.mxu0  ;;  %10668 = vmatprep.mubr.msk.f32.mxu1 %vm11055_vm4, %v11054_v17 }
0x289b   :  { %v7752_v30 = vadd.f32 %v9522_v49, %v7751_v54  ;;  %10667 = vmatpush3.msra.mxu1 %v7757_v31  ;;  %v7514_v31 = vadd.f32 %v12101_v36, %v12121_v11  ;;  %p10984_p3 = por %p10983_p2, %p10982_p1 }
0x289c   :  { %10676 = vmatprep.subr.mxu1 %v270_v53 }
0x289d   :  { %10662 = vmatpush3.msra.mxu0 %v7752_v30  ;;  %p10985_p4 = pnand %p10984_p3, %p10978_p0 }
0x289e   :  { %10671 = vmatprep.subr.mxu0 %v253_v38 }
0x2955   :  { %v7832_v10 = vpop.f32.mrf.mxu1 }
0x2956   :  { %v7912_v57 = vmul.f32 0.35355338, %v7832_v10 }
0x2957   :  { %v10655_v58 = vpop.f32.mrf.mxu1 }
0x2958   :  { %v7914_v59 = vsel %vm6616_vm12, %v7912_v57, -1e+09 }
0x2959   :  { %v7908_v62 = vpop.f32.mrf.mxu1  ;;  %v7916_v63 = vsel %vm829_vm5, %v7914_v59, -inf }
0x295a   :  { %v7913_v9 = vmul.f32 0.35355338, %v7908_v62  ;;  %7917 = vmax.xlane.f32.xlu1 %v7916_v63 }
0x295b   :  { %v10660_v29 = vpop.f32.mrf.mxu1 }
0x295c   :  { %v7915_v34 = vsel %vm6617_vm13, %v7913_v9, -1e+09  ;;  %v9533_v9 = vld [vmem:[%s12347_s22 + $0x3] ss:$0 sm:$0xff] }
0x295d   :  { %v7919_v43 = vsel %vm829_vm5, %v7915_v34, -inf }
0x295e   :  { %7920 = vmax.xlane.f32.xlu0 %v7919_v43 }
0x29e3   :  { %v7918_v0 = vpop.xlane.xlu1 %7917 }
0x29e4   :  { %v7922_v3 = vsub.f32 %v7914_v59, %v7918_v0  ;;  %v9536_v59 = vld [vmem:[%s12346_s18 + $0x3] ss:$0 sm:$0xff] }
0x29e6   :  { %v7924_v60 = vmul.f32 1.442695, %v7922_v3 }
0x29e7   :  { %v7921_v4 = vpop.xlane.xlu0 %7920 }
0x29e8   :  { %10934 = vpow2.f32 %v7924_v60  ;;  %v7923_v13 = vsub.f32 %v7915_v34, %v7921_v4 }
0x29ea   :  { %v7926_v5 = vmul.f32 1.442695, %v7923_v13 }
0x29ec   :  { %10936 = vpow2.f32 %v7926_v5 }
0x29f5   :  { %v10935_v6 = vpop.eup %10934 }
0x29f6   :  { %v7928_v7 = vsel %vm829_vm5, %v10935_v6, 0.0 }
0x29f7   :  { %7929 = vadd.xlane.f32.xlu1 %v7928_v7 }
0x29f9   :  { %v10937_v14 = vpop.eup %10936 }
0x29fa   :  { %v7931_v8 = vsel %vm829_vm5, %v10937_v14, 0.0 }
0x29fb   :  { %7932 = vadd.xlane.f32.xlu0 %v7931_v8 }
0x2a80   :  { %v7930_v16 = vpop.xlane.xlu1 %7929 }
0x2a81   :  { %10938 = vrcp.f32 %v7930_v16 }
0x2a84   :  { %v7933_v51 = vpop.xlane.xlu0 %7932 }
0x2a85   :  { %10940 = vrcp.f32 %v7933_v51 }
0x2a8e   :  { %v10939_v18 = vpop.eup %10938 }
0x2a8f   :  { %v7935_v19 = vmul.f32 %v10939_v18, %v10935_v6 }
0x2a91   :  { %10664 = vmatmul.mubr.msk.f32.vlgmr.msra.gmra.mxu0 %vm829_vm5, %v7935_v19 }
0x2a92   :  { %v10941_v20 = vpop.eup %10940  ;;  %10672 = vmatpush3.msra.mxu0 %v253_v38  ;;  %v9550_v38 = vld [vmem:[%s12351_s1] ss:$0 sm:$0xff] }
0x2a93   :  { %v7937_v21 = vmul.f32 %v10941_v20, %v10937_v14  ;;  %10687 = vmatprep.subr.mxu0 %v250_v28 }
0x2a95   :  { %10669 = vmatmul.mubr.msk.f32.vlgmr.msra.gmra.mxu1 %vm829_vm5, %v7937_v21 }
0x2a96   :  { %10677 = vmatpush3.msra.mxu1 %v270_v53  ;;  %10684 = vmatprep.mubr.msk.f32.mxu1 %vm585_vm3, %v11970_v25 }
0x2a97   :  { %10678 = vmatprep.subr.mxu1 %v269_v22 }
0x2a98   :  { %10679 = vmatpush3.msra.mxu1 %v269_v22 }
0x2a99   :  { %10680 = vmatprep.subr.mxu1 %v268_v23 }
0x2a9a   :  { %10681 = vmatpush3.msra.mxu1 %v268_v23 }
0x2a9b   :  { %10682 = vmatprep.subr.mxu1 %v267_v24 }
0x2a9c   :  { %10683 = vmatpush3.msra.mxu1 %v267_v24  ;;  %v254_v24 = vld [vmem:[%s12350_s28 + $0x18] sm:$0xff] }
0x2a9d   :  { %10685 = vmatmul.mubr.msk.f32.vlgmr.msra.gmra.mxu1 %vm585_vm3, %v11972_v26  ;;  %10698 = vmatprep.subr.mxu1 %v286_v27 }
0x2a9e   :  { %10699 = vmatpush3.msra.mxu1 %v286_v27  ;;  %10706 = vmatprep.mubr.msk.f32.mxu1 %vm585_vm3, %v11953_v2 }
0x2a9f   :  { %10700 = vmatprep.subr.mxu1 %v285_v32 }
0x2aa0   :  { %10701 = vmatpush3.msra.mxu1 %v285_v32 }
0x2aa1   :  { %10702 = vmatprep.subr.mxu1 %v284_v35 }
0x2aa2   :  { %10703 = vmatpush3.msra.mxu1 %v284_v35 }
0x2aa3   :  { %10704 = vmatprep.subr.mxu1 %v283_v37 }
0x2aa4   :  { %10705 = vmatpush3.msra.mxu1 %v283_v37 }
0x2aa5   :  { %10707 = vmatmul.mubr.msk.f32.vlgmr.msra.gmra.mxu1 %vm585_vm3, %v11955_v61  ;;  %10719 = vmatprep.subr.mxu1 %v11054_v17 }
0x2aa6   :  { %10721 = vmatprep.mubr.msk.f32.mxu1 %vm11055_vm4, %v11054_v17 }
0x2b51   :  { %v8007_v40 = vpop.f32.mrf.mxu0 }
0x2b52   :  { %10673 = vmatprep.mubr.msk.f32.mxu0 %vm829_vm5, %v8007_v40 }
0x2b53   :  { %v10665_v42 = vpop.f32.mrf.mxu0 }
0x2b55   :  { %v8080_v33 = vpop.f32.mrf.mxu1 }
0x2b56   :  { %10674 = vmatmul.mubr.msk.f32.vlgmr.msra.gmra.mxu0 %vm829_vm5, %v8080_v33 }
0x2b57   :  { %10688 = vmatpush3.msra.mxu0 %v250_v28  ;;  %v10670_v56 = vpop.f32.mrf.mxu1  ;;  %10695 = vmatprep.mubr.msk.f32.mxu0 %vm585_vm3, %v11953_v2  ;;  %v9539_v2 = vld [vmem:[%s12348_s23 + $0x3] ss:$0 sm:$0xff] }
0x2b58   :  { %10689 = vmatprep.subr.mxu0 %v249_v1 }
0x2b59   :  { %10690 = vmatpush3.msra.mxu0 %v249_v1 }
0x2b5a   :  { %10691 = vmatprep.subr.mxu0 %v248_v55 }
0x2b5b   :  { %10692 = vmatpush3.msra.mxu0 %v248_v55 }
0x2b5c   :  { %10693 = vmatprep.subr.mxu0 %v247_v41 }
0x2b5d   :  { %10694 = vmatpush3.msra.mxu0 %v247_v41  ;;  %v10686_v44 = vpop.f32.mrf.mxu1 }
0x2b5e   :  { %10696 = vmatmul.mubr.msk.f32.vlgmr.msra.gmra.mxu0 %vm585_vm3, %v11955_v61  ;;  %10709 = vmatprep.subr.mxu0 %v11054_v17  ;;  %v7509_v61 = vadd.f32 %v12107_v39, %v12123_v12  ;;  %v8245_v39 = vadd.f32 %v10686_v44, %v9533_v9 }
0x2b5f   :  { %10711 = vmatprep.mubr.msk.f32.mxu0 %vm11055_vm4, %v11054_v17  ;;  %v8239_v46 = vpop.f32.mrf.mxu1 }
0x2b60   :  { %v8240_v29 = vadd.f32 %v9533_v9, %v8239_v46  ;;  %v297_v9 = vld [vmem:[%s12353_s7 + $0x20] sm:$0xff] }
0x2b65   :  { %v10708_v47 = vpop.f32.mrf.mxu1 }
0x2b66   :  { %v8407_v49 = vadd.f32 %v10708_v47, %v9539_v2 }
0x2b67   :  { %v8401_v50 = vpop.f32.mrf.mxu1 }
0x2b68   :  { %v8402_v52 = vadd.f32 %v9539_v2, %v8401_v50 }
0x2b6a   :  { %10720 = vmatpush3.msra.mxu1 %v8402_v52 }
0x2b6b   :  { %10729 = vmatprep.subr.mxu1 %v254_v24 }
0x2c16   :  { %v10675_v54 = vpop.f32.mrf.mxu0 }
0x2c17   :  { %v12183_v30 = vadd.f32 %v10675_v54, %v7514_v31 }
0x2c18   :  { %v8156_v10 = vpop.f32.mrf.mxu0 }
0x2c19   :  { %v12185_v57 = vadd.f32 %v8156_v10, %v7509_v61  ;;  %v291_v10 = vld [vmem:[%s12352_s2 + $0x10] sm:$0xff] }
0x2c1e   :  { %v10697_v58 = vpop.f32.mrf.mxu0 }
0x2c1f   :  { %v8326_v36 = vadd.f32 %v10697_v58, %v9536_v59  ;;  %v289_v58 = vld [vmem:[%s12352_s2] sm:$0xff] }
0x2c20   :  { %v8320_v62 = vpop.f32.mrf.mxu0 }
0x2c21   :  { %v8321_v63 = vadd.f32 %v9536_v59, %v8320_v62  ;;  %v300_v59 = vld [vmem:[%s12353_s7 + $0x38] sm:$0xff]  ;;  %v299_v62 = vld [vmem:[%s12353_s7 + $0x30] sm:$0xff] }
0x2c23   :  { %10710 = vmatpush3.xpose.msk.msra.mxu0 %vm829_vm5, %v8321_v63  ;;  %v298_v63 = vld [vmem:[%s12353_s7 + $0x28] sm:$0xff] }
0x2c24   :  { %10714 = vmatprep.subr.mxu0 %v11054_v17 }
0x2c26   :  { %10712 = vmatmul.mubr.msk.f32.vlgmr.msra.gmra.mxu0 %vm829_vm5, %v8240_v29 }
0x2c27   :  { %10715 = vmatpush3.xpose.msk.msra.mxu0 %vm829_vm5, %v8326_v36  ;;  %10716 = vmatprep.mubr.msk.f32.mxu0 %vm11055_vm4, %v11054_v17 }
0x2c28   :  { %10724 = vmatprep.subr.mxu0 %v11054_v17 }
0x2c2a   :  { %10717 = vmatmul.mubr.msk.f32.vlgmr.msra.gmra.mxu0 %vm829_vm5, %v8245_v39 }
0x2c2b   :  { %10725 = vmatpush3.msra.mxu0 %v8407_v49  ;;  %10726 = vmatprep.mubr.msk.f32.mxu0 %vm11055_vm4, %v11054_v17 }
0x2ce6   :  { %v8482_v11 = vpop.f32.mrf.mxu0 }
0x2ce7   :  { %v8562_v12 = vmul.f32 0.35355338, %v8482_v11 }
0x2ce8   :  { %v10713_v34 = vpop.f32.mrf.mxu0 }
0x2ce9   :  { %v8564_v43 = vsel %vm6616_vm12, %v8562_v12, -1e+09 }
0x2cea   :  { %v8558_v0 = vpop.f32.mrf.mxu0  ;;  %v8566_v3 = vsel %vm829_vm5, %v8564_v43, -inf }
0x2ceb   :  { %v8563_v60 = vmul.f32 0.35355338, %v8558_v0  ;;  %8567 = vmax.xlane.f32.xlu1 %v8566_v3  ;;  %v9551_v0 = vld [vmem:[%s12354_s10] ss:$0 sm:$0xff] }
0x2cec   :  { %v10718_v4 = vpop.f32.mrf.mxu0 }
0x2ced   :  { %v8565_v13 = vsel %vm6617_vm13, %v8563_v60, -1e+09 }
0x2cee   :  { %v8569_v5 = vsel %vm829_vm5, %v8565_v13, -inf }
0x2cef   :  { %8570 = vmax.xlane.f32.xlu0 %v8569_v5  ;;  %v9552_v5 = vld [vmem:[%s12355_s11] ss:$0 sm:$0xff] }
0x2d74   :  { %v8568_v6 = vpop.xlane.xlu1 %8567 }
0x2d75   :  { %v8572_v17 = vsub.f32 %v8564_v43, %v8568_v6 }
0x2d77   :  { %v8574_v7 = vmul.f32 1.442695, %v8572_v17 }
0x2d78   :  { %v8571_v14 = vpop.xlane.xlu0 %8570 }
0x2d79   :  { %10942 = vpow2.f32 %v8574_v7  ;;  %v8573_v8 = vsub.f32 %v8565_v13, %v8571_v14  ;;  %v296_v14 = vld [vmem:[%s12353_s7 + $0x18] sm:$0xff] }
0x2d7b   :  { %v8576_v45 = vmul.f32 1.442695, %v8573_v8  ;;  %v295_v8 = vld [vmem:[%s12353_s7 + $0x10] sm:$0xff] }
0x2d7d   :  { %10944 = vpow2.f32 %v8576_v45  ;;  %v294_v45 = vld [vmem:[%s12353_s7 + $0x8] sm:$0xff] }
0x2d86   :  { %v10943_v53 = vpop.eup %10942 }
0x2d87   :  { %v8578_v16 = vsel %vm829_vm5, %v10943_v53, 0.0 }
0x2d88   :  { %8579 = vadd.xlane.f32.xlu1 %v8578_v16  ;;  %v9553_v16 = vld [vmem:[%s12356_s0] ss:$0 sm:$0xff] }
0x2d8a   :  { %v10945_v51 = vpop.eup %10944 }
0x2d8b   :  { %v8581_v48 = vsel %vm829_vm5, %v10945_v51, 0.0 }
0x2d8c   :  { %8582 = vadd.xlane.f32.xlu0 %v8581_v48 }
0x2e11   :  { %v8580_v18 = vpop.xlane.xlu1 %8579 }
0x2e12   :  { %10946 = vrcp.f32 %v8580_v18 }
0x2e15   :  { %v8583_v19 = vpop.xlane.xlu0 %8582 }
0x2e16   :  { %10948 = vrcp.f32 %v8583_v19 }
0x2e1f   :  { %v10947_v20 = vpop.eup %10946 }
0x2e20   :  { %v8585_v21 = vmul.f32 %v10947_v20, %v10943_v53  ;;  %v293_v53 = vld [vmem:[%s12353_s7] sm:$0xff] }
0x2e22   :  { %10722 = vmatmul.mubr.msk.f32.vlgmr.msra.gmra.mxu1 %vm829_vm5, %v8585_v21 }
0x2e23   :  { %v10949_v22 = vpop.eup %10948  ;;  %10730 = vmatpush3.msra.mxu1 %v254_v24 }
0x2e24   :  { %v8587_v23 = vmul.f32 %v10949_v22, %v10945_v51  ;;  %10745 = vmatprep.subr.mxu1 %v300_v59  ;;  %v9556_v22 = vld [vmem:[%s12357_s5] ss:$0 sm:$0xff] }
0x2e26   :  { %10727 = vmatmul.mubr.msk.f32.vlgmr.msra.gmra.mxu0 %vm829_vm5, %v8587_v23 }
0x2ee2   :  { %v8657_v27 = vpop.f32.mrf.mxu1 }
0x2ee3   :  { %10731 = vmatprep.mubr.msk.f32.mxu1 %vm829_vm5, %v8657_v27 }
0x2ee4   :  { %v10723_v32 = vpop.f32.mrf.mxu1 }
0x2ee6   :  { %v8730_v35 = vpop.f32.mrf.mxu0 }
0x2ee7   :  { %10732 = vmatmul.mubr.msk.f32.vlgmr.msra.gmra.mxu1 %vm829_vm5, %v8730_v35 }
0x2ee8   :  { %v10728_v37 = vpop.f32.mrf.mxu0  ;;  %10746 = vmatpush3.msra.mxu1 %v300_v59 }
0x2ee9   :  { %10747 = vmatprep.subr.mxu1 %v299_v62 }
0x2eea   :  { %10748 = vmatpush3.msra.mxu1 %v299_v62 }
0x2eeb   :  { %10749 = vmatprep.subr.mxu1 %v298_v63 }
0x2eec   :  { %10750 = vmatpush3.msra.mxu1 %v298_v63 }
0x2eed   :  { %10751 = vmatprep.subr.mxu1 %v297_v9 }
0x2eee   :  { %10752 = vmatpush3.msra.mxu1 %v297_v9  ;;  %v9560_v9 = vld [vmem:[%s12360_s17] ss:$0 sm:$0xff] }
0x2eef   :  { %10753 = vmatprep.subr.mxu1 %v296_v14 }
0x2ef0   :  { %10754 = vmatpush3.msra.mxu1 %v296_v14 }
0x2ef1   :  { %10755 = vmatprep.subr.mxu1 %v295_v8 }
0x2ef2   :  { %10756 = vmatpush3.msra.mxu1 %v295_v8 }
0x2ef3   :  { %10757 = vmatprep.subr.mxu1 %v294_v45 }
0x2ef4   :  { %10758 = vmatpush3.msra.mxu1 %v294_v45 }
0x2ef5   :  { %10759 = vmatprep.subr.mxu1 %v293_v53 }
0x2ef6   :  { %10760 = vmatpush3.msra.mxu1 %v293_v53 }
0x2fa7   :  { %v10733_v28 = vpop.f32.mrf.mxu1 }
0x2fa8   :  { %v8816_v40 = vadd.f32 %v10733_v28, %v12183_v30  ;;  %v292_v30 = vld [vmem:[%s12352_s2 + $0x18] sm:$0xff] }
0x2fa9   :  { %v8806_v42 = vpop.f32.mrf.mxu1  ;;  %10734 = vmatprep.subr.mxu0 %v292_v30 }
0x2faa   :  { %v8824_v33 = vadd.f32 %v9550_v38, %v8816_v40  ;;  %v8815_v1 = vadd.f32 %v8806_v42, %v12185_v57  ;;  %10735 = vmatpush3.msra.mxu0 %v292_v30  ;;  %v290_v57 = vld [vmem:[%s12352_s2 + $0x8] sm:$0xff] }
0x2fab   :  { %10736 = vmatprep.subr.mxu0 %v291_v10 }
0x2fac   :  { %v8823_v56 = vadd.f32 %v9550_v38, %v8815_v1  ;;  %v8826_v55 = vadd.f32 %v8824_v33, %v11972_v26  ;;  %10737 = vmatpush3.msra.mxu0 %v291_v10 }
0x2fad   :  { %10738 = vmatprep.subr.mxu0 %v290_v57 }
0x2fae   :  { %v8830_v41 = vsel %vm585_vm3, %v8826_v55, 0.0  ;;  %v8825_v44 = vadd.f32 %v8823_v56, %v11970_v25  ;;  %10739 = vmatpush3.msra.mxu0 %v290_v57  ;;  %v9559_v57 = vld [vmem:[%s12359_s13] ss:$0 sm:$0xff] }
0x2faf   :  { %8831 = vadd.xlane.f32.xlu0 %v8830_v41  ;;  %10740 = vmatprep.subr.mxu0 %v289_v58 }
0x2fb0   :  { %v8827_v46 = vsel %vm585_vm3, %v8825_v44, 0.0  ;;  %10741 = vmatpush3.msra.mxu0 %v289_v58 }
0x2fb1   :  { %8828 = vadd.xlane.f32.xlu1 %v8827_v46 }
0x3038   :  { %v8832_v2 = vpop.xlane.xlu0 %8831 }
0x3039   :  { %v8834_v47 = vmul.f32 0.03125, %v8832_v2 }
0x303a   :  { %v8829_v49 = vpop.xlane.xlu1 %8828 }
0x303b   :  { %v8836_v50 = vsub.f32 %v8826_v55, %v8834_v47  ;;  %v8833_v52 = vmul.f32 0.03125, %v8829_v49  ;;  %v458_v47 = vld [vmem:[%s12358_s9 + $0x18] sm:$0xff]  ;;  %v457_v49 = vld [vmem:[%s12358_s9 + $0x10] sm:$0xff] }
0x303c   :  { %10764 = vmatprep.subr.mxu0 %v458_v47 }
0x303d   :  { %v8835_v31 = vsub.f32 %v8825_v44, %v8833_v52  ;;  %v8838_v54 = vmul.f32 %v8836_v50, %v8836_v50  ;;  %v455_v52 = vld [vmem:[%s12358_s9] sm:$0xff] }
0x303f   :  { %v8842_v26 = vsel %vm585_vm3, %v8838_v54, 0.0  ;;  %v8837_v61 = vmul.f32 %v8835_v31, %v8835_v31 }
0x3040   :  { %8843 = vadd.xlane.f32.xlu0 %v8842_v26 }
0x3041   :  { %v8839_v25 = vsel %vm585_vm3, %v8837_v61, 0.0 }
0x3042   :  { %8840 = vadd.xlane.f32.xlu1 %v8839_v25 }
0x30c9   :  { %v8844_v29 = vpop.xlane.xlu0 %8843 }
0x30ca   :  { %v8846_v36 = vmul.f32 0.03125, %v8844_v29 }
0x30cb   :  { %v8841_v39 = vpop.xlane.xlu1 %8840 }
0x30cc   :  { %v8848_v11 = vadd.f32 1e-05, %v8846_v36  ;;  %v8845_v12 = vmul.f32 0.03125, %v8841_v39 }
0x30ce   :  { %10950 = vrsqrt.f32 %v8848_v11  ;;  %v8847_v34 = vadd.f32 1e-05, %v8845_v12  ;;  %v9561_v11 = vld [vmem:[%s12361_s21] ss:$0 sm:$0xff] }
0x30d0   :  { %10952 = vrsqrt.f32 %v8847_v34 }
0x30db   :  { %v10951_v43 = vpop.eup %10950 }
0x30dc   :  { %v8852_v3 = vmul.f32 %v10951_v43, %v8836_v50  ;;  %v456_v50 = vld [vmem:[%s12358_s9 + $0x8] sm:$0xff] }
0x30dd   :  { %v10953_v60 = vpop.eup %10952 }
0x30de   :  { %v8851_v4 = vmul.f32 %v10953_v60, %v8835_v31  ;;  %v8860_v13 = vmul.f32 %v9551_v0, %v8852_v3 }
0x30e0   :  { %v8859_v6 = vmul.f32 %v9551_v0, %v8851_v4  ;;  %v8868_v7 = vadd.f32 %v9552_v5, %v8860_v13  ;;  %v473_v4 = vld [vmem:[%s12362_s25] sm:$0xff]  ;;  %v474_v13 = vld [vmem:[%s12362_s25 + $0x8] sm:$0xff] }
0x30e2   :  { %v8867_v17 = vadd.f32 %v9552_v5, %v8859_v6 }
0x30e4   :  { %10742 = vmatprep.mubr.msk.f32.mxu0 %vm585_vm3, %v8867_v17 }
0x30e5   :  { %10743 = vmatmul.mubr.msk.f32.vlgmr.msra.gmra.mxu0 %vm585_vm3, %v8868_v7 }
0x30e6   :  { %10765 = vmatpush3.msra.mxu0 %v458_v47 }
0x30e7   :  { %10766 = vmatprep.subr.mxu0 %v457_v49 }
0x30e8   :  { %10767 = vmatpush3.msra.mxu0 %v457_v49 }
0x30e9   :  { %10768 = vmatprep.subr.mxu0 %v456_v50 }
0x30ea   :  { %10769 = vmatpush3.msra.mxu0 %v456_v50 }
0x30eb   :  { %10770 = vmatprep.subr.mxu0 %v455_v52 }
0x30ec   :  { %10771 = vmatpush3.msra.mxu0 %v455_v52 }
0x31a5   :  { %v10744_v51 = vpop.f32.mrf.mxu0 }
0x31a6   :  { %v8953_v48 = vadd.f32 %v10744_v51, %v9553_v16 }
0x31a7   :  { %v8947_v18 = vpop.f32.mrf.mxu0 }
0x31a8   :  { %v8948_v19 = vadd.f32 %v9553_v16, %v8947_v18  ;;  %v8957_v21 = vmax.f32 %v8953_v48, 0.0 }
0x31aa   :  { %v8956_v20 = vmax.f32 %v8948_v19, 0.0  ;;  %v482_v19 = vld [vmem:[%s12363_s29 + $0x8] sm:$0xff] }
0x31ac   :  { %10761 = vmatprep.mubr.msk.f32.mxu1 %vm497_vm0, %v8956_v20  ;;  %v481_v20 = vld [vmem:[%s12363_s29] sm:$0xff] }
0x31ad   :  { %10762 = vmatmul.mubr.msk.f32.vlgmr.msra.gmra.mxu1 %vm497_vm0, %v8957_v21  ;;  %v9232_v21 = vsel %vm9219_vm1, %v481_v20, 0.0 }
0x326d   :  { %v10763_v23 = vpop.f32.mrf.mxu1 }
0x326e   :  { %v9042_v24 = vadd.f32 %v10763_v23, %v9556_v22 }
0x326f   :  { %v9036_v27 = vpop.f32.mrf.mxu1 }
0x3270   :  { %v9037_v32 = vadd.f32 %v9556_v22, %v9036_v27  ;;  %v9046_v35 = vadd.f32 %v9042_v24, %v8868_v7  ;;  %v9233_v22 = vsel %vm9219_vm1, %v482_v19, 0.0 }
0x3271   :  { %v9234_v23 = vadd.f32 %v9233_v22, %v9232_v21 }
0x3272   :  { %v9050_v37 = vsel %vm585_vm3, %v9046_v35, 0.0  ;;  %v9045_v38 = vadd.f32 %v9037_v32, %v8867_v17 }
0x3273   :  { %9051 = vadd.xlane.f32.xlu0 %v9050_v37 }
0x3274   :  { %v9047_v28 = vsel %vm585_vm3, %v9045_v38, 0.0 }
0x3275   :  { %9048 = vadd.xlane.f32.xlu1 %v9047_v28 }
0x32fc   :  { %v9052_v40 = vpop.xlane.xlu0 %9051 }
0x32fd   :  { %v9054_v42 = vmul.f32 0.03125, %v9052_v40 }
0x32fe   :  { %v9049_v33 = vpop.xlane.xlu1 %9048 }
0x32ff   :  { %v9056_v1 = vsub.f32 %v9046_v35, %v9054_v42  ;;  %v9053_v56 = vmul.f32 0.03125, %v9049_v33 }
0x3301   :  { %v9055_v55 = vsub.f32 %v9045_v38, %v9053_v56  ;;  %v9058_v41 = vmul.f32 %v9056_v1, %v9056_v1 }
0x3303   :  { %v9062_v44 = vsel %vm585_vm3, %v9058_v41, 0.0  ;;  %v9057_v46 = vmul.f32 %v9055_v55, %v9055_v55 }
0x3304   :  { %9063 = vadd.xlane.f32.xlu0 %v9062_v44 }
0x3305   :  { %v9059_v2 = vsel %vm585_vm3, %v9057_v46, 0.0 }
0x3306   :  { %9060 = vadd.xlane.f32.xlu1 %v9059_v2 }
0x338d   :  { %v9064_v31 = vpop.xlane.xlu0 %9063 }
0x338e   :  { %v9066_v54 = vmul.f32 0.03125, %v9064_v31 }
0x338f   :  { %v9061_v26 = vpop.xlane.xlu1 %9060 }
0x3390   :  { %v9068_v61 = vadd.f32 1e-05, %v9066_v54  ;;  %v9065_v25 = vmul.f32 0.03125, %v9061_v26 }
0x3392   :  { %10954 = vrsqrt.f32 %v9068_v61  ;;  %v9067_v30 = vadd.f32 1e-05, %v9065_v25 }
0x3394   :  { %10956 = vrsqrt.f32 %v9067_v30 }
0x339f   :  { %v10955_v10 = vpop.eup %10954 }
0x33a0   :  { %v9072_v58 = vmul.f32 %v10955_v10, %v9056_v1 }
0x33a1   :  { %v10957_v59 = vpop.eup %10956 }
0x33a2   :  { %v9071_v62 = vmul.f32 %v10957_v59, %v9055_v55  ;;  %v9080_v63 = vmul.f32 %v9559_v57, %v9072_v58 }
0x33a4   :  { %v9079_v29 = vmul.f32 %v9559_v57, %v9071_v62  ;;  %v9088_v39 = vadd.f32 %v9560_v9, %v9080_v63 }
0x33a6   :  { %v9087_v36 = vadd.f32 %v9560_v9, %v9079_v29 }
0x33a8   :  { %10772 = vmatprep.mubr.msk.f32.mxu0 %vm585_vm3, %v9087_v36 }
0x33a9   :  { %10773 = vmatmul.mubr.msk.f32.vlgmr.msra.gmra.mxu0 %vm585_vm3, %v9088_v39 }
0x3469   :  { %v10774_v12 = vpop.f32.mrf.mxu0 }
0x346a   :  { %v9173_v34 = vadd.f32 %v10774_v12, %v9561_v11 }
0x346b   :  { %v9167_v43 = vpop.f32.mrf.mxu0 }
0x346c   :  { %9177 = vst [vmem:[%s11331_s19 + $0x8] sm:$0xff] %v9173_v34  ;;  %v9168_v0 = vadd.f32 %v9561_v11, %v9167_v43  ;;  %v9180_v3 = vsel %vm9178_vm14, %v9173_v34, -1e+09 }
0x346d   :  { %9183 = vmax.xlane.f32.xlu0 %v9180_v3 }
0x346e   :  { %9176 = vst [vmem:[%s11331_s19] sm:$0xff] %v9168_v0  ;;  %v9179_v60 = vsel %vm9178_vm14, %v9168_v0, -1e+09 }
0x346f   :  { %9181 = vmax.xlane.f32.xlu1 %v9179_v60 }
0x3480   :  { %9202 = vperm.xlu1 %10841, %v473_v4  }
0x3483   :  { %9205 = vperm.xlu0 %10840, %v474_v13  }
0x34f6   :  { %v9184_v5 = vpop.xlane.xlu0 %9183 }
0x34f7   :  { %v9186_v6 = vsub.f32 %v9180_v3, %v9184_v5 }
0x34f8   :  { %v9182_v17 = vpop.xlane.xlu1 %9181 }
0x34f9   :  { %v9189_v7 = vmul.f32 1.442695, %v9186_v6  ;;  %v9185_v14 = vsub.f32 %v9179_v60, %v9182_v17 }
0x34fb   :  { %10958 = vpow2.f32 %v9189_v7  ;;  %v9187_v8 = vmul.f32 1.442695, %v9185_v14 }
0x34fc   :  { %v9203_v16 = vpop.permute.xlu1 %9202 }
0x34fd   :  { %10960 = vpow2.f32 %v9187_v8  ;;  %vm9207_vm0 = vcmp.eq.s32.totalorder %v11351_v15, %v9203_v16 }
0x34fe   :  { %v9206_v45 = vpop.permute.xlu0 %9205  ;;  %v9209_v18 = vsel %vm9207_vm0, %v9168_v0, 0.0 }
0x34ff   :  { %vm9208_vm15 = vcmp.eq.s32.totalorder %v11351_v15, %v9206_v45 }
0x3500   :  { %v9210_v48 = vsel %vm9208_vm15, %v9173_v34, 0.0 }
0x3508   :  { %v10959_v53 = vpop.eup %10958 }
0x3509   :  { %9193 = vadd.xlane.f32.xlu0 %v10959_v53 }
0x350a   :  { %v10961_v51 = vpop.eup %10960 }
0x350b   :  { %9191 = vadd.xlane.f32.xlu1 %v10961_v51 }
0x350d   :  { %9213 = vadd.xlane.f32.xlu0 %v9210_v48 }
0x350f   :  { %9211 = vadd.xlane.f32.xlu1 %v9209_v18 }
0x3511   :  { %9235 = vadd.xlane.f32.xlu0 %v9234_v23 }
0x3592   :  { %v9194_v24 = vpop.xlane.xlu0 %9193 }
0x3593   :  { %10962 = vlog2.f32 %v9194_v24 }
0x3594   :  { %v9192_v27 = vpop.xlane.xlu1 %9191 }
0x3595   :  { %10964 = vlog2.f32 %v9192_v27 }
0x3596   :  { %v9214_v28 = vpop.xlane.xlu0 %9213 }
0x3598   :  { %v9212_v33 = vpop.xlane.xlu1 %9211 }
0x359a   :  { %v9236_v2 = vpop.xlane.xlu0 %9235 }
0x359b   :  { %v9237_v47 = vrot.slane %v9236_v2, 4 }
0x359d   :  { %v9238_v49 = vadd.f32 %v9237_v47, %v9236_v2 }
0x359f   :  { %v9239_v50 = vrot.slane %v9238_v49, 2 }
0x35a0   :  { %v10963_v32 = vpop.eup %10962 }
0x35a1   :  { %v9198_v15 = vmul.f32 0.6931472, %v10963_v32  ;;  %v9240_v26 = vadd.f32 %v9239_v50, %v9238_v49 }
0x35a2   :  { %v10965_v35 = vpop.eup %10964 }
0x35a3   :  { %v9196_v37 = vmul.f32 0.6931472, %v10965_v35  ;;  %v9200_v38 = vadd.f32 %v9198_v15, %v9184_v5  ;;  %v9241_v30 = vrot.slane %v9240_v26, 1 }
0x35a5   :  { %v9216_v40 = vsub.f32 %v9200_v38, %v9214_v28  ;;  %v9199_v42 = vadd.f32 %v9196_v37, %v9182_v17  ;;  %v9242_v58 = vadd.f32 %v9241_v30, %v9240_v26 }
0x35a7   :  { %v9218_v1 = vmul.f32 %v9216_v40, %v482_v19  ;;  %v9215_v56 = vsub.f32 %v9199_v42, %v9212_v33 }
0x35a9   :  { %v9217_v55 = vmul.f32 %v9215_v56, %v481_v20  ;;  %v9221_v44 = vsel %vm9219_vm1, %v9218_v1, 0.0 }
0x35ab   :  { %v9220_v41 = vsel %vm9219_vm1, %v9217_v55, 0.0 }
0x35ac   :  { %v9222_v46 = vadd.f32 %v9221_v44, %v9220_v41 }
0x35ae   :  { %9223 = vadd.xlane.f32.xlu1 %v9222_v46 }
0x3637   :  { %v9224_v52 = vpop.xlane.xlu1 %9223 }
0x3638   :  { %v9225_v31 = vrot.slane %v9224_v52, 4 }
0x363a   :  { %v9226_v54 = vadd.f32 %v9225_v31, %v9224_v52 }
0x363c   :  { %v9227_v61 = vrot.slane %v9226_v54, 2 }
0x363e   :  { %v9228_v25 = vadd.f32 %v9227_v61, %v9226_v54 }
0x3640   :  { %v9229_v10 = vrot.slane %v9228_v25, 1 }
0x3642   :  { %v9230_v57 = vadd.f32 %v9229_v10, %v9228_v25 }
0x3644   :  { %10775 = vpush %v9230_v57 }
0x3645   :  { %10777 = vpush %v9242_v58 }
0x3675   :  { %s10776_s19 = spop %10775 }
0x3676   :  { %s10778_s3 = spop %10777 }
0x3677   :  { %s9244_s24 = smax.f32 %s11056_s14, %s10778_s3 }
0x3678   :  { %v9245_v59 = vstv %s9244_s24 }
0x3679   :  { %10966 = vrcp.f32 %v9245_v59 }
0x3686   :  { %v10967_v62 = vpop.eup %10966 }
0x3687   :  { %10779 = vpush %v10967_v62 }
0x36b8   :  { %s10780_s12 = spop %10779 }
0x36b9   :  { %s9248_s20 = smul.f32 %s10780_s12, %s10776_s19 }
0x36bb   :  { %v9249_v63 = vstv %s9248_s20 }
0x36bc   :  { %9251 = vst.msk [vmem:[#allocation2] sm:$0x1] %vm9250_vm2, %v9249_v63 }
0x36bd   :  { %10988 = shalt.err (!%p10985_p4)
}
0x36be   :  { %9263 = dma.vmem_to_hbm [thread:$0]  %s9261_s6, 16, %s11336_s8, [#allocation3]  }
0x36bf   :  { %10997 = dma.done.wait [#allocation3], 16  }
0x36c0   :  { %10998 = vsyncadd [#allocation3], 4294967280 }
0x36c1   :  { %9269 = vsyncpa [#allocation3], 1 }

</bundles_post_ra>
